<compile_context>
chip_gen: v6e
topology: v6e:2x2x1
jax: 0.10.0
libtpu: 0.0.40
codegen_flags: <defaults>
</compile_context>

<pallas_src>
import jax
import jax.numpy as jnp
from jax.experimental import pallas as pl
from jax.experimental.pallas import tpu as pltpu

EPS = 1e-5


def _bn_scale_shift(h, gamma, beta):
    """Training-mode BatchNorm1d folded to per-feature (scale, shift).

    h: (B, D) f32.  Stats are plain batch-axis reductions (VPU/XLU), f32,
    two-pass variance.  out = h * scale + shift.
    """
    inv_b = jnp.float32(1.0 / h.shape[0])
    mu = jnp.sum(h, axis=0, keepdims=True) * inv_b          # (1, D)
    c = h - mu
    var = jnp.sum(c * c, axis=0, keepdims=True) * inv_b      # biased variance
    scale = gamma * jax.lax.rsqrt(var + EPS)                  # (1, D)
    shift = beta - mu * scale                                 # (1, D)
    return scale, shift


def resnet_block_kernel(x_ref, w1_ref, w2_ref, w3_ref, bn_ref, o_ref):
    x = x_ref[...]                                   # (B, Din) f32, residual
    din = x.shape[1]

    bn = bn_ref[...]                                 # (8, Dh) packed BN affine slab
    g1, be1 = bn[0:1, :], bn[1:2, :]
    g2, be2 = bn[2:3, :], bn[3:4, :]
    g3, be3 = bn[4:5, :din], bn[5:6, :din]

    # fc1 (bf16 MXU, f32 acc) -> folded bn1 -> relu -> bf16 (fused epilogue).
    # Linear bias cancels under training-mode BN.
    h = jnp.dot(x.astype(jnp.bfloat16), w1_ref[...],
                preferred_element_type=jnp.float32)
    s, t = _bn_scale_shift(h, g1, be1)
    h = jnp.maximum(h * s + t, 0.0).astype(jnp.bfloat16)

    # fc2 -> bn2 -> relu -> bf16
    h = jnp.dot(h, w2_ref[...], preferred_element_type=jnp.float32)
    s, t = _bn_scale_shift(h, g2, be2)
    h = jnp.maximum(h * s + t, 0.0).astype(jnp.bfloat16)

    # fc3 -> bn3 -> +residual -> relu
    h = jnp.dot(h, w3_ref[...], preferred_element_type=jnp.float32)
    s, t = _bn_scale_shift(h, g3, be3)
    h = h * s + t + x
    o_ref[...] = jnp.maximum(h, 0.0).astype(o_ref.dtype)


def resnet_block(x, params):
    """x: (B, Din) float32. params: dict with bf16 weights + packed BN slab."""
    B, Din = x.shape
    Dh = params["w1_bf16"].shape[1]
    vmem = pl.BlockSpec(memory_space=pltpu.MemorySpace.VMEM)
    args = (x, params["w1_bf16"], params["w2_bf16"], params["w3_bf16"],
            params["bn_slab"])

    mm_flops = 2 * B * (Din * Dh + Dh * Dh + Dh * Din)
    bytes_accessed = (
        x.size * 4                                   # x in (f32)
        + 2 * (Din * Dh + Dh * Dh + Dh * Din)        # bf16 weights
        + params["bn_slab"].size * 4                 # BN slab
        + B * Din * 4                                # output
    )
    return pl.pallas_call(
        resnet_block_kernel,
        out_shape=jax.ShapeDtypeStruct((B, Din), x.dtype),
        in_specs=[vmem] * len(args),
        out_specs=vmem,
        # Output reuses x's HBM buffer if x is donatable; otherwise XLA copies.
        input_output_aliases={0: 0},
        cost_estimate=pl.CostEstimate(
            flops=mm_flops,
            transcendentals=2 * Dh + Din,            # three per-feature rsqrt
            bytes_accessed=bytes_accessed,
        ),
    )(*args)


def init_params(key, input_dim, hidden_dim):
    ks = jax.random.split(key, 9)
    # Linear weights stored as (in, out) (PyTorch stores (out, in); pre-transposed).
    w1 = jax.random.normal(ks[0], (input_dim, hidden_dim), jnp.float32) * 0.1
    b1 = jax.random.normal(ks[1], (1, hidden_dim), jnp.float32) * 0.05
    w2 = jax.random.normal(ks[2], (hidden_dim, hidden_dim), jnp.float32) * 0.1
    b2 = jax.random.normal(ks[3], (1, hidden_dim), jnp.float32) * 0.05
    w3 = jax.random.normal(ks[4], (hidden_dim, input_dim), jnp.float32) * 0.1
    b3 = jax.random.normal(ks[5], (1, input_dim), jnp.float32) * 0.05
    # BatchNorm affine params (perturbed so the affine path is exercised).
    g1 = 1.0 + 0.1 * jax.random.normal(ks[6], (1, hidden_dim), jnp.float32)
    be1 = jnp.full((1, hidden_dim), 0.01, jnp.float32)
    g2 = 1.0 + 0.1 * jax.random.normal(ks[7], (1, hidden_dim), jnp.float32)
    be2 = jnp.full((1, hidden_dim), -0.01, jnp.float32)
    g3 = 1.0 + 0.1 * jax.random.normal(ks[8], (1, input_dim), jnp.float32)
    be3 = jnp.full((1, input_dim), 0.02, jnp.float32)

    p = dict(w1=w1, b1=b1, g1=g1, be1=be1,
             w2=w2, b2=b2, g2=g2, be2=be2,
             w3=w3, b3=b3, g3=g3, be3=be3)
    # bf16 weight copies for the MXU (f32 copies only used by the references).
    for name in ("w1", "w2", "w3"):
        p[name + "_bf16"] = p[name].astype(jnp.bfloat16)
    # Pack the six (1, D) BN affine params into a single (8, hidden_dim) f32 slab:
    # rows 0..3 = g1, be1, g2, be2; rows 4,5 = g3, be3 (first input_dim lanes valid).
    slab = jnp.zeros((8, hidden_dim), jnp.float32)
    slab = slab.at[0, :].set(g1[0]).at[1, :].set(be1[0])
    slab = slab.at[2, :].set(g2[0]).at[3, :].set(be2[0])
    slab = slab.at[4, :input_dim].set(g3[0]).at[5, :input_dim].set(be3[0])
    p["bn_slab"] = slab
    return p


def reference_f32(x, p):
    """Exact PyTorch-module semantics (training-mode BN, f32 matmuls, with biases)."""
    def bn(h, g, b):
        mu = jnp.mean(h, axis=0, keepdims=True)
        var = jnp.mean((h - mu) ** 2, axis=0, keepdims=True)
        return (h - mu) / jnp.sqrt(var + EPS) * g + b

    h = jnp.maximum(bn(x @ p["w1"] + p["b1"], p["g1"], p["be1"]), 0.0)
    h = jnp.maximum(bn(h @ p["w2"] + p["b2"], p["g2"], p["be2"]), 0.0)
    h = bn(h @ p["w3"] + p["b3"], p["g3"], p["be3"]) + x
    return jnp.maximum(h, 0.0)


def reference_bf16(x, p):
    """Plain-JAX mirror of the kernel math (bf16 matmul operands, f32 stats,
    folded scale/shift, biases omitted since BN mean-subtraction cancels them)."""
    def dot_bf16(a, w):
        return jnp.dot(a.astype(jnp.bfloat16), w, preferred_element_type=jnp.float32)

    def bn(h, g, b):
        mu = jnp.mean(h, axis=0, keepdims=True)
        var = jnp.mean((h - mu) ** 2, axis=0, keepdims=True)
        scale = g * jax.lax.rsqrt(var + EPS)
        return h * scale + (b - mu * scale)

    h = jnp.maximum(bn(dot_bf16(x, p["w1_bf16"]), p["g1"], p["be1"]), 0.0)
    h = h.astype(jnp.bfloat16)
    h = jnp.maximum(bn(jnp.dot(h, p["w2_bf16"], preferred_element_type=jnp.float32),
                       p["g2"], p["be2"]), 0.0)
    h = h.astype(jnp.bfloat16)
    h = bn(jnp.dot(h, p["w3_bf16"], preferred_element_type=jnp.float32),
           p["g3"], p["be3"]) + x
    return jnp.maximum(h, 0.0)


if __name__ == "__main__":
    # Lane-dense sizes: batch and both feature dims are multiples of (8, 128).
    B, INPUT_DIM, HIDDEN_DIM = 256, 128, 256
    key = jax.random.PRNGKey(0)
    kx, kp = jax.random.split(key)
    x = jax.random.normal(kx, (B, INPUT_DIM), jnp.float32)
    params = init_params(kp, INPUT_DIM, HIDDEN_DIM)

    ref_exact = reference_f32(x, params)     # module semantics (f32, with biases)
    ref_match = reference_bf16(x, params)    # same math as the kernel

    out = jax.block_until_ready(resnet_block(x, params))

    assert out.shape == (B, INPUT_DIM)
    # Tight check against the kernel-math mirror (bf16 matmuls, folded BN, no bias).
    assert jnp.allclose(out, ref_match, atol=2e-3, rtol=2e-3), "mismatch vs bf16 reference"
    # Loose check against the exact f32 PyTorch-module semantics (bf16 matmul error only).
    assert jnp.allclose(out, ref_exact, atol=1e-1, rtol=1e-1), "mismatch vs f32 reference"
    print("KERNEL_OK")
</pallas_src>

<mosaic_0001>
module attributes {stable_mosaic.version = 11 : i64} {
  func.func @resnet_block_kernel(%arg0: memref<256x128xf32, #tpu.memory_space<vmem>>, %arg1: memref<128x256xbf16, #tpu.memory_space<vmem>>, %arg2: memref<256x256xbf16, #tpu.memory_space<vmem>>, %arg3: memref<256x128xbf16, #tpu.memory_space<vmem>>, %arg4: memref<8x256xf32, #tpu.memory_space<vmem>>, %arg5: memref<256x128xf32, #tpu.memory_space<vmem>>) attributes {dimension_semantics = [], scalar_prefetch = 0 : i64, scratch_operands = 0 : i64, tpu.core_type = #tpu.core_type<tc>} {
    %c0 = arith.constant 0 : index
    %c0_0 = arith.constant 0 : index
    %0 = vector.load %arg0[%c0, %c0_0] : memref<256x128xf32, #tpu.memory_space<vmem>>, vector<256x128xf32>
    %c0_1 = arith.constant 0 : index
    %c0_2 = arith.constant 0 : index
    %1 = vector.load %arg4[%c0_1, %c0_2] : memref<8x256xf32, #tpu.memory_space<vmem>>, vector<8x256xf32>
    %2 = vector.extract_strided_slice %1 {offsets = [0, 0], sizes = [1, 256], strides = [1, 1]} : vector<8x256xf32> to vector<1x256xf32>
    %3 = vector.extract_strided_slice %1 {offsets = [1, 0], sizes = [1, 256], strides = [1, 1]} : vector<8x256xf32> to vector<1x256xf32>
    %4 = vector.extract_strided_slice %1 {offsets = [2, 0], sizes = [1, 256], strides = [1, 1]} : vector<8x256xf32> to vector<1x256xf32>
    %5 = vector.extract_strided_slice %1 {offsets = [3, 0], sizes = [1, 256], strides = [1, 1]} : vector<8x256xf32> to vector<1x256xf32>
    %6 = vector.extract_strided_slice %1 {offsets = [4, 0], sizes = [1, 128], strides = [1, 1]} : vector<8x256xf32> to vector<1x128xf32>
    %7 = vector.extract_strided_slice %1 {offsets = [5, 0], sizes = [1, 128], strides = [1, 1]} : vector<8x256xf32> to vector<1x128xf32>
    %8 = arith.truncf %0 : vector<256x128xf32> to vector<256x128xbf16>
    %c0_3 = arith.constant 0 : index
    %c0_4 = arith.constant 0 : index
    %9 = vector.load %arg1[%c0_3, %c0_4] : memref<128x256xbf16, #tpu.memory_space<vmem>>, vector<128x256xbf16>
    %cst = arith.constant dense<0.000000e+00> : vector<256x256xf32>
    %10 = tpu.matmul %8, %9, %cst {dimension_numbers = #tpu.dot_dimension_numbers<[1], [0], [0], [1], [0, 0, 1, 1], [], []>} : vector<256x128xbf16>, vector<128x256xbf16>, vector<256x256xf32> -> vector<256x256xf32>
    %cst_5 = arith.constant dense<0.000000e+00> : vector<256xf32>
    %11 = vector.multi_reduction <add>, %10, %cst_5 [0] : vector<256x256xf32> to vector<256xf32>
    %12 = vector.shape_cast %11 : vector<256xf32> to vector<1x256xf32>
    %cst_6 = arith.constant 3.906250e-03 : f32
    %13 = vector.broadcast %cst_6 : f32 to vector<1x256xf32>
    %14 = arith.mulf %12, %13 : vector<1x256xf32>
    %15 = vector.broadcast %14 : vector<1x256xf32> to vector<256x256xf32>
    %16 = arith.subf %10, %15 : vector<256x256xf32>
    %17 = arith.mulf %16, %16 : vector<256x256xf32>
    %cst_7 = arith.constant dense<0.000000e+00> : vector<256xf32>
    %18 = vector.multi_reduction <add>, %17, %cst_7 [0] : vector<256x256xf32> to vector<256xf32>
    %19 = vector.shape_cast %18 : vector<256xf32> to vector<1x256xf32>
    %cst_8 = arith.constant 3.906250e-03 : f32
    %20 = vector.broadcast %cst_8 : f32 to vector<1x256xf32>
    %21 = arith.mulf %19, %20 : vector<1x256xf32>
    %cst_9 = arith.constant 9.99999974E-6 : f32
    %22 = vector.broadcast %cst_9 : f32 to vector<1x256xf32>
    %23 = arith.addf %21, %22 : vector<1x256xf32>
    %24 = math.rsqrt %23 : vector<1x256xf32>
    %25 = arith.mulf %2, %24 : vector<1x256xf32>
    %26 = arith.mulf %14, %25 : vector<1x256xf32>
    %27 = arith.subf %3, %26 : vector<1x256xf32>
    %28 = vector.broadcast %25 : vector<1x256xf32> to vector<256x256xf32>
    %29 = arith.mulf %10, %28 : vector<256x256xf32>
    %30 = vector.broadcast %27 : vector<1x256xf32> to vector<256x256xf32>
    %31 = arith.addf %29, %30 : vector<256x256xf32>
    %cst_10 = arith.constant 0.000000e+00 : f32
    %32 = vector.broadcast %cst_10 : f32 to vector<256x256xf32>
    %33 = arith.maximumf %31, %32 : vector<256x256xf32>
    %34 = arith.truncf %33 : vector<256x256xf32> to vector<256x256xbf16>
    %c0_11 = arith.constant 0 : index
    %c0_12 = arith.constant 0 : index
    %35 = vector.load %arg2[%c0_11, %c0_12] : memref<256x256xbf16, #tpu.memory_space<vmem>>, vector<256x256xbf16>
    %cst_13 = arith.constant dense<0.000000e+00> : vector<256x256xf32>
    %36 = tpu.matmul %34, %35, %cst_13 {dimension_numbers = #tpu.dot_dimension_numbers<[1], [0], [0], [1], [0, 0, 1, 1], [], []>} : vector<256x256xbf16>, vector<256x256xbf16>, vector<256x256xf32> -> vector<256x256xf32>
    %cst_14 = arith.constant dense<0.000000e+00> : vector<256xf32>
    %37 = vector.multi_reduction <add>, %36, %cst_14 [0] : vector<256x256xf32> to vector<256xf32>
    %38 = vector.shape_cast %37 : vector<256xf32> to vector<1x256xf32>
    %cst_15 = arith.constant 3.906250e-03 : f32
    %39 = vector.broadcast %cst_15 : f32 to vector<1x256xf32>
    %40 = arith.mulf %38, %39 : vector<1x256xf32>
    %41 = vector.broadcast %40 : vector<1x256xf32> to vector<256x256xf32>
    %42 = arith.subf %36, %41 : vector<256x256xf32>
    %43 = arith.mulf %42, %42 : vector<256x256xf32>
    %cst_16 = arith.constant dense<0.000000e+00> : vector<256xf32>
    %44 = vector.multi_reduction <add>, %43, %cst_16 [0] : vector<256x256xf32> to vector<256xf32>
    %45 = vector.shape_cast %44 : vector<256xf32> to vector<1x256xf32>
    %cst_17 = arith.constant 3.906250e-03 : f32
    %46 = vector.broadcast %cst_17 : f32 to vector<1x256xf32>
    %47 = arith.mulf %45, %46 : vector<1x256xf32>
    %cst_18 = arith.constant 9.99999974E-6 : f32
    %48 = vector.broadcast %cst_18 : f32 to vector<1x256xf32>
    %49 = arith.addf %47, %48 : vector<1x256xf32>
    %50 = math.rsqrt %49 : vector<1x256xf32>
    %51 = arith.mulf %4, %50 : vector<1x256xf32>
    %52 = arith.mulf %40, %51 : vector<1x256xf32>
    %53 = arith.subf %5, %52 : vector<1x256xf32>
    %54 = vector.broadcast %51 : vector<1x256xf32> to vector<256x256xf32>
    %55 = arith.mulf %36, %54 : vector<256x256xf32>
    %56 = vector.broadcast %53 : vector<1x256xf32> to vector<256x256xf32>
    %57 = arith.addf %55, %56 : vector<256x256xf32>
    %cst_19 = arith.constant 0.000000e+00 : f32
    %58 = vector.broadcast %cst_19 : f32 to vector<256x256xf32>
    %59 = arith.maximumf %57, %58 : vector<256x256xf32>
    %60 = arith.truncf %59 : vector<256x256xf32> to vector<256x256xbf16>
    %c0_20 = arith.constant 0 : index
    %c0_21 = arith.constant 0 : index
    %61 = vector.load %arg3[%c0_20, %c0_21] : memref<256x128xbf16, #tpu.memory_space<vmem>>, vector<256x128xbf16>
    %cst_22 = arith.constant dense<0.000000e+00> : vector<256x128xf32>
    %62 = tpu.matmul %60, %61, %cst_22 {dimension_numbers = #tpu.dot_dimension_numbers<[1], [0], [0], [1], [0, 0, 1, 1], [], []>} : vector<256x256xbf16>, vector<256x128xbf16>, vector<256x128xf32> -> vector<256x128xf32>
    %cst_23 = arith.constant dense<0.000000e+00> : vector<128xf32>
    %63 = vector.multi_reduction <add>, %62, %cst_23 [0] : vector<256x128xf32> to vector<128xf32>
    %64 = vector.shape_cast %63 : vector<128xf32> to vector<1x128xf32>
    %cst_24 = arith.constant 3.906250e-03 : f32
    %65 = vector.broadcast %cst_24 : f32 to vector<1x128xf32>
    %66 = arith.mulf %64, %65 : vector<1x128xf32>
    %67 = vector.broadcast %66 : vector<1x128xf32> to vector<256x128xf32>
    %68 = arith.subf %62, %67 : vector<256x128xf32>
    %69 = arith.mulf %68, %68 : vector<256x128xf32>
    %cst_25 = arith.constant dense<0.000000e+00> : vector<128xf32>
    %70 = vector.multi_reduction <add>, %69, %cst_25 [0] : vector<256x128xf32> to vector<128xf32>
    %71 = vector.shape_cast %70 : vector<128xf32> to vector<1x128xf32>
    %cst_26 = arith.constant 3.906250e-03 : f32
    %72 = vector.broadcast %cst_26 : f32 to vector<1x128xf32>
    %73 = arith.mulf %71, %72 : vector<1x128xf32>
    %cst_27 = arith.constant 9.99999974E-6 : f32
    %74 = vector.broadcast %cst_27 : f32 to vector<1x128xf32>
    %75 = arith.addf %73, %74 : vector<1x128xf32>
    %76 = math.rsqrt %75 : vector<1x128xf32>
    %77 = arith.mulf %6, %76 : vector<1x128xf32>
    %78 = arith.mulf %66, %77 : vector<1x128xf32>
    %79 = arith.subf %7, %78 : vector<1x128xf32>
    %80 = vector.broadcast %77 : vector<1x128xf32> to vector<256x128xf32>
    %81 = arith.mulf %62, %80 : vector<256x128xf32>
    %82 = vector.broadcast %79 : vector<1x128xf32> to vector<256x128xf32>
    %83 = arith.addf %81, %82 : vector<256x128xf32>
    %84 = arith.addf %83, %0 : vector<256x128xf32>
    %cst_28 = arith.constant 0.000000e+00 : f32
    %85 = vector.broadcast %cst_28 : f32 to vector<256x128xf32>
    %86 = arith.maximumf %84, %85 : vector<256x128xf32>
    %c0_29 = arith.constant 0 : index
    %c0_30 = arith.constant 0 : index
    %87 = vector.load %arg5[%c0_29, %c0_30] : memref<256x128xf32, #tpu.memory_space<vmem>>, vector<256x128xf32>
    tpu.vector_store %arg5[%c0_29, %c0_30], %86 {strides = array<i32>} : memref<256x128xf32, #tpu.memory_space<vmem>>, vector<256x128xf32>,
    return
  }
}

</mosaic_0001>

<bundles_post_ra>
// kernel: tpu_custom_call.1
= control target key start
LH: loop header
LB: loop body
LE: loop exit
PB: predicated region body
PF: predicated region fallthrough
CT: control target
= control target key end

     0   :  { %10 = vsyncpa [#allocation3], 0  ;;  %s4619_s0 = inlined_call_operand.hbm [shape: f32[256,128], index: 0, kind: input, shape index: {}, may-alias: {0,5}]   ;;  %s4620_s1 = inlined_call_operand.vmem [shape: bf16[128,256], index: 1, kind: input, shape index: {}]   ;;  %s4621_s2 = inlined_call_operand.vmem [shape: bf16[256,256], index: 2, kind: input, shape index: {}]   ;;  %s4622_s3 = inlined_call_operand.vmem [shape: bf16[256,128], index: 3, kind: input, shape index: {}]   ;;  %s4623_s4 = inlined_call_operand.hbm [shape: f32[8,256], index: 4, kind: input, shape index: {}]   ;;  %s4624_s5 = inlined_call_operand.hbm [shape: f32[256,128], index: 5, kind: output, shape index: {}, may-alias: {0,5}]  }
   0x1   :  { %11 = vsyncpa [#allocation6], 0 }
   0x2   :  { %12 = vsyncpa [#allocation4], 0  ;;  %s2864_s18 = smov [#allocation2]  }
   0x3   :  { %s18_s19 = sshll.u32 %s2864_s18, 4  ;;  %s19_s19 = int_to_ptr.vmem [resolvable:$true] %s18_s19 }
   0x4   :  { %s2806_s20 = scalar_lea.vmem %s19_s19, 4096  ;;  %p2811_p1 = scmp.lt.s32.totalorder %s19_s19, %s19_s19 }
   0x5   :  { %p2807_p0 = scmp.ne.s32.totalorder %s19_s19, %s2806_s20  ;;  %p2812_p2 = scmp.lt.s32.totalorder %s2806_s20, %s2806_s20 }
   0x7   :  { %p2813_p3 = por %p2812_p2, %p2811_p1 }
   0x9   :  { %p2814_p4 = pnand %p2813_p3, %p2807_p0 }
   0xb   :  { %2817 = shalt.err (!%p2814_p4)
}
   0xc   :  { %s2865_s21 = smov 128   ;;  %s2866_s22 = smov 8  }
   0xd   :  { %24 = dma.hbm_to_vmem [thread:$0]  %s4619_s0, 4096, %s19_s19, [#allocation3], %s2865_s21, %s2865_s21, %s2866_s22  }
   0xe   :  { %s2867_s25 = smov [#allocation5]  }
   0xf   :  { %s37_s26 = sshll.u32 %s2867_s25, 4  ;;  %s38_s26 = int_to_ptr.vmem [resolvable:$true] %s37_s26 }
  0x10   :  { %s2826_s27 = scalar_lea.vmem %s38_s26, 256  ;;  %p2831_p6 = scmp.lt.s32.totalorder %s38_s26, %s38_s26 }
  0x11   :  { %p2827_p5 = scmp.ne.s32.totalorder %s38_s26, %s2826_s27  ;;  %p2832_p7 = scmp.lt.s32.totalorder %s2826_s27, %s2826_s27 }
  0x13   :  { %p2833_p8 = por %p2832_p7, %p2831_p6 }
  0x15   :  { %p2834_p9 = pnand %p2833_p8, %p2827_p5 }
  0x17   :  { %2837 = shalt.err (!%p2834_p9)
}
  0x18   :  { %40 = dma.hbm_to_vmem [thread:$0]  %s4623_s4, 256, %s38_s26, [#allocation6]  }
  0x19   :  { %2858 = dma.done.wait [#allocation3], 4096  }
  0x1a   :  { %2859 = vsyncadd [#allocation3], 4294963200 }
  0x1b   :  { %2860 = dma.done.wait [#allocation6], 256  }
  0x1c   :  { %2861 = vsyncadd [#allocation6], 4294967040  ;;  %v2868_v0 = vmov 0   ;;  %v2665_v1 = vld [vmem:[%s4620_s1 + $0x74] ss:$8 sps:$4 sm:$0xff]   ;;  %v48_v17 = vld [vmem:[#allocation2] sm:$0xff] }
  0x1d   :  { %226 = vmatprep.mubr.bf16.mxu0 %v2868_v0  ;;  %306 = vmatprep.mubr.bf16.mxu1 %v2868_v0  ;;  %v2667_v2 = vld [vmem:[%s4620_s1 + $0x70] ss:$8 sps:$4 sm:$0xff]   ;;  %v2668_v3 = vld [vmem:[%s4620_s1 + $0x64] ss:$8 sps:$4 sm:$0xff]   ;;  %v2670_v4 = vld [vmem:[%s4620_s1 + $0x60] ss:$8 sps:$4 sm:$0xff]  }
  0x1e   :  { %194 = vmatprep.subr.bf16.mxu0 %v2665_v1  ;;  %2643 = vmatprep.subr.bf16.mxu1 %v2665_v1  ;;  %v2671_v5 = vld [vmem:[%s4620_s1 + $0x54] ss:$8 sps:$4 sm:$0xff]   ;;  %v2673_v6 = vld [vmem:[%s4620_s1 + $0x50] ss:$8 sps:$4 sm:$0xff]   ;;  %v2674_v7 = vld [vmem:[%s4620_s1 + $0x44] ss:$8 sps:$4 sm:$0xff]  }
  0x1f   :  { %195 = vmatpush1.bf16.msra.mxu0 %v2667_v2  ;;  %2651 = vmatpush1.bf16.msra.mxu1 %v2667_v2  ;;  %v2676_v8 = vld [vmem:[%s4620_s1 + $0x40] ss:$8 sps:$4 sm:$0xff]   ;;  %v2677_v9 = vld [vmem:[%s4620_s1 + $0x34] ss:$8 sps:$4 sm:$0xff]   ;;  %v2679_v10 = vld [vmem:[%s4620_s1 + $0x30] ss:$8 sps:$4 sm:$0xff]  }
  0x20   :  { %196 = vmatprep.subr.bf16.mxu0 %v2668_v3  ;;  %2644 = vmatprep.subr.bf16.mxu1 %v2668_v3  ;;  %v2680_v11 = vld [vmem:[%s4620_s1 + $0x24] ss:$8 sps:$4 sm:$0xff]   ;;  %v2682_v12 = vld [vmem:[%s4620_s1 + $0x20] ss:$8 sps:$4 sm:$0xff]   ;;  %v2683_v13 = vld [vmem:[%s4620_s1 + $0x14] ss:$8 sps:$4 sm:$0xff]  }
  0x21   :  { %v2685_v14 = vld [vmem:[%s4620_s1 + $0x10] ss:$8 sps:$4 sm:$0xff]   ;;  %v2686_v15 = vld [vmem:[%s4620_s1 + $0x4] ss:$8 sps:$4 sm:$0xff]   ;;  %v2688_v16 = vld [vmem:[%s4620_s1] ss:$8 sps:$4 sm:$0xff]  }
  0x22   :  { %v49_v18 = vld [vmem:[#allocation2 + $0x8] sm:$0xff]  ;;  %v64_v19 = vld [vmem:[#allocation2 + $0x80] sm:$0xff]  ;;  %v50_v23 = vld [vmem:[#allocation2 + $0x10] sm:$0xff] }
  0x23   :  { %197 = vmatpush1.bf16.msra.mxu0 %v2670_v4  ;;  %2652 = vmatpush1.bf16.msra.mxu1 %v2670_v4  ;;  %v65_v20 = vld [vmem:[#allocation2 + $0x88] sm:$0xff]  ;;  %v82_v21 = vpack.c.bf16 %v49_v18, %v48_v17  ;;  %v51_v24 = vld [vmem:[#allocation2 + $0x18] sm:$0xff]  ;;  %v66_v25 = vld [vmem:[#allocation2 + $0x90] sm:$0xff] }
  0x24   :  { %198 = vmatprep.subr.bf16.mxu0 %v2671_v5  ;;  %2645 = vmatprep.subr.bf16.mxu1 %v2671_v5  ;;  %v90_v22 = vpack.c.bf16 %v65_v20, %v64_v19  ;;  %v67_v26 = vld [vmem:[#allocation2 + $0x98] sm:$0xff]  ;;  %v83_v27 = vpack.c.bf16 %v51_v24, %v50_v23  ;;  %v52_v29 = vld [vmem:[#allocation2 + $0x20] sm:$0xff]  ;;  %v53_v30 = vld [vmem:[#allocation2 + $0x28] sm:$0xff] }
  0x25   :  { %v91_v28 = vpack.c.bf16 %v67_v26, %v66_v25  ;;  %v68_v31 = vld [vmem:[#allocation2 + $0xa0] sm:$0xff]  ;;  %v69_v32 = vld [vmem:[#allocation2 + $0xa8] sm:$0xff]  ;;  %v84_v33 = vpack.c.bf16 %v53_v30, %v52_v29  ;;  %v54_v35 = vld [vmem:[#allocation2 + $0x30] sm:$0xff] }
  0x26   :  { %v92_v34 = vpack.c.bf16 %v69_v32, %v68_v31  ;;  %v55_v36 = vld [vmem:[#allocation2 + $0x38] sm:$0xff]  ;;  %v70_v37 = vld [vmem:[#allocation2 + $0xb0] sm:$0xff]  ;;  %v56_v41 = vld [vmem:[#allocation2 + $0x40] sm:$0xff] }
  0x27   :  { %199 = vmatpush1.bf16.msra.mxu0 %v2673_v6  ;;  %2653 = vmatpush1.bf16.msra.mxu1 %v2673_v6  ;;  %v71_v38 = vld [vmem:[#allocation2 + $0xb8] sm:$0xff]  ;;  %v85_v39 = vpack.c.bf16 %v55_v36, %v54_v35  ;;  %v57_v42 = vld [vmem:[#allocation2 + $0x48] sm:$0xff]  ;;  %v72_v43 = vld [vmem:[#allocation2 + $0xc0] sm:$0xff] }
  0x28   :  { %200 = vmatprep.subr.bf16.mxu0 %v2674_v7  ;;  %2646 = vmatprep.subr.bf16.mxu1 %v2674_v7  ;;  %v93_v40 = vpack.c.bf16 %v71_v38, %v70_v37  ;;  %v73_v44 = vld [vmem:[#allocation2 + $0xc8] sm:$0xff]  ;;  %v86_v45 = vpack.c.bf16 %v57_v42, %v56_v41  ;;  %v58_v47 = vld [vmem:[#allocation2 + $0x50] sm:$0xff]  ;;  %v59_v48 = vld [vmem:[#allocation2 + $0x58] sm:$0xff] }
  0x29   :  { %v94_v46 = vpack.c.bf16 %v73_v44, %v72_v43  ;;  %v74_v49 = vld [vmem:[#allocation2 + $0xd0] sm:$0xff]  ;;  %v75_v50 = vld [vmem:[#allocation2 + $0xd8] sm:$0xff]  ;;  %v87_v51 = vpack.c.bf16 %v59_v48, %v58_v47  ;;  %v60_v53 = vld [vmem:[#allocation2 + $0x60] sm:$0xff] }
  0x2a   :  { %v95_v52 = vpack.c.bf16 %v75_v50, %v74_v49  ;;  %v61_v54 = vld [vmem:[#allocation2 + $0x68] sm:$0xff]  ;;  %v76_v55 = vld [vmem:[#allocation2 + $0xe0] sm:$0xff]  ;;  %v62_v59 = vld [vmem:[#allocation2 + $0x70] sm:$0xff] }
  0x2b   :  { %201 = vmatpush1.bf16.msra.mxu0 %v2676_v8  ;;  %2654 = vmatpush1.bf16.msra.mxu1 %v2676_v8  ;;  %v77_v56 = vld [vmem:[#allocation2 + $0xe8] sm:$0xff]  ;;  %v88_v57 = vpack.c.bf16 %v61_v54, %v60_v53  ;;  %v63_v60 = vld [vmem:[#allocation2 + $0x78] sm:$0xff]  ;;  %v78_v61 = vld [vmem:[#allocation2 + $0xf0] sm:$0xff] }
  0x2c   :  { %202 = vmatprep.subr.bf16.mxu0 %v2677_v9  ;;  %2647 = vmatprep.subr.bf16.mxu1 %v2677_v9  ;;  %v96_v58 = vpack.c.bf16 %v77_v56, %v76_v55  ;;  %v79_v62 = vld [vmem:[#allocation2 + $0xf8] sm:$0xff]  ;;  %v89_v63 = vpack.c.bf16 %v63_v60, %v62_v59 }
  0x2d   :  { %v97_v1 = vpack.c.bf16 %v79_v62, %v78_v61 }
  0x2f   :  { %203 = vmatpush1.bf16.msra.mxu0 %v2679_v10  ;;  %2655 = vmatpush1.bf16.msra.mxu1 %v2679_v10 }
  0x30   :  { %204 = vmatprep.subr.bf16.mxu0 %v2680_v11  ;;  %2648 = vmatprep.subr.bf16.mxu1 %v2680_v11 }
  0x33   :  { %205 = vmatpush1.bf16.msra.mxu0 %v2682_v12  ;;  %2656 = vmatpush1.bf16.msra.mxu1 %v2682_v12 }
  0x34   :  { %206 = vmatprep.subr.bf16.mxu0 %v2683_v13  ;;  %2649 = vmatprep.subr.bf16.mxu1 %v2683_v13 }
  0x37   :  { %207 = vmatpush1.bf16.msra.mxu0 %v2685_v14  ;;  %2657 = vmatpush1.bf16.msra.mxu1 %v2685_v14 }
  0x38   :  { %208 = vmatprep.subr.bf16.mxu0 %v2686_v15  ;;  %2650 = vmatprep.subr.bf16.mxu1 %v2686_v15 }
  0x3b   :  { %209 = vmatpush1.bf16.msra.mxu0 %v2688_v16  ;;  %2658 = vmatpush1.bf16.msra.mxu1 %v2688_v16 }
  0x3e   :  { %227 = vmatmul.mubr.bf16.vlgmr.msra.gmra.mxu0 %v82_v21  ;;  %307 = vmatmul.mubr.bf16.vlgmr.msra.gmra.mxu1 %v90_v22 }
  0x3f   :  { %236 = vmatprep.mubr.bf16.mxu0 %v2868_v0  ;;  %316 = vmatprep.mubr.bf16.mxu1 %v2868_v0 }
  0x46   :  { %237 = vmatmul.mubr.bf16.gmra.mxu0 %v83_v27  ;;  %317 = vmatmul.mubr.bf16.gmra.mxu1 %v91_v28 }
  0x47   :  { %246 = vmatprep.mubr.bf16.mxu0 %v2868_v0  ;;  %326 = vmatprep.mubr.bf16.mxu1 %v2868_v0 }
  0x4e   :  { %247 = vmatmul.mubr.bf16.gmra.mxu0 %v84_v33  ;;  %327 = vmatmul.mubr.bf16.gmra.mxu1 %v92_v34 }
  0x4f   :  { %256 = vmatprep.mubr.bf16.mxu0 %v2868_v0  ;;  %336 = vmatprep.mubr.bf16.mxu1 %v2868_v0 }
  0x56   :  { %257 = vmatmul.mubr.bf16.gmra.mxu0 %v85_v39  ;;  %337 = vmatmul.mubr.bf16.gmra.mxu1 %v93_v40 }
  0x57   :  { %266 = vmatprep.mubr.bf16.mxu0 %v2868_v0  ;;  %346 = vmatprep.mubr.bf16.mxu1 %v2868_v0 }
  0x5e   :  { %267 = vmatmul.mubr.bf16.gmra.mxu0 %v86_v45  ;;  %347 = vmatmul.mubr.bf16.gmra.mxu1 %v94_v46 }
  0x5f   :  { %276 = vmatprep.mubr.bf16.mxu0 %v2868_v0  ;;  %356 = vmatprep.mubr.bf16.mxu1 %v2868_v0 }
  0x66   :  { %277 = vmatmul.mubr.bf16.gmra.mxu0 %v87_v51  ;;  %357 = vmatmul.mubr.bf16.gmra.mxu1 %v95_v52 }
  0x67   :  { %286 = vmatprep.mubr.bf16.mxu0 %v2868_v0  ;;  %366 = vmatprep.mubr.bf16.mxu1 %v2868_v0 }
  0x6e   :  { %287 = vmatmul.mubr.bf16.gmra.mxu0 %v88_v57  ;;  %367 = vmatmul.mubr.bf16.gmra.mxu1 %v96_v58 }
  0x6f   :  { %296 = vmatprep.mubr.bf16.mxu0 %v2868_v0  ;;  %376 = vmatprep.mubr.bf16.mxu1 %v2868_v0 }
  0x76   :  { %297 = vmatmul.mubr.bf16.gmra.mxu0 %v89_v63  ;;  %377 = vmatmul.mubr.bf16.gmra.mxu1 %v97_v1 }
  0xfe   :  { %v2973_v2 = vpop.f32.mrf.mxu0  ;;  %v2975_v3 = vpop.f32.mrf.mxu1 }
  0xff   :  { %4725 = vst [vmem:[#allocation11_spill] sm:$0xff] %v2973_v2 }
 0x100   :  { %v2977_v4 = vpop.f32.mrf.mxu0  ;;  %v2979_v5 = vpop.f32.mrf.mxu1 }
 0x101   :  { %4726 = vst [vmem:[#allocation12_spill] sm:$0xff] %v2979_v5 }
 0x102   :  { %v2981_v6 = vpop.f32.mrf.mxu0  ;;  %v2983_v7 = vpop.f32.mrf.mxu1 }
 0x103   :  { %4727 = vst [vmem:[#allocation13_spill] sm:$0xff] %v2981_v6  ;;  %v387_v34 = vadd.f32 %v2981_v6, %v2973_v2 }
 0x104   :  { %v2985_v8 = vpop.f32.mrf.mxu0  ;;  %v2987_v0 = vpop.f32.mrf.mxu1 }
 0x105   :  { %4728 = vst [vmem:[#allocation14_spill] sm:$0xff] %v2987_v0  ;;  %v424_v36 = vadd.f32 %v2985_v8, %v2977_v4 }
 0x106   :  { %v2989_v9 = vpop.f32.mrf.mxu0  ;;  %v2991_v10 = vpop.f32.mrf.mxu1 }
 0x107   :  { %4729 = vst [vmem:[#allocation15_spill] sm:$0xff] %v2989_v9  ;;  %v388_v37 = vadd.f32 %v387_v34, %v2989_v9 }
 0x108   :  { %v2993_v11 = vpop.f32.mrf.mxu0  ;;  %v2995_v12 = vpop.f32.mrf.mxu1 }
 0x109   :  { %v425_v40 = vadd.f32 %v424_v36, %v2993_v11 }
 0x10a   :  { %v2997_v13 = vpop.f32.mrf.mxu0  ;;  %v2999_v14 = vpop.f32.mrf.mxu1 }
 0x10b   :  { %4730 = vst [vmem:[#allocation16_spill] sm:$0xff] %v2997_v13  ;;  %v389_v41 = vadd.f32 %v388_v37, %v2997_v13 }
 0x10c   :  { %v3001_v15 = vpop.f32.mrf.mxu0  ;;  %v3003_v16 = vpop.f32.mrf.mxu1 }
 0x10d   :  { %4731 = vst [vmem:[#allocation17_spill] sm:$0xff] %v3003_v16  ;;  %v426_v43 = vadd.f32 %v425_v40, %v3001_v15 }
 0x10e   :  { %v3005_v17 = vpop.f32.mrf.mxu0  ;;  %v3007_v18 = vpop.f32.mrf.mxu1 }
 0x10f   :  { %v390_v44 = vadd.f32 %v389_v41, %v3005_v17 }
 0x110   :  { %v3009_v19 = vpop.f32.mrf.mxu0  ;;  %v3011_v20 = vpop.f32.mrf.mxu1 }
 0x111   :  { %v427_v47 = vadd.f32 %v426_v43, %v3009_v19 }
 0x112   :  { %v3013_v21 = vpop.f32.mrf.mxu0  ;;  %v3015_v22 = vpop.f32.mrf.mxu1 }
 0x113   :  { %4732 = vst [vmem:[#allocation18_spill] sm:$0xff] %v3013_v21  ;;  %v391_v48 = vadd.f32 %v390_v44, %v3013_v21 }
 0x114   :  { %v3017_v23 = vpop.f32.mrf.mxu0  ;;  %v3019_v24 = vpop.f32.mrf.mxu1 }
 0x115   :  { %v428_v50 = vadd.f32 %v427_v47, %v3017_v23 }
 0x116   :  { %v3021_v25 = vpop.f32.mrf.mxu0  ;;  %v3023_v26 = vpop.f32.mrf.mxu1 }
 0x117   :  { %4733 = vst [vmem:[#allocation19_spill] sm:$0xff] %v3021_v25  ;;  %v392_v51 = vadd.f32 %v391_v48, %v3021_v25 }
 0x118   :  { %v3025_v27 = vpop.f32.mrf.mxu0  ;;  %v3027_v28 = vpop.f32.mrf.mxu1 }
 0x119   :  { %v429_v54 = vadd.f32 %v428_v50, %v3025_v27 }
 0x11a   :  { %v3029_v29 = vpop.f32.mrf.mxu0  ;;  %v3031_v30 = vpop.f32.mrf.mxu1 }
 0x11b   :  { %4734 = vst [vmem:[#allocation20_spill] sm:$0xff] %v3029_v29  ;;  %v393_v55 = vadd.f32 %v392_v51, %v3029_v29 }
 0x11c   :  { %v3033_v31 = vpop.f32.mrf.mxu0  ;;  %v3037_v33 = vpop.f32.mrf.mxu1 }
 0x11d   :  { %4736 = vst [vmem:[#allocation22_spill] sm:$0xff] %v3037_v33  ;;  %v430_v57 = vadd.f32 %v429_v54, %v3033_v31 }
 0x11e   :  { %v3035_v32 = vpop.f32.mrf.mxu0  ;;  %v3048_v39 = vpop.f32.mrf.mxu1 }
 0x11f   :  { %4735 = vst [vmem:[#allocation21_spill] sm:$0xff] %v3035_v32  ;;  %v394_v58 = vadd.f32 %v393_v55, %v3035_v32 }
 0x120   :  { %v3041_v35 = vpop.f32.mrf.mxu0  ;;  %v3058_v46 = vpop.f32.mrf.mxu1 }
 0x121   :  { %4737 = vst [vmem:[#allocation23_spill] sm:$0xff] %v3041_v35  ;;  %4741 = vst [vmem:[#allocation27_spill] sm:$0xff] %v3058_v46  ;;  %v431_v61 = vadd.f32 %v430_v57, %v3041_v35 }
 0x122   :  { %v3046_v38 = vpop.f32.mrf.mxu0  ;;  %v3068_v53 = vpop.f32.mrf.mxu1 }
 0x123   :  { %4738 = vst [vmem:[#allocation24_spill] sm:$0xff] %v3046_v38  ;;  %v395_v62 = vadd.f32 %v394_v58, %v3046_v38 }
 0x124   :  { %v3052_v42 = vpop.f32.mrf.mxu0  ;;  %v3078_v60 = vpop.f32.mrf.mxu1 }
 0x125   :  { %4739 = vst [vmem:[#allocation25_spill] sm:$0xff] %v3052_v42  ;;  %4746 = vst [vmem:[#allocation32_spill] sm:$0xff] %v3078_v60  ;;  %v432_v1 = vadd.f32 %v431_v61, %v3052_v42 }
 0x126   :  { %v3056_v45 = vpop.f32.mrf.mxu0  ;;  %v3088_v37 = vpop.f32.mrf.mxu1 }
 0x127   :  { %4740 = vst [vmem:[#allocation26_spill] sm:$0xff] %v3056_v45  ;;  %v396_v34 = vadd.f32 %v395_v62, %v3056_v45 }
 0x128   :  { %v3062_v49 = vpop.f32.mrf.mxu0  ;;  %v3098_v50 = vpop.f32.mrf.mxu1 }
 0x129   :  { %4742 = vst [vmem:[#allocation28_spill] sm:$0xff] %v3062_v49  ;;  %v433_v40 = vadd.f32 %v432_v1, %v3062_v49  ;;  %4751 = vst [vmem:[#allocation37_spill] sm:$0xff] %v3098_v50 }
 0x12a   :  { %v3066_v52 = vpop.f32.mrf.mxu0  ;;  %v3108_v62 = vpop.f32.mrf.mxu1 }
 0x12b   :  { %4743 = vst [vmem:[#allocation29_spill] sm:$0xff] %v3066_v52  ;;  %v397_v41 = vadd.f32 %v396_v34, %v3066_v52 }
 0x12c   :  { %v3072_v56 = vpop.f32.mrf.mxu0 }
 0x12d   :  { %4744 = vst [vmem:[#allocation30_spill] sm:$0xff] %v3072_v56  ;;  %v434_v44 = vadd.f32 %v433_v40, %v3072_v56 }
 0x12e   :  { %v3076_v59 = vpop.f32.mrf.mxu0 }
 0x12f   :  { %4745 = vst [vmem:[#allocation31_spill] sm:$0xff] %v3076_v59  ;;  %v398_v47 = vadd.f32 %v397_v41, %v3076_v59 }
 0x130   :  { %v3082_v63 = vpop.f32.mrf.mxu0 }
 0x131   :  { %4747 = vst [vmem:[#allocation33_spill] sm:$0xff] %v3082_v63  ;;  %v435_v51 = vadd.f32 %v434_v44, %v3082_v63 }
 0x132   :  { %v3086_v36 = vpop.f32.mrf.mxu0 }
 0x133   :  { %4748 = vst [vmem:[#allocation34_spill] sm:$0xff] %v3086_v36  ;;  %v399_v54 = vadd.f32 %v398_v47, %v3086_v36  ;;  %v3116_v47 = vpop.f32.mrf.mxu1 }
 0x134   :  { %v3092_v43 = vpop.f32.mrf.mxu0  ;;  %4755 = vst [vmem:[#allocation41_spill] sm:$0xff] %v3116_v47 }
 0x135   :  { %4749 = vst [vmem:[#allocation35_spill] sm:$0xff] %v3092_v43  ;;  %v436_v57 = vadd.f32 %v435_v51, %v3092_v43  ;;  %v3122_v56 = vpop.f32.mrf.mxu1 }
 0x136   :  { %v3096_v48 = vpop.f32.mrf.mxu0 }
 0x137   :  { %4750 = vst [vmem:[#allocation36_spill] sm:$0xff] %v3096_v48  ;;  %v400_v58 = vadd.f32 %v399_v54, %v3096_v48 }
 0x138   :  { %v3102_v55 = vpop.f32.mrf.mxu0 }
 0x139   :  { %4752 = vst [vmem:[#allocation38_spill] sm:$0xff] %v3102_v55  ;;  %v437_v1 = vadd.f32 %v436_v57, %v3102_v55 }
 0x13a   :  { %v3106_v61 = vpop.f32.mrf.mxu0 }
 0x13b   :  { %4753 = vst [vmem:[#allocation39_spill] sm:$0xff] %v3106_v61  ;;  %v401_v34 = vadd.f32 %v400_v58, %v3106_v61 }
 0x13c   :  { %v3112_v40 = vpop.f32.mrf.mxu0 }
 0x13d   :  { %4754 = vst [vmem:[#allocation40_spill] sm:$0xff] %v3112_v40  ;;  %v402_v41 = vadd.f32 %v401_v34, %v2975_v3  ;;  %v438_v44 = vadd.f32 %v437_v1, %v3112_v40  ;;  %v3128_v40 = vpop.f32.mrf.mxu1 }
 0x13f   :  { %v403_v51 = vadd.f32 %v402_v41, %v2983_v7  ;;  %v439_v54 = vadd.f32 %v438_v44, %v2979_v5 }
 0x141   :  { %v404_v43 = vadd.f32 %v403_v51, %v2991_v10  ;;  %v440_v63 = vadd.f32 %v439_v54, %v2987_v0  ;;  %v3134_v0 = vpop.f32.mrf.mxu1 }
 0x143   :  { %v405_v57 = vadd.f32 %v404_v43, %v2999_v14  ;;  %v441_v58 = vadd.f32 %v440_v63, %v2995_v12 }
 0x145   :  { %v442_v34 = vadd.f32 %v441_v58, %v3003_v16  ;;  %v406_v1 = vadd.f32 %v405_v57, %v3007_v18  ;;  %v3143_v16 = vpop.f32.mrf.mxu1 }
 0x147   :  { %v407_v41 = vadd.f32 %v406_v1, %v3015_v22  ;;  %v443_v44 = vadd.f32 %v442_v34, %v3011_v20  ;;  %v2691_v1 = vld [vmem:[%s4621_s2 + $0x74] ss:$8 sps:$4 sm:$0xff]   ;;  %v2689_v34 = vld [vmem:[%s4621_s2 + $0x70] ss:$8 sps:$4 sm:$0xff]  }
 0x148   :  { %1115 = vmatprep.subr.bf16.mxu1 %v2691_v1 }
 0x149   :  { %v408_v51 = vadd.f32 %v407_v41, %v3023_v26  ;;  %v444_v54 = vadd.f32 %v443_v44, %v3019_v24  ;;  %1116 = vmatpush1.bf16.msra.mxu1 %v2689_v34  ;;  %v2697_v34 = vld [vmem:[%s4621_s2 + $0x54] ss:$8 sps:$4 sm:$0xff]  }
 0x14b   :  { %v409_v43 = vadd.f32 %v408_v51, %v3031_v30  ;;  %v445_v63 = vadd.f32 %v444_v54, %v3027_v28 }
 0x14d   :  { %v410_v58 = vadd.f32 %v409_v43, %v3048_v39  ;;  %v446_v57 = vadd.f32 %v445_v63, %v3037_v33  ;;  %v2694_v43 = vld [vmem:[%s4621_s2 + $0x64] ss:$8 sps:$4 sm:$0xff]   ;;  %v3155_v63 = vpop.f32.mrf.mxu1  ;;  %v2692_v33 = vld [vmem:[%s4621_s2 + $0x60] ss:$8 sps:$4 sm:$0xff]  }
 0x14e   :  { %1117 = vmatprep.subr.bf16.mxu1 %v2694_v43 }
 0x14f   :  { %v411_v41 = vadd.f32 %v410_v58, %v3068_v53  ;;  %v447_v44 = vadd.f32 %v446_v57, %v3058_v46  ;;  %1118 = vmatpush1.bf16.msra.mxu1 %v2692_v33 }
 0x150   :  { %1119 = vmatprep.subr.bf16.mxu1 %v2697_v34  ;;  %v2703_v34 = vld [vmem:[%s4621_s2 + $0x34] ss:$8 sps:$4 sm:$0xff]  }
 0x151   :  { %v448_v51 = vadd.f32 %v447_v44, %v3078_v60  ;;  %v412_v54 = vadd.f32 %v411_v41, %v3088_v37  ;;  %v3166_v41 = vpop.f32.mrf.mxu1  ;;  %v2695_v44 = vld [vmem:[%s4621_s2 + $0x50] ss:$8 sps:$4 sm:$0xff]  }
 0x152   :  { %4756 = vst [vmem:[#allocation42_spill] sm:$0xff] %v3166_v41 }
 0x153   :  { %v449_v58 = vadd.f32 %v448_v51, %v3098_v50  ;;  %v413_v57 = vadd.f32 %v412_v54, %v3108_v62  ;;  %1120 = vmatpush1.bf16.msra.mxu1 %v2695_v44  ;;  %v2700_v54 = vld [vmem:[%s4621_s2 + $0x44] ss:$8 sps:$4 sm:$0xff]   ;;  %v3177_v43 = vpop.f32.mrf.mxu1  ;;  %v2701_v44 = vld [vmem:[%s4621_s2 + $0x30] ss:$8 sps:$4 sm:$0xff]  }
 0x154   :  { %1121 = vmatprep.subr.bf16.mxu1 %v2700_v54 }
 0x155   :  { %v414_v1 = vadd.f32 %v413_v57, %v3122_v56  ;;  %v450_v60 = vadd.f32 %v449_v58, %v3116_v47  ;;  %v2698_v57 = vld [vmem:[%s4621_s2 + $0x40] ss:$8 sps:$4 sm:$0xff]  }
 0x157   :  { %v415_v51 = vadd.f32 %v414_v1, %v3134_v0  ;;  %v451_v50 = vadd.f32 %v450_v60, %v3128_v40  ;;  %1122 = vmatpush1.bf16.msra.mxu1 %v2698_v57  ;;  %v2706_v60 = vld [vmem:[%s4621_s2 + $0x24] ss:$8 sps:$4 sm:$0xff]  }
 0x158   :  { %1123 = vmatprep.subr.bf16.mxu1 %v2703_v34 }
 0x159   :  { %v416_v33 = vadd.f32 %v415_v51, %v3155_v63  ;;  %v452_v51 = vadd.f32 %v451_v50, %v3143_v16  ;;  %v2709_v50 = vld [vmem:[%s4621_s2 + $0x14] ss:$8 sps:$4 sm:$0xff]  }
 0x15b   :  { %v417_v58 = vadd.f32 %v416_v33, %v3177_v43  ;;  %1124 = vmatpush1.bf16.msra.mxu1 %v2701_v44  ;;  %v2704_v33 = vld [vmem:[%s4621_s2 + $0x20] ss:$8 sps:$4 sm:$0xff]   ;;  %v453_v54 = vadd.f32 %v452_v51, %v3166_v41 }
 0x15c   :  { %1125 = vmatprep.subr.bf16.mxu1 %v2706_v60 }
 0x15d   :  { %v418_v1 = vrot.slane %v417_v58, 4 }
 0x15f   :  { %v419_v47 = vadd.f32 %v418_v1, %v417_v58  ;;  %1126 = vmatpush1.bf16.msra.mxu1 %v2704_v33  ;;  %v3201_v58 = vpop.f32.mrf.mxu1  ;;  %v2707_v1 = vld [vmem:[%s4621_s2 + $0x10] ss:$8 sps:$4 sm:$0xff]   ;;  %v2715_v33 = vld [vmem:[%s4621_s2 + $0xf4] ss:$8 sps:$4 sm:$0xff]  }
 0x160   :  { %4757 = vst [vmem:[#allocation43_spill] sm:$0xff] %v3201_v58  ;;  %v454_v44 = vadd.f32 %v453_v54, %v3201_v58  ;;  %1127 = vmatprep.subr.bf16.mxu1 %v2709_v50  ;;  %v2713_v54 = vld [vmem:[%s4621_s2 + $0xf0] ss:$8 sps:$4 sm:$0xff]  }
 0x161   :  { %v420_v46 = vrot.slane %v419_v47, 2 }
 0x162   :  { %v455_v60 = vrot.slane %v454_v44, 4 }
 0x163   :  { %v421_v57 = vadd.f32 %v420_v46, %v419_v47  ;;  %1128 = vmatpush1.bf16.msra.mxu1 %v2707_v1  ;;  %v2712_v46 = vld [vmem:[%s4621_s2 + $0x4] ss:$8 sps:$4 sm:$0xff]   ;;  %v2710_v47 = vld [vmem:[%s4621_s2] ss:$8 sps:$4 sm:$0xff]  }
 0x164   :  { %1129 = vmatprep.subr.bf16.mxu1 %v2712_v46  ;;  %v456_v1 = vadd.f32 %v455_v60, %v454_v44  ;;  %v2721_v44 = vld [vmem:[%s4621_s2 + $0xd4] ss:$8 sps:$4 sm:$0xff]  }
 0x165   :  { %v422_v34 = vrot.slane %v421_v57, 1 }
 0x166   :  { %v457_v58 = vrot.slane %v456_v1, 2 }
 0x167   :  { %v423_v51 = vadd.f32 %v422_v34, %v421_v57  ;;  %1130 = vmatpush1.bf16.msra.mxu1 %v2710_v47  ;;  %v2718_v57 = vld [vmem:[%s4621_s2 + $0xe4] ss:$8 sps:$4 sm:$0xff]   ;;  %v2716_v34 = vld [vmem:[%s4621_s2 + $0xe0] ss:$8 sps:$4 sm:$0xff]  }
 0x168   :  { %1131 = vmatprep.subr.bf16.mxu1 %v2715_v33 }
 0x169   :  { %v3219_v50 = vmul.f32 0.00390625, %v423_v51  ;;  %v2719_v51 = vld [vmem:[%s4621_s2 + $0xd0] ss:$8 sps:$4 sm:$0xff]  }
 0x16b   :  { %1132 = vmatpush2.bf16.msra.mxu1 %v2713_v54  ;;  %v463_v46 = vsub.f32 %v2973_v2, %v3219_v50  ;;  %v465_v47 = vsub.f32 %v2981_v6, %v3219_v50  ;;  %v467_v60 = vsub.f32 %v2989_v9, %v3219_v50  ;;  %v458_v2 = vadd.f32 %v457_v58, %v456_v1  ;;  %v2722_v6 = vld [vmem:[%s4621_s2 + $0xc0] ss:$8 sps:$4 sm:$0xff]  }
 0x16c   :  { %1133 = vmatprep.subr.bf16.mxu1 %v2718_v57  ;;  %v469_v57 = vsub.f32 %v2997_v13, %v3219_v50  ;;  %v471_v41 = vsub.f32 %v3005_v17, %v3219_v50  ;;  %v473_v58 = vsub.f32 %v3013_v21, %v3219_v50  ;;  %v2725_v13 = vld [vmem:[%s4621_s2 + $0xb0] ss:$8 sps:$4 sm:$0xff]   ;;  %v2728_v21 = vld [vmem:[%s4621_s2 + $0xa0] ss:$8 sps:$4 sm:$0xff]  }
 0x16d   :  { %v527_v33 = vmul.f32 %v463_v46, %v463_v46  ;;  %v529_v54 = vmul.f32 %v465_v47, %v465_v47  ;;  %v531_v9 = vmul.f32 %v467_v60, %v467_v60  ;;  %v459_v47 = vrot.slane %v458_v2, 1 }
 0x16e   :  { %v533_v1 = vmul.f32 %v469_v57, %v469_v57  ;;  %v475_v60 = vsub.f32 %v3021_v25, %v3219_v50 }
 0x16f   :  { %1134 = vmatpush2.bf16.msra.mxu1 %v2716_v34  ;;  %v2724_v34 = vld [vmem:[%s4621_s2 + $0xc4] ss:$8 sps:$4 sm:$0xff]   ;;  %v591_v46 = vadd.f32 %v529_v54, %v527_v33  ;;  %v535_v33 = vmul.f32 %v471_v41, %v471_v41  ;;  %v479_v41 = vsub.f32 %v3035_v32, %v3219_v50 }
 0x170   :  { %1135 = vmatprep.subr.bf16.mxu1 %v2721_v44 }
 0x171   :  { %v592_v44 = vadd.f32 %v591_v46, %v531_v9  ;;  %v537_v9 = vmul.f32 %v473_v58, %v473_v58  ;;  %v2730_v46 = vld [vmem:[%s4621_s2 + $0xa4] ss:$8 sps:$4 sm:$0xff]  }
 0x173   :  { %1136 = vmatpush2.bf16.msra.mxu1 %v2719_v51  ;;  %v2727_v51 = vld [vmem:[%s4621_s2 + $0xb4] ss:$8 sps:$4 sm:$0xff]   ;;  %v593_v54 = vadd.f32 %v592_v44, %v533_v1  ;;  %v539_v1 = vmul.f32 %v475_v60, %v475_v60  ;;  %v2731_v60 = vld [vmem:[%s4621_s2 + $0x90] ss:$8 sps:$4 sm:$0xff]  }
 0x174   :  { %1137 = vmatprep.subr.bf16.mxu1 %v2724_v34  ;;  %v460_v34 = vadd.f32 %v459_v47, %v458_v2 }
 0x175   :  { %v594_v57 = vadd.f32 %v593_v54, %v535_v33  ;;  %v483_v33 = vsub.f32 %v3056_v45, %v3219_v50  ;;  %v543_v54 = vmul.f32 %v479_v41, %v479_v41 }
 0x176   :  { %v3269_v47 = vmul.f32 0.00390625, %v460_v34 }
 0x177   :  { %1138 = vmatpush2.bf16.msra.mxu1 %v2722_v6  ;;  %v477_v6 = vsub.f32 %v3029_v29, %v3219_v50  ;;  %v595_v2 = vadd.f32 %v594_v57, %v537_v9  ;;  %v2734_v9 = vld [vmem:[%s4621_s2 + $0x80] ss:$8 sps:$4 sm:$0xff]   ;;  %v2736_v57 = vld [vmem:[%s4621_s2 + $0x84] ss:$8 sps:$4 sm:$0xff]  }
 0x178   :  { %1139 = vmatprep.subr.bf16.mxu1 %v2727_v51  ;;  %v2733_v51 = vld [vmem:[%s4621_s2 + $0x94] ss:$8 sps:$4 sm:$0xff]  }
 0x179   :  { %v541_v58 = vmul.f32 %v477_v6, %v477_v6  ;;  %v596_v44 = vadd.f32 %v595_v2, %v539_v1  ;;  %v466_v6 = vsub.f32 %v2985_v8, %v3269_v47  ;;  %v487_v2 = vsub.f32 %v3076_v59, %v3219_v50 }
 0x17b   :  { %1140 = vmatpush2.bf16.msra.mxu1 %v2725_v13  ;;  %v481_v13 = vsub.f32 %v3046_v38, %v3219_v50  ;;  %v597_v34 = vadd.f32 %v596_v44, %v541_v58  ;;  %v547_v58 = vmul.f32 %v483_v33, %v483_v33  ;;  %v530_v45 = vmul.f32 %v466_v6, %v466_v6 }
 0x17c   :  { %1141 = vmatprep.subr.bf16.mxu1 %v2730_v46  ;;  %v485_v46 = vsub.f32 %v3066_v52, %v3219_v50  ;;  %v489_v38 = vsub.f32 %v3086_v36, %v3219_v50  ;;  %v551_v33 = vmul.f32 %v487_v2, %v487_v2  ;;  %v493_v6 = vsub.f32 %v3106_v61, %v3219_v50 }
 0x17d   :  { %v545_v41 = vmul.f32 %v481_v13, %v481_v13  ;;  %v598_v1 = vadd.f32 %v597_v34, %v543_v54  ;;  %v470_v13 = vsub.f32 %v3001_v15, %v3269_v47  ;;  %v491_v54 = vsub.f32 %v3096_v48, %v3219_v50 }
 0x17e   :  { %v549_v32 = vmul.f32 %v485_v46, %v485_v46  ;;  %v474_v46 = vsub.f32 %v3017_v23, %v3269_v47  ;;  %v495_v48 = vsub.f32 %v2975_v3, %v3219_v50 }
 0x17f   :  { %1142 = vmatpush2.bf16.msra.mxu1 %v2728_v21  ;;  %v464_v21 = vsub.f32 %v2977_v4, %v3269_v47  ;;  %v599_v44 = vadd.f32 %v598_v1, %v545_v41  ;;  %v553_v1 = vmul.f32 %v489_v38, %v489_v38  ;;  %v555_v2 = vmul.f32 %v491_v54, %v491_v54 }
 0x180   :  { %1143 = vmatprep.subr.bf16.mxu1 %v2733_v51  ;;  %v468_v51 = vsub.f32 %v2993_v11, %v3269_v47  ;;  %v557_v38 = vmul.f32 %v493_v6, %v493_v6  ;;  %v559_v54 = vmul.f32 %v495_v48, %v495_v48 }
 0x181   :  { %v600_v29 = vadd.f32 %v599_v44, %v547_v58  ;;  %v534_v58 = vmul.f32 %v470_v13, %v470_v13  ;;  %v538_v13 = vmul.f32 %v474_v46, %v474_v46 }
 0x182   :  { %v532_v41 = vmul.f32 %v468_v51, %v468_v51 }
 0x183   :  { %1144 = vmatpush2.bf16.msra.mxu1 %v2731_v60  ;;  %v528_v60 = vmul.f32 %v464_v21, %v464_v21  ;;  %v601_v34 = vadd.f32 %v600_v29, %v549_v32  ;;  %v476_v32 = vsub.f32 %v3025_v27, %v3269_v47 }
 0x184   :  { %1145 = vmatprep.subr.bf16.mxu1 %v2736_v57  ;;  %v472_v57 = vsub.f32 %v3009_v19, %v3269_v47 }
 0x185   :  { %v628_v21 = vadd.f32 %v530_v45, %v528_v60  ;;  %v497_v60 = vsub.f32 %v2983_v7, %v3219_v50 }
 0x186   :  { %v536_v51 = vmul.f32 %v472_v57, %v472_v57  ;;  %v540_v57 = vmul.f32 %v476_v32, %v476_v32 }
 0x187   :  { %1146 = vmatpush2.bf16.msra.mxu1 %v2734_v9  ;;  %v602_v9 = vadd.f32 %v601_v34, %v551_v33  ;;  %v629_v44 = vadd.f32 %v628_v21, %v532_v41  ;;  %v478_v34 = vsub.f32 %v3033_v31, %v3269_v47  ;;  %v499_v21 = vsub.f32 %v2991_v10, %v3219_v50 }
 0x188   :  { %v561_v6 = vmul.f32 %v497_v60, %v497_v60 }
 0x189   :  { %v603_v29 = vadd.f32 %v602_v9, %v553_v1  ;;  %v630_v45 = vadd.f32 %v629_v44, %v534_v58  ;;  %v480_v9 = vsub.f32 %v3041_v35, %v3269_v47  ;;  %v501_v44 = vsub.f32 %v2999_v14, %v3219_v50 }
 0x18a   :  { %v542_v46 = vmul.f32 %v478_v34, %v478_v34  ;;  %v563_v48 = vmul.f32 %v499_v21, %v499_v21 }
 0x18b   :  { %v604_v33 = vadd.f32 %v603_v29, %v555_v2  ;;  %v631_v41 = vadd.f32 %v630_v45, %v536_v51  ;;  %v482_v29 = vsub.f32 %v3052_v42, %v3269_v47  ;;  %v503_v45 = vsub.f32 %v3007_v18, %v3219_v50 }
 0x18c   :  { %v544_v32 = vmul.f32 %v480_v9, %v480_v9  ;;  %v565_v60 = vmul.f32 %v501_v44, %v501_v44 }
 0x18d   :  { %v605_v1 = vadd.f32 %v604_v33, %v557_v38  ;;  %v632_v58 = vadd.f32 %v631_v41, %v538_v13  ;;  %v484_v33 = vsub.f32 %v3062_v49, %v3269_v47  ;;  %v505_v41 = vsub.f32 %v3015_v22, %v3219_v50 }
 0x18e   :  { %v546_v34 = vmul.f32 %v482_v29, %v482_v29  ;;  %v567_v21 = vmul.f32 %v503_v45, %v503_v45 }
 0x18f   :  { %v606_v2 = vadd.f32 %v605_v1, %v559_v54  ;;  %v633_v51 = vadd.f32 %v632_v58, %v540_v57  ;;  %v4758_v1 = vld [vmem:[#allocation30_spill] sm:$0xff]  ;;  %v507_v58 = vsub.f32 %v3023_v26, %v3219_v50  ;;  %v548_v9 = vmul.f32 %v484_v33, %v484_v33 }
 0x190   :  { %v486_v61 = vsub.f32 %v4758_v1, %v3269_v47  ;;  %v569_v44 = vmul.f32 %v505_v41, %v505_v41 }
 0x191   :  { %v607_v38 = vadd.f32 %v606_v2, %v561_v6  ;;  %v634_v13 = vadd.f32 %v633_v51, %v542_v46  ;;  %v4759_v2 = vld [vmem:[#allocation33_spill] sm:$0xff]  ;;  %v509_v51 = vsub.f32 %v3031_v30, %v3219_v50  ;;  %v571_v45 = vmul.f32 %v507_v58, %v507_v58 }
 0x192   :  { %v488_v36 = vsub.f32 %v4759_v2, %v3269_v47  ;;  %v550_v29 = vmul.f32 %v486_v61, %v486_v61 }
 0x193   :  { %v608_v54 = vadd.f32 %v607_v38, %v563_v48  ;;  %v635_v57 = vadd.f32 %v634_v13, %v544_v32  ;;  %v4760_v38 = vld [vmem:[#allocation35_spill] sm:$0xff]  ;;  %v511_v13 = vsub.f32 %v3048_v39, %v3219_v50  ;;  %v573_v41 = vmul.f32 %v509_v51, %v509_v51 }
 0x194   :  { %v490_v59 = vsub.f32 %v4760_v38, %v3269_v47  ;;  %v552_v33 = vmul.f32 %v488_v36, %v488_v36 }
 0x195   :  { %v609_v6 = vadd.f32 %v608_v54, %v565_v60  ;;  %v636_v46 = vadd.f32 %v635_v57, %v546_v34  ;;  %v492_v54 = vsub.f32 %v3102_v55, %v3269_v47  ;;  %v513_v57 = vsub.f32 %v3068_v53, %v3219_v50 }
 0x196   :  { %v554_v61 = vmul.f32 %v490_v59, %v490_v59  ;;  %v575_v58 = vmul.f32 %v511_v13, %v511_v13 }
 0x197   :  { %v610_v48 = vadd.f32 %v609_v6, %v567_v21  ;;  %v637_v32 = vadd.f32 %v636_v46, %v548_v9  ;;  %v4761_v6 = vld [vmem:[#allocation40_spill] sm:$0xff]  ;;  %v515_v46 = vsub.f32 %v3088_v37, %v3219_v50  ;;  %v556_v36 = vmul.f32 %v492_v54, %v492_v54 }
 0x198   :  { %v494_v38 = vsub.f32 %v4761_v6, %v3269_v47  ;;  %v577_v51 = vmul.f32 %v513_v57, %v513_v57 }
 0x199   :  { %v611_v60 = vadd.f32 %v610_v48, %v569_v44  ;;  %v638_v34 = vadd.f32 %v637_v32, %v550_v29  ;;  %v496_v48 = vsub.f32 %v2979_v5, %v3269_v47  ;;  %v517_v32 = vsub.f32 %v3108_v62, %v3219_v50 }
 0x19a   :  { %v558_v59 = vmul.f32 %v494_v38, %v494_v38  ;;  %v579_v13 = vmul.f32 %v515_v46, %v515_v46 }
 0x19b   :  { %v612_v21 = vadd.f32 %v611_v60, %v571_v45  ;;  %v639_v9 = vadd.f32 %v638_v34, %v552_v33  ;;  %v4762_v60 = vld [vmem:[#allocation14_spill] sm:$0xff]  ;;  %v519_v34 = vsub.f32 %v3122_v56, %v3219_v50  ;;  %v560_v54 = vmul.f32 %v496_v48, %v496_v48 }
 0x19c   :  { %v498_v6 = vsub.f32 %v4762_v60, %v3269_v47  ;;  %v581_v57 = vmul.f32 %v517_v32, %v517_v32 }
 0x19d   :  { %v613_v44 = vadd.f32 %v612_v21, %v573_v41  ;;  %v640_v29 = vadd.f32 %v639_v9, %v554_v61  ;;  %v500_v21 = vsub.f32 %v2995_v12, %v3269_v47  ;;  %v521_v9 = vsub.f32 %v3134_v0, %v3219_v50 }
 0x19e   :  { %v562_v38 = vmul.f32 %v498_v6, %v498_v6  ;;  %v583_v46 = vmul.f32 %v519_v34, %v519_v34  ;;  %v508_v34 = vsub.f32 %v3027_v28, %v3269_v47 }
 0x19f   :  { %v614_v45 = vadd.f32 %v613_v44, %v575_v58  ;;  %v641_v33 = vadd.f32 %v640_v29, %v556_v36  ;;  %v4763_v44 = vld [vmem:[#allocation17_spill] sm:$0xff]  ;;  %v523_v29 = vsub.f32 %v3155_v63, %v3219_v50  ;;  %v564_v48 = vmul.f32 %v500_v21, %v500_v21 }
 0x1a0   :  { %v502_v60 = vsub.f32 %v4763_v44, %v3269_v47  ;;  %v585_v32 = vmul.f32 %v521_v9, %v521_v9 }
 0x1a1   :  { %v615_v41 = vadd.f32 %v614_v45, %v577_v51  ;;  %v642_v61 = vadd.f32 %v641_v33, %v558_v59  ;;  %v504_v45 = vsub.f32 %v3011_v20, %v3269_v47  ;;  %v525_v33 = vsub.f32 %v3177_v43, %v3219_v50 }
 0x1a2   :  { %v566_v6 = vmul.f32 %v502_v60, %v502_v60  ;;  %v572_v60 = vmul.f32 %v508_v34, %v508_v34 }
 0x1a3   :  { %v616_v58 = vadd.f32 %v615_v41, %v579_v13  ;;  %v643_v36 = vadd.f32 %v642_v61, %v560_v54  ;;  %v506_v41 = vsub.f32 %v3019_v24, %v3269_v47  ;;  %v587_v61 = vmul.f32 %v523_v29, %v523_v29 }
 0x1a4   :  { %v589_v55 = vmul.f32 %v525_v33, %v525_v33 }
 0x1a5   :  { %v617_v51 = vadd.f32 %v616_v58, %v581_v57  ;;  %v644_v59 = vadd.f32 %v643_v36, %v562_v38  ;;  %v568_v57 = vmul.f32 %v504_v45, %v504_v45  ;;  %v4764_v38 = vld [vmem:[#allocation22_spill] sm:$0xff]  ;;  %v570_v2 = vmul.f32 %v506_v41, %v506_v41 }
 0x1a6   :  { %v510_v36 = vsub.f32 %v4764_v38, %v3269_v47 }
 0x1a7   :  { %v618_v13 = vadd.f32 %v617_v51, %v583_v46  ;;  %v645_v54 = vadd.f32 %v644_v59, %v564_v48  ;;  %v4765_v51 = vld [vmem:[#allocation27_spill] sm:$0xff]  ;;  %v4766_v59 = vld [vmem:[#allocation32_spill] sm:$0xff] }
 0x1a8   :  { %v512_v52 = vsub.f32 %v4765_v51, %v3269_v47 }
 0x1a9   :  { %v619_v5 = vadd.f32 %v618_v13, %v585_v32  ;;  %v646_v58 = vadd.f32 %v645_v54, %v566_v6  ;;  %v514_v32 = vsub.f32 %v4766_v59, %v3269_v47  ;;  %v574_v13 = vmul.f32 %v510_v36, %v510_v36 }
 0x1aa   :  { %v576_v54 = vmul.f32 %v512_v52, %v512_v52 }
 0x1ab   :  { %v620_v21 = vadd.f32 %v619_v5, %v587_v61  ;;  %v647_v9 = vadd.f32 %v646_v58, %v568_v57  ;;  %v4767_v5 = vld [vmem:[#allocation37_spill] sm:$0xff]  ;;  %v578_v58 = vmul.f32 %v514_v32, %v514_v32 }
 0x1ac   :  { %v516_v33 = vsub.f32 %v4767_v5, %v3269_v47 }
 0x1ad   :  { %v621_v46 = vadd.f32 %v620_v21, %v589_v55  ;;  %v648_v48 = vadd.f32 %v647_v9, %v570_v2  ;;  %v4768_v55 = vld [vmem:[#allocation41_spill] sm:$0xff]  ;;  %v520_v2 = vsub.f32 %v3128_v40, %v3269_v47 }
 0x1ae   :  { %v518_v57 = vsub.f32 %v4768_v55, %v3269_v47  ;;  %v580_v9 = vmul.f32 %v516_v33, %v516_v33 }
 0x1af   :  { %v622_v29 = vrot.slane %v621_v46, 4  ;;  %v649_v45 = vadd.f32 %v648_v48, %v572_v60 }
 0x1b0   :  { %v582_v60 = vmul.f32 %v518_v57, %v518_v57 }
 0x1b1   :  { %v623_v6 = vadd.f32 %v622_v29, %v621_v46  ;;  %v650_v61 = vadd.f32 %v649_v45, %v574_v13  ;;  %v522_v46 = vsub.f32 %v3143_v16, %v3269_v47  ;;  %v4769_v29 = vld [vmem:[#allocation42_spill] sm:$0xff]  ;;  %v584_v45 = vmul.f32 %v520_v2, %v520_v2  ;;  %v80_v2 = vld [vmem:[#allocation5] sm:$0xff] }
 0x1b2   :  { %v524_v13 = vsub.f32 %v4769_v29, %v3269_v47 }
 0x1b3   :  { %v624_v41 = vrot.slane %v623_v6, 2  ;;  %v651_v21 = vadd.f32 %v650_v61, %v576_v54  ;;  %v586_v61 = vmul.f32 %v522_v46, %v522_v46 }
 0x1b5   :  { %v625_v34 = vadd.f32 %v624_v41, %v623_v6  ;;  %v652_v1 = vadd.f32 %v651_v21, %v578_v58  ;;  %v4770_v6 = vld [vmem:[#allocation43_spill] sm:$0xff]  ;;  %v588_v58 = vmul.f32 %v524_v13, %v524_v13 }
 0x1b6   :  { %v526_v54 = vsub.f32 %v4770_v6, %v3269_v47 }
 0x1b7   :  { %v626_v36 = vrot.slane %v625_v34, 1  ;;  %v653_v48 = vadd.f32 %v652_v1, %v580_v9 }
 0x1b8   :  { %v590_v42 = vmul.f32 %v526_v54, %v526_v54 }
 0x1b9   :  { %v627_v52 = vadd.f32 %v626_v36, %v625_v34  ;;  %v654_v49 = vadd.f32 %v653_v48, %v582_v60  ;;  %v683_v34 = vlaneseq }
 0x1bb   :  { %v665_v32 = vmul.f32 0.00390625, %v627_v52  ;;  %v655_v41 = vadd.f32 %v654_v49, %v584_v45  ;;  %v3393_v25 = vshrl.u32 %v683_v34, 7 }
 0x1bd   :  { %v667_v33 = vadd.f32 1e-05, %v665_v32  ;;  %v656_v21 = vadd.f32 %v655_v41, %v586_v61  ;;  %4771 = vst [vmem:[#allocation17_spill] sm:$0xff] %v3393_v25  ;;  %v685_v46 = vsub.s32 0, %v3393_v25 }
 0x1bf   :  { %2753 = vrsqrt.f32 %v667_v33  ;;  %v657_v35 = vadd.f32 %v656_v21, %v588_v58 }
 0x1c1   :  { %v658_v57 = vadd.f32 %v657_v35, %v590_v42  ;;  %v757_v35 = vsub.s32 1, %v3393_v25 }
 0x1c3   :  { %v659_v1 = vrot.slane %v658_v57, 4 }
 0x1c5   :  { %v660_v9 = vadd.f32 %v659_v1, %v658_v57 }
 0x1c7   :  { %v661_v36 = vrot.slane %v660_v9, 2 }
 0x1c9   :  { %v662_v60 = vadd.f32 %v661_v36, %v660_v9 }
 0x1cb   :  { %v663_v49 = vrot.slane %v662_v60, 1 }
 0x1cc   :  { %v2754_v48 = vpop.eup %2753 }
 0x1cd   :  { %v671_v52 = vmul.f32 %v2754_v48, %v80_v2  ;;  %v664_v42 = vadd.f32 %v663_v49, %v662_v60 }
 0x1cf   :  { %v673_v13 = vmul.f32 %v671_v52, %v3219_v50  ;;  %v3399_v32 = vrot.slane %v671_v52, %v685_v46  ;;  %v666_v33 = vmul.f32 0.00390625, %v664_v42 }
 0x1d1   :  { %v677_v45 = vrot.slane %v673_v13, 7  ;;  %v753_v61 = vmul.f32 %v3399_v32, %v3177_v43  ;;  %v723_v50 = vmul.f32 %v3399_v32, %v2975_v3  ;;  %v725_v21 = vmul.f32 %v3399_v32, %v2983_v7 }
 0x1d2   :  { %v668_v57 = vadd.f32 1e-05, %v666_v33  ;;  %v727_v1 = vmul.f32 %v3399_v32, %v2991_v10  ;;  %v729_v43 = vmul.f32 %v3399_v32, %v2999_v14  ;;  %v731_v34 = vmul.f32 %v3399_v32, %v3007_v18 }
 0x1d3   :  { %v681_v54 = vsub.f32 %v80_v2, %v677_v45  ;;  %v733_v9 = vmul.f32 %v3399_v32, %v3015_v22  ;;  %v735_v36 = vmul.f32 %v3399_v32, %v3023_v26  ;;  %v737_v3 = vmul.f32 %v3399_v32, %v3031_v30 }
 0x1d4   :  { %v739_v7 = vmul.f32 %v3399_v32, %v3048_v39  ;;  %2755 = vrsqrt.f32 %v668_v57  ;;  %v741_v10 = vmul.f32 %v3399_v32, %v3068_v53  ;;  %v743_v14 = vmul.f32 %v3399_v32, %v3088_v37 }
 0x1d5   :  { %v3406_v41 = vrot.slane %v681_v54, %v757_v35  ;;  %v745_v18 = vmul.f32 %v3399_v32, %v3108_v62  ;;  %v747_v22 = vmul.f32 %v3399_v32, %v3122_v56  ;;  %v749_v26 = vmul.f32 %v3399_v32, %v3134_v0  ;;  %v81_v54 = vld [vmem:[#allocation5 + $0x8] sm:$0xff] }
 0x1d6   :  { %v751_v30 = vmul.f32 %v3399_v32, %v3155_v63 }
 0x1d7   :  { %v3409_v58 = vadd.f32 %v3406_v41, %v753_v61  ;;  %v795_v39 = vadd.f32 %v3406_v41, %v723_v50  ;;  %v797_v2 = vadd.f32 %v3406_v41, %v725_v21  ;;  %v799_v53 = vadd.f32 %v3406_v41, %v727_v1 }
 0x1d8   :  { %v801_v37 = vadd.f32 %v3406_v41, %v729_v43  ;;  %v803_v60 = vadd.f32 %v3406_v41, %v731_v34  ;;  %v805_v62 = vadd.f32 %v3406_v41, %v733_v9  ;;  %v807_v56 = vadd.f32 %v3406_v41, %v735_v36 }
 0x1d9   :  { %v809_v48 = vadd.f32 %v3406_v41, %v737_v3  ;;  %v811_v0 = vadd.f32 %v3406_v41, %v739_v7  ;;  %v813_v63 = vadd.f32 %v3406_v41, %v741_v10  ;;  %v3452_v52 = vadd.f32 %v3406_v41, %v743_v14 }
 0x1da   :  { %v3455_v49 = vadd.f32 %v3406_v41, %v745_v18  ;;  %v3458_v13 = vadd.f32 %v3406_v41, %v747_v22  ;;  %v3461_v45 = vadd.f32 %v3406_v41, %v749_v26  ;;  %v3464_v42 = vadd.f32 %v3406_v41, %v751_v30 }
 0x1db   :  { %v859_v61 = vmax.f32 %v795_v39, 0.0  ;;  %v861_v33 = vmax.f32 %v797_v2, 0.0  ;;  %v863_v50 = vmax.f32 %v799_v53, 0.0  ;;  %v865_v21 = vmax.f32 %v801_v37, 0.0  ;;  %v4772_v53 = vld [vmem:[#allocation11_spill] sm:$0xff] }
 0x1dc   :  { %v867_v1 = vmax.f32 %v803_v60, 0.0  ;;  %v869_v43 = vmax.f32 %v805_v62, 0.0  ;;  %v871_v34 = vmax.f32 %v807_v56, 0.0  ;;  %v873_v7 = vmax.f32 %v809_v48, 0.0  ;;  %v4773_v60 = vld [vmem:[#allocation13_spill] sm:$0xff]  ;;  %v4774_v56 = vld [vmem:[#allocation15_spill] sm:$0xff] }
 0x1dd   :  { %v3466_v36 = vpack.c.bf16 %v861_v33, %v859_v61  ;;  %v3468_v3 = vpack.c.bf16 %v865_v21, %v863_v50  ;;  %v875_v14 = vmax.f32 %v811_v0, 0.0  ;;  %v877_v18 = vmax.f32 %v813_v63, 0.0  ;;  %v4775_v0 = vld [vmem:[#allocation16_spill] sm:$0xff] }
 0x1de   :  { %v3470_v10 = vpack.c.bf16 %v869_v43, %v867_v1  ;;  %v3473_v26 = vpack.c.bf16 %v873_v7, %v871_v34  ;;  %v691_v37 = vmul.f32 %v3399_v32, %v4772_v53  ;;  %v693_v62 = vmul.f32 %v3399_v32, %v4773_v60 }
 0x1df   :  { %v3475_v30 = vpack.c.bf16 %v877_v18, %v875_v14  ;;  %v695_v48 = vmul.f32 %v3399_v32, %v4774_v56 }
 0x1e0   :  { %v763_v61 = vadd.f32 %v3406_v41, %v691_v37  ;;  %v765_v33 = vadd.f32 %v3406_v41, %v693_v62 }
 0x1e1   :  { %v2756_v57 = vpop.eup %2755 }
 0x1e2   :  { %v672_v9 = vmul.f32 %v2756_v57, %v81_v54  ;;  %v827_v43 = vmax.f32 %v763_v61, 0.0  ;;  %v829_v34 = vmax.f32 %v765_v33, 0.0 }
 0x1e4   :  { %v674_v22 = vmul.f32 %v672_v9, %v3269_v47  ;;  %v3479_v2 = vrot.slane %v672_v9, %v685_v46  ;;  %v697_v47 = vmul.f32 %v3399_v32, %v4775_v0  ;;  %v767_v46 = vadd.f32 %v3406_v41, %v695_v48 }
 0x1e6   :  { %v678_v39 = vrot.slane %v674_v22, 7  ;;  %v754_v50 = vmul.f32 %v3479_v2, %v4770_v6  ;;  %v769_v57 = vadd.f32 %v3406_v41, %v697_v47  ;;  %v831_v9 = vmax.f32 %v767_v46, 0.0 }
 0x1e7   :  { %v692_v7 = vmul.f32 %v3479_v2, %v2977_v4  ;;  %v694_v6 = vmul.f32 %v3479_v2, %v2985_v8  ;;  %v698_v18 = vmul.f32 %v3479_v2, %v3001_v15  ;;  %v728_v22 = vmul.f32 %v3479_v2, %v2995_v12 }
 0x1e8   :  { %v682_v63 = vsub.f32 %v81_v54, %v678_v39  ;;  %v699_v54 = vmul.f32 %v3399_v32, %v3005_v17  ;;  %v833_v14 = vmax.f32 %v769_v57, 0.0  ;;  %v730_v17 = vmul.f32 %v3479_v2, %v4763_v44 }
 0x1e9   :  { %v732_v39 = vmul.f32 %v3479_v2, %v3011_v20  ;;  %v734_v4 = vmul.f32 %v3479_v2, %v3019_v24  ;;  %v736_v8 = vmul.f32 %v3479_v2, %v3027_v28  ;;  %v740_v15 = vmul.f32 %v3479_v2, %v4765_v51 }
 0x1ea   :  { %v3496_v21 = vrot.slane %v682_v63, %v757_v35  ;;  %v696_v35 = vmul.f32 %v3479_v2, %v2993_v11  ;;  %v738_v11 = vmul.f32 %v3479_v2, %v4764_v38  ;;  %v742_v12 = vmul.f32 %v3479_v2, %v4766_v59 }
 0x1eb   :  { %v744_v44 = vmul.f32 %v3479_v2, %v4767_v5  ;;  %v746_v20 = vmul.f32 %v3479_v2, %v4768_v55  ;;  %v748_v24 = vmul.f32 %v3479_v2, %v3128_v40  ;;  %v750_v28 = vmul.f32 %v3479_v2, %v3143_v16 }
 0x1ec   :  { %v3500_v1 = vadd.f32 %v3496_v21, %v754_v50  ;;  %v752_v38 = vmul.f32 %v3479_v2, %v4769_v29  ;;  %v764_v51 = vadd.f32 %v3496_v21, %v692_v7  ;;  %v766_v53 = vadd.f32 %v3496_v21, %v694_v6  ;;  %v4776_v6 = vld [vmem:[#allocation18_spill] sm:$0xff] }
 0x1ed   :  { %v768_v59 = vadd.f32 %v3496_v21, %v696_v35  ;;  %v770_v5 = vadd.f32 %v3496_v21, %v698_v18  ;;  %v800_v37 = vadd.f32 %v3496_v21, %v728_v22  ;;  %v802_v55 = vadd.f32 %v3496_v21, %v730_v17 }
 0x1ee   :  { %v804_v40 = vadd.f32 %v3496_v21, %v732_v39  ;;  %v806_v60 = vadd.f32 %v3496_v21, %v734_v4  ;;  %v808_v16 = vadd.f32 %v3496_v21, %v736_v8  ;;  %v810_v29 = vadd.f32 %v3496_v21, %v738_v11 }
 0x1ef   :  { %v812_v62 = vadd.f32 %v3496_v21, %v740_v15  ;;  %v814_v56 = vadd.f32 %v3496_v21, %v742_v12  ;;  %v816_v48 = vadd.f32 %v3496_v21, %v744_v44  ;;  %v818_v0 = vadd.f32 %v3496_v21, %v746_v20 }
 0x1f0   :  { %v820_v47 = vadd.f32 %v3496_v21, %v748_v24  ;;  %v822_v63 = vadd.f32 %v3496_v21, %v750_v28  ;;  %v824_v61 = vadd.f32 %v3496_v21, %v752_v38  ;;  %v828_v33 = vmax.f32 %v764_v51, 0.0 }
 0x1f1   :  { %v700_v46 = vmul.f32 %v3479_v2, %v3009_v19  ;;  %v830_v50 = vmax.f32 %v766_v53, 0.0  ;;  %v832_v57 = vmax.f32 %v768_v59, 0.0  ;;  %v834_v7 = vmax.f32 %v770_v5, 0.0 }
 0x1f2   :  { %v701_v35 = vmul.f32 %v3399_v32, %v4776_v6  ;;  %v702_v18 = vmul.f32 %v3479_v2, %v3017_v23  ;;  %v771_v22 = vadd.f32 %v3406_v41, %v699_v54  ;;  %v891_v11 = vpack.c.bf16 %v829_v34, %v827_v43  ;;  %v4778_v6 = vld [vmem:[#allocation20_spill] sm:$0xff] }
 0x1f3   :  { %v772_v17 = vadd.f32 %v3496_v21, %v700_v46  ;;  %v892_v39 = vpack.c.bf16 %v830_v50, %v828_v33  ;;  %v893_v19 = vpack.c.bf16 %v833_v14, %v831_v9  ;;  %v894_v15 = vpack.c.bf16 %v834_v7, %v832_v57 }
 0x1f4   :  { %v773_v4 = vadd.f32 %v3406_v41, %v701_v35  ;;  %v774_v8 = vadd.f32 %v3496_v21, %v702_v18  ;;  %v879_v12 = vmax.f32 %v3452_v52, 0.0  ;;  %v881_v44 = vmax.f32 %v3455_v49, 0.0  ;;  %v4779_v18 = vld [vmem:[#allocation23_spill] sm:$0xff] }
 0x1f5   :  { %1147 = vmatprep.mubr.bf16.mxu1 %v892_v39  ;;  %v883_v20 = vmax.f32 %v3458_v13, 0.0  ;;  %v704_v23 = vmul.f32 %v3479_v2, %v3025_v27  ;;  %v864_v54 = vmax.f32 %v800_v37, 0.0  ;;  %v885_v24 = vmax.f32 %v3461_v45, 0.0  ;;  %v4780_v39 = vld [vmem:[#allocation25_spill] sm:$0xff] }
 0x1f6   :  { %1148 = vmatmul.mubr.bf16.vlgmr.msra.gmra.mxu1 %v891_v11  ;;  %v887_v28 = vmax.f32 %v3464_v42, 0.0  ;;  %v706_v43 = vmul.f32 %v3479_v2, %v3033_v31  ;;  %v836_v34 = vmax.f32 %v772_v17, 0.0  ;;  %v866_v9 = vmax.f32 %v802_v55, 0.0 }
 0x1f7   :  { %1157 = vmatprep.mubr.bf16.mxu1 %v894_v15  ;;  %v868_v52 = vmax.f32 %v804_v40, 0.0  ;;  %v838_v14 = vmax.f32 %v774_v8, 0.0  ;;  %v870_v49 = vmax.f32 %v806_v60, 0.0  ;;  %v872_v38 = vmax.f32 %v808_v16, 0.0 }
 0x1f8   :  { %v874_v13 = vmax.f32 %v810_v29, 0.0  ;;  %v3574_v51 = vpack.c.bf16 %v866_v9, %v864_v54  ;;  %v876_v27 = vmax.f32 %v812_v62, 0.0  ;;  %v878_v53 = vmax.f32 %v814_v56, 0.0  ;;  %v4783_v9 = vld [vmem:[#allocation28_spill] sm:$0xff] }
 0x1f9   :  { %v880_v59 = vmax.f32 %v816_v48, 0.0  ;;  %v3576_v5 = vpack.c.bf16 %v870_v49, %v868_v52  ;;  %v882_v42 = vmax.f32 %v818_v0, 0.0  ;;  %v3580_v37 = vpack.c.bf16 %v881_v44, %v879_v12 }
 0x1fa   :  { %v3578_v45 = vpack.c.bf16 %v874_v13, %v872_v38  ;;  %v3582_v31 = vpack.c.bf16 %v878_v53, %v876_v27  ;;  %v884_v55 = vmax.f32 %v820_v47, 0.0  ;;  %v886_v40 = vmax.f32 %v822_v63, 0.0 }
 0x1fb   :  { %v3584_v33 = vpack.c.bf16 %v885_v24, %v883_v20  ;;  %v3586_v60 = vpack.c.bf16 %v882_v42, %v880_v59  ;;  %v888_v16 = vmax.f32 %v824_v61, 0.0  ;;  %v890_v29 = vmax.f32 %v3500_v1, 0.0  ;;  %v4777_v1 = vld [vmem:[#allocation19_spill] sm:$0xff]  ;;  %v4781_v24 = vld [vmem:[#allocation21_spill] sm:$0xff] }
 0x1fc   :  { %v889_v62 = vmax.f32 %v3409_v58, 0.0  ;;  %v776_v56 = vadd.f32 %v3496_v21, %v704_v23  ;;  %v778_v48 = vadd.f32 %v3496_v21, %v706_v43  ;;  %v896_v0 = vpack.c.bf16 %v838_v14, %v836_v34  ;;  %v4782_v43 = vld [vmem:[#allocation24_spill] sm:$0xff]  ;;  %v4784_v14 = vld [vmem:[#allocation30_spill] sm:$0xff] }
 0x1fd   :  { %v3592_v46 = vpack.c.bf16 %v886_v40, %v884_v55  ;;  %v3594_v50 = vpack.c.bf16 %v890_v29, %v888_v16  ;;  %v835_v63 = vmax.f32 %v771_v22, 0.0  ;;  %v837_v57 = vmax.f32 %v773_v4, 0.0 }
 0x1fe   :  { %1158 = vmatmul.mubr.bf16.gmra.mxu1 %v893_v19  ;;  %v3596_v47 = vpack.c.bf16 %v889_v62, %v887_v28  ;;  %v840_v61 = vmax.f32 %v776_v56, 0.0  ;;  %v842_v7 = vmax.f32 %v778_v48, 0.0  ;;  %v703_v58 = vmul.f32 %v3399_v32, %v4777_v1  ;;  %v4785_v62 = vld [vmem:[#allocation26_spill] sm:$0xff]  ;;  %v4786_v48 = vld [vmem:[#allocation29_spill] sm:$0xff] }
 0x1ff   :  { %1167 = vmatprep.mubr.bf16.mxu1 %v896_v0  ;;  %v705_v35 = vmul.f32 %v3399_v32, %v4778_v6  ;;  %v708_v17 = vmul.f32 %v3479_v2, %v4779_v18  ;;  %v710_v8 = vmul.f32 %v3479_v2, %v4780_v39  ;;  %v895_v22 = vpack.c.bf16 %v837_v57, %v835_v63  ;;  %v4787_v63 = vld [vmem:[#allocation33_spill] sm:$0xff] }
 0x200   :  { %v775_v11 = vadd.f32 %v3406_v41, %v703_v58  ;;  %v898_v12 = vpack.c.bf16 %v842_v7, %v840_v61  ;;  %v707_v28 = vmul.f32 %v3399_v32, %v4781_v24  ;;  %v709_v34 = vmul.f32 %v3399_v32, %v4782_v43  ;;  %v4788_v61 = vld [vmem:[#allocation35_spill] sm:$0xff] }
 0x201   :  { %v777_v19 = vadd.f32 %v3406_v41, %v705_v35  ;;  %v780_v4 = vadd.f32 %v3496_v21, %v708_v17  ;;  %v782_v15 = vadd.f32 %v3496_v21, %v710_v8  ;;  %v712_v52 = vmul.f32 %v3479_v2, %v4783_v9 }
 0x202   :  { %v839_v44 = vmax.f32 %v775_v11, 0.0  ;;  %v714_v49 = vmul.f32 %v3479_v2, %v4784_v14  ;;  %v779_v38 = vadd.f32 %v3406_v41, %v707_v28  ;;  %v781_v13 = vadd.f32 %v3406_v41, %v709_v34 }
 0x203   :  { %v841_v20 = vmax.f32 %v777_v19, 0.0  ;;  %v844_v23 = vmax.f32 %v780_v4, 0.0  ;;  %v846_v54 = vmax.f32 %v782_v15, 0.0  ;;  %v784_v53 = vadd.f32 %v3496_v21, %v712_v52  ;;  %v4790_v15 = vld [vmem:[#allocation34_spill] sm:$0xff] }
 0x204   :  { %v786_v59 = vadd.f32 %v3496_v21, %v714_v49  ;;  %v843_v55 = vmax.f32 %v779_v38, 0.0  ;;  %v845_v40 = vmax.f32 %v781_v13, 0.0  ;;  %v711_v56 = vmul.f32 %v3399_v32, %v4785_v62 }
 0x205   :  { %v897_v27 = vpack.c.bf16 %v841_v20, %v839_v44  ;;  %v900_v42 = vpack.c.bf16 %v846_v54, %v844_v23  ;;  %v848_v16 = vmax.f32 %v784_v53, 0.0  ;;  %v713_v0 = vmul.f32 %v3399_v32, %v4786_v48  ;;  %v4791_v44 = vld [vmem:[#allocation38_spill] sm:$0xff]  ;;  %v4792_v23 = vld [vmem:[#allocation40_spill] sm:$0xff] }
 0x206   :  { %1168 = vmatmul.mubr.bf16.gmra.mxu1 %v895_v22  ;;  %v850_v29 = vmax.f32 %v786_v59, 0.0  ;;  %v716_v57 = vmul.f32 %v3479_v2, %v4787_v63  ;;  %v718_v7 = vmul.f32 %v3479_v2, %v4788_v61  ;;  %v783_v1 = vadd.f32 %v3406_v41, %v711_v56  ;;  %v4789_v22 = vld [vmem:[#allocation31_spill] sm:$0xff] }
 0x207   :  { %1177 = vmatprep.mubr.bf16.mxu1 %v898_v12  ;;  %v785_v58 = vadd.f32 %v3406_v41, %v713_v0  ;;  %v899_v6 = vpack.c.bf16 %v845_v40, %v843_v55  ;;  %v715_v4 = vmul.f32 %v3399_v32, %v4789_v22  ;;  %v717_v12 = vmul.f32 %v3399_v32, %v4790_v15  ;;  %v4794_v59 = vld [vmem:[#allocation39_spill] sm:$0xff]  ;;  %v4795_v55 = vld [vmem:[#allocation12_spill] sm:$0xff] }
 0x208   :  { %v788_v35 = vadd.f32 %v3496_v21, %v716_v57  ;;  %v790_v18 = vadd.f32 %v3496_v21, %v718_v7  ;;  %v902_v17 = vpack.c.bf16 %v850_v29, %v848_v16  ;;  %v847_v39 = vmax.f32 %v783_v1, 0.0  ;;  %v4796_v16 = vld [vmem:[#allocation14_spill] sm:$0xff] }
 0x209   :  { %v849_v8 = vmax.f32 %v785_v58, 0.0  ;;  %v720_v20 = vmul.f32 %v3479_v2, %v4791_v44  ;;  %v722_v54 = vmul.f32 %v3479_v2, %v4792_v23  ;;  %v787_v24 = vadd.f32 %v3406_v41, %v715_v4 }
 0x20a   :  { %v852_v11 = vmax.f32 %v788_v35, 0.0  ;;  %v854_v19 = vmax.f32 %v790_v18, 0.0  ;;  %v789_v28 = vadd.f32 %v3406_v41, %v717_v12  ;;  %v724_v40 = vmul.f32 %v3479_v2, %v4795_v55 }
 0x20b   :  { %v901_v43 = vpack.c.bf16 %v849_v8, %v847_v39  ;;  %v792_v34 = vadd.f32 %v3496_v21, %v720_v20  ;;  %v794_v9 = vadd.f32 %v3496_v21, %v722_v54  ;;  %v851_v14 = vmax.f32 %v787_v24, 0.0 }
 0x20c   :  { %v904_v52 = vpack.c.bf16 %v854_v19, %v852_v11  ;;  %v853_v49 = vmax.f32 %v789_v28, 0.0  ;;  %v726_v29 = vmul.f32 %v3479_v2, %v4796_v16  ;;  %v796_v0 = vadd.f32 %v3496_v21, %v724_v40 }
 0x20d   :  { %v856_v38 = vmax.f32 %v792_v34, 0.0  ;;  %v858_v13 = vmax.f32 %v794_v9, 0.0 }
 0x20e   :  { %1178 = vmatmul.mubr.bf16.gmra.mxu1 %v897_v27  ;;  %v4793_v27 = vld [vmem:[#allocation36_spill] sm:$0xff]  ;;  %v903_v48 = vpack.c.bf16 %v853_v49, %v851_v14  ;;  %v798_v63 = vadd.f32 %v3496_v21, %v726_v29  ;;  %v860_v7 = vmax.f32 %v796_v0, 0.0 }
 0x20f   :  { %1187 = vmatprep.mubr.bf16.mxu1 %v900_v42  ;;  %v719_v53 = vmul.f32 %v3399_v32, %v4793_v27  ;;  %v721_v42 = vmul.f32 %v3399_v32, %v4794_v59  ;;  %v906_v57 = vpack.c.bf16 %v858_v13, %v856_v38 }
 0x210   :  { %v862_v1 = vmax.f32 %v798_v63, 0.0 }
 0x211   :  { %v791_v62 = vadd.f32 %v3406_v41, %v719_v53  ;;  %v793_v56 = vadd.f32 %v3406_v41, %v721_v42 }
 0x213   :  { %v855_v61 = vmax.f32 %v791_v62, 0.0  ;;  %v857_v32 = vmax.f32 %v793_v56, 0.0 }
 0x215   :  { %v905_v58 = vpack.c.bf16 %v857_v32, %v855_v61 }
 0x216   :  { %1188 = vmatmul.mubr.bf16.gmra.mxu1 %v899_v6  ;;  %v908_v6 = vpack.c.bf16 %v862_v1, %v860_v7 }
 0x217   :  { %1197 = vmatprep.mubr.bf16.mxu1 %v902_v17 }
 0x21e   :  { %1198 = vmatmul.mubr.bf16.gmra.mxu1 %v901_v43 }
 0x21f   :  { %1207 = vmatprep.mubr.bf16.mxu1 %v904_v52 }
 0x226   :  { %1208 = vmatmul.mubr.bf16.gmra.mxu1 %v903_v48 }
 0x227   :  { %1217 = vmatprep.mubr.bf16.mxu1 %v906_v57 }
 0x22e   :  { %1218 = vmatmul.mubr.bf16.gmra.mxu1 %v905_v58 }
 0x22f   :  { %1227 = vmatprep.mubr.bf16.mxu1 %v908_v6 }
 0x236   :  { %1228 = vmatmul.mubr.bf16.gmra.mxu1 %v3466_v36 }
 0x237   :  { %1237 = vmatprep.mubr.bf16.mxu1 %v3574_v51 }
 0x23e   :  { %1238 = vmatmul.mubr.bf16.gmra.mxu1 %v3468_v3 }
 0x23f   :  { %1247 = vmatprep.mubr.bf16.mxu1 %v3576_v5 }
 0x246   :  { %1248 = vmatmul.mubr.bf16.gmra.mxu1 %v3470_v10 }
 0x247   :  { %1257 = vmatprep.mubr.bf16.mxu1 %v3578_v45 }
 0x24e   :  { %1258 = vmatmul.mubr.bf16.gmra.mxu1 %v3473_v26 }
 0x24f   :  { %1267 = vmatprep.mubr.bf16.mxu1 %v3582_v31 }
 0x256   :  { %1268 = vmatmul.mubr.bf16.gmra.mxu1 %v3475_v30 }
 0x257   :  { %1277 = vmatprep.mubr.bf16.mxu1 %v3586_v60 }
 0x25e   :  { %1278 = vmatmul.mubr.bf16.gmra.mxu1 %v3580_v37 }
 0x25f   :  { %1287 = vmatprep.mubr.bf16.mxu1 %v3592_v46 }
 0x266   :  { %1288 = vmatmul.mubr.bf16.gmra.mxu1 %v3584_v33 }
 0x267   :  { %1297 = vmatprep.mubr.bf16.mxu1 %v3594_v50 }
 0x26e   :  { %1298 = vmatmul.mubr.bf16.gmra.mxu1 %v3596_v47 }
 0x2b6   :  { %v3673_v41 = vpop.f32.mrf.mxu1 }
 0x2b8   :  { %v3675_v36 = vpop.f32.mrf.mxu1 }
 0x2ba   :  { %v3677_v3 = vpop.f32.mrf.mxu1 }
 0x2bb   :  { %v1308_v24 = vadd.f32 %v3677_v3, %v3673_v41 }
 0x2bc   :  { %v3679_v10 = vpop.f32.mrf.mxu1 }
 0x2bd   :  { %v1345_v59 = vadd.f32 %v3679_v10, %v3675_v36 }
 0x2be   :  { %v3681_v26 = vpop.f32.mrf.mxu1 }
 0x2bf   :  { %4797 = vst [vmem:[#allocation22_spill] sm:$0xff] %v3681_v26  ;;  %v1309_v43 = vadd.f32 %v1308_v24, %v3681_v26 }
 0x2c0   :  { %v3683_v30 = vpop.f32.mrf.mxu1 }
 0x2c1   :  { %v1346_v40 = vadd.f32 %v1345_v59, %v3683_v30 }
 0x2c2   :  { %v3685_v2 = vpop.f32.mrf.mxu1 }
 0x2c3   :  { %4798 = vst [vmem:[#allocation27_spill] sm:$0xff] %v3685_v2  ;;  %v1310_v9 = vadd.f32 %v1309_v43, %v3685_v2 }
 0x2c4   :  { %v3687_v21 = vpop.f32.mrf.mxu1 }
 0x2c5   :  { %v1347_v62 = vadd.f32 %v1346_v40, %v3687_v21 }
 0x2c6   :  { %v3689_v51 = vpop.f32.mrf.mxu1 }
 0x2c7   :  { %v1311_v14 = vadd.f32 %v1310_v9, %v3689_v51 }
 0x2c8   :  { %v3691_v5 = vpop.f32.mrf.mxu1 }
 0x2c9   :  { %v1348_v0 = vadd.f32 %v1347_v62, %v3691_v5 }
 0x2ca   :  { %v3693_v45 = vpop.f32.mrf.mxu1 }
 0x2cb   :  { %4799 = vst [vmem:[#allocation32_spill] sm:$0xff] %v3693_v45  ;;  %v1312_v38 = vadd.f32 %v1311_v14, %v3693_v45 }
 0x2cc   :  { %v3695_v37 = vpop.f32.mrf.mxu1 }
 0x2cd   :  { %4800 = vst [vmem:[#allocation37_spill] sm:$0xff] %v3695_v37  ;;  %v1349_v61 = vadd.f32 %v1348_v0, %v3695_v37 }
 0x2ce   :  { %v3697_v31 = vpop.f32.mrf.mxu1 }
 0x2cf   :  { %4801 = vst [vmem:[#allocation41_spill] sm:$0xff] %v3697_v31  ;;  %v1313_v27 = vadd.f32 %v1312_v38, %v3697_v31 }
 0x2d0   :  { %v3699_v33 = vpop.f32.mrf.mxu1 }
 0x2d1   :  { %4802 = vst [vmem:[#allocation42_spill] sm:$0xff] %v3699_v33  ;;  %v1350_v1 = vadd.f32 %v1349_v61, %v3699_v33 }
 0x2d2   :  { %v3701_v60 = vpop.f32.mrf.mxu1 }
 0x2d3   :  { %4803 = vst [vmem:[#allocation43_spill] sm:$0xff] %v3701_v60  ;;  %v1314_v42 = vadd.f32 %v1313_v27, %v3701_v60 }
 0x2d4   :  { %v3703_v46 = vpop.f32.mrf.mxu1 }
 0x2d5   :  { %4804 = vst [vmem:[#allocation11_spill] sm:$0xff] %v3703_v46  ;;  %v1351_v24 = vadd.f32 %v1350_v1, %v3703_v46 }
 0x2d6   :  { %v3705_v50 = vpop.f32.mrf.mxu1 }
 0x2d7   :  { %4805 = vst [vmem:[#allocation13_spill] sm:$0xff] %v3705_v50  ;;  %v1315_v16 = vadd.f32 %v1314_v42, %v3705_v50 }
 0x2d8   :  { %v3707_v47 = vpop.f32.mrf.mxu1 }
 0x2d9   :  { %4806 = vst [vmem:[#allocation15_spill] sm:$0xff] %v3707_v47  ;;  %v1352_v14 = vadd.f32 %v1351_v24, %v3707_v47 }
 0x2da   :  { %v3709_v35 = vpop.f32.mrf.mxu1 }
 0x2db   :  { %4807 = vst [vmem:[#allocation16_spill] sm:$0xff] %v3709_v35  ;;  %v1316_v56 = vadd.f32 %v1315_v16, %v3709_v35 }
 0x2dc   :  { %v3711_v18 = vpop.f32.mrf.mxu1 }
 0x2dd   :  { %4808 = vst [vmem:[#allocation18_spill] sm:$0xff] %v3711_v18  ;;  %v1353_v59 = vadd.f32 %v1352_v14, %v3711_v18 }
 0x2de   :  { %v3713_v17 = vpop.f32.mrf.mxu1 }
 0x2df   :  { %4809 = vst [vmem:[#allocation19_spill] sm:$0xff] %v3713_v17  ;;  %v1317_v63 = vadd.f32 %v1316_v56, %v3713_v17 }
 0x2e0   :  { %v3715_v39 = vpop.f32.mrf.mxu1 }
 0x2e1   :  { %4810 = vst [vmem:[#allocation20_spill] sm:$0xff] %v3715_v39  ;;  %v1354_v16 = vadd.f32 %v1353_v59, %v3715_v39 }
 0x2e2   :  { %v3717_v8 = vpop.f32.mrf.mxu1 }
 0x2e3   :  { %4811 = vst [vmem:[#allocation23_spill] sm:$0xff] %v3717_v8  ;;  %v1318_v32 = vadd.f32 %v1317_v63, %v3717_v8 }
 0x2e4   :  { %v3719_v11 = vpop.f32.mrf.mxu1 }
 0x2e5   :  { %4812 = vst [vmem:[#allocation25_spill] sm:$0xff] %v3719_v11  ;;  %v1355_v0 = vadd.f32 %v1354_v16, %v3719_v11 }
 0x2e6   :  { %v3721_v19 = vpop.f32.mrf.mxu1 }
 0x2e7   :  { %4813 = vst [vmem:[#allocation21_spill] sm:$0xff] %v3721_v19  ;;  %v1319_v58 = vadd.f32 %v1318_v32, %v3721_v19 }
 0x2e8   :  { %v3723_v22 = vpop.f32.mrf.mxu1 }
 0x2e9   :  { %4814 = vst [vmem:[#allocation24_spill] sm:$0xff] %v3723_v22  ;;  %v1356_v32 = vadd.f32 %v1355_v0, %v3723_v22 }
 0x2ea   :  { %v3725_v4 = vpop.f32.mrf.mxu1 }
 0x2eb   :  { %4815 = vst [vmem:[#allocation28_spill] sm:$0xff] %v3725_v4  ;;  %v1320_v43 = vadd.f32 %v1319_v58, %v3725_v4 }
 0x2ec   :  { %v3727_v15 = vpop.f32.mrf.mxu1 }
 0x2ed   :  { %4816 = vst [vmem:[#allocation30_spill] sm:$0xff] %v3727_v15  ;;  %v1357_v24 = vadd.f32 %v1356_v32, %v3727_v15 }
 0x2ee   :  { %v3729_v12 = vpop.f32.mrf.mxu1 }
 0x2ef   :  { %4817 = vst [vmem:[#allocation26_spill] sm:$0xff] %v3729_v12  ;;  %v1321_v38 = vadd.f32 %v1320_v43, %v3729_v12 }
 0x2f0   :  { %v3731_v44 = vpop.f32.mrf.mxu1 }
 0x2f1   :  { %4818 = vst [vmem:[#allocation29_spill] sm:$0xff] %v3731_v44 }
 0x2f2   :  { %v3733_v20 = vpop.f32.mrf.mxu1 }
 0x2f3   :  { %4819 = vst [vmem:[#allocation33_spill] sm:$0xff] %v3733_v20  ;;  %v1322_v42 = vadd.f32 %v1321_v38, %v3733_v20  ;;  %v1358_v38 = vadd.f32 %v1357_v24, %v3731_v44 }
 0x2f4   :  { %v3735_v23 = vpop.f32.mrf.mxu1 }
 0x2f5   :  { %4820 = vst [vmem:[#allocation35_spill] sm:$0xff] %v3735_v23  ;;  %v1359_v16 = vadd.f32 %v1358_v38, %v3735_v23 }
 0x2f6   :  { %v3737_v54 = vpop.f32.mrf.mxu1 }
 0x2f7   :  { %v1323_v62 = vadd.f32 %v1322_v42, %v3737_v54 }
 0x2f8   :  { %v3741_v28 = vpop.f32.mrf.mxu1 }
 0x2f9   :  { %4821 = vst [vmem:[#allocation31_spill] sm:$0xff] %v3741_v28 }
 0x2fa   :  { %v3744_v34 = vpop.f32.mrf.mxu1 }
 0x2fb   :  { %v1324_v63 = vadd.f32 %v1323_v62, %v3744_v34 }
 0x2fc   :  { %v3747_v52 = vpop.f32.mrf.mxu1 }
 0x2fd   :  { %4822 = vst [vmem:[#allocation34_spill] sm:$0xff] %v3747_v52 }
 0x2fe   :  { %v3750_v49 = vpop.f32.mrf.mxu1 }
 0x2ff   :  { %v1325_v1 = vadd.f32 %v1324_v63, %v3750_v49  ;;  %v1360_v63 = vadd.f32 %v1359_v16, %v3741_v28 }
 0x300   :  { %v3753_v13 = vpop.f32.mrf.mxu1 }
 0x301   :  { %4823 = vst [vmem:[#allocation38_spill] sm:$0xff] %v3753_v13 }
 0x302   :  { %v3756_v53 = vpop.f32.mrf.mxu1 }
 0x303   :  { %v1326_v43 = vadd.f32 %v1325_v1, %v3756_v53  ;;  %v1361_v1 = vadd.f32 %v1360_v63, %v3747_v52 }
 0x304   :  { %v3761_v55 = vpop.f32.mrf.mxu1 }
 0x305   :  { %4824 = vst [vmem:[#allocation40_spill] sm:$0xff] %v3761_v55 }
 0x306   :  { %v3765_v29 = vpop.f32.mrf.mxu1 }
 0x307   :  { %v1327_v59 = vadd.f32 %v1326_v43, %v3765_v29  ;;  %v1362_v43 = vadd.f32 %v1361_v1, %v3753_v13 }
 0x308   :  { %v3769_v48 = vpop.f32.mrf.mxu1 }
 0x309   :  { %4825 = vst [vmem:[#allocation36_spill] sm:$0xff] %v3769_v48 }
 0x30a   :  { %v3773_v57 = vpop.f32.mrf.mxu1 }
 0x30b   :  { %v1328_v62 = vadd.f32 %v1327_v59, %v3773_v57  ;;  %v1363_v59 = vadd.f32 %v1362_v43, %v3761_v55 }
 0x30c   :  { %v3777_v7 = vpop.f32.mrf.mxu1 }
 0x30d   :  { %4826 = vst [vmem:[#allocation39_spill] sm:$0xff] %v3777_v7 }
 0x30e   :  { %v3781_v6 = vpop.f32.mrf.mxu1 }
 0x30f   :  { %v1329_v32 = vadd.f32 %v1328_v62, %v3781_v6  ;;  %v1364_v62 = vadd.f32 %v1363_v59, %v3769_v48 }
 0x310   :  { %v3785_v9 = vpop.f32.mrf.mxu1 }
 0x311   :  { %4827 = vst [vmem:[#allocation12_spill] sm:$0xff] %v3785_v9 }
 0x312   :  { %v3789_v27 = vpop.f32.mrf.mxu1 }
 0x313   :  { %v1330_v24 = vadd.f32 %v1329_v32, %v3789_v27  ;;  %v1365_v32 = vadd.f32 %v1364_v62, %v3777_v7 }
 0x314   :  { %v3793_v40 = vpop.f32.mrf.mxu1 }
 0x315   :  { %4828 = vst [vmem:[#allocation14_spill] sm:$0xff] %v3793_v40 }
 0x316   :  { %v3797_v56 = vpop.f32.mrf.mxu1 }
 0x317   :  { %v1331_v38 = vadd.f32 %v1330_v24, %v3797_v56  ;;  %v1366_v24 = vadd.f32 %v1365_v32, %v3785_v9 }
 0x318   :  { %v3801_v61 = vpop.f32.mrf.mxu1 }
 0x319   :  { %4829 = vst [vmem:[#allocation44_spill] sm:$0xff] %v3801_v61 }
 0x31a   :  { %v3805_v58 = vpop.f32.mrf.mxu1 }
 0x31b   :  { %v1332_v16 = vadd.f32 %v1331_v38, %v3805_v58  ;;  %v1367_v38 = vadd.f32 %v1366_v24, %v3793_v40 }
 0x31c   :  { %v3809_v14 = vpop.f32.mrf.mxu1 }
 0x31d   :  { %4830 = vst [vmem:[#allocation45_spill] sm:$0xff] %v3809_v14 }
 0x31e   :  { %v3813_v42 = vpop.f32.mrf.mxu1 }
 0x31f   :  { %v1333_v63 = vadd.f32 %v1332_v16, %v3813_v42  ;;  %v1368_v16 = vadd.f32 %v1367_v38, %v3801_v61 }
 0x320   :  { %v3817_v0 = vpop.f32.mrf.mxu1 }
 0x322   :  { %v3821_v25 = vpop.f32.mrf.mxu1 }
 0x323   :  { %v1334_v1 = vadd.f32 %v1333_v63, %v3821_v25  ;;  %v1369_v63 = vadd.f32 %v1368_v16, %v3809_v14 }
 0x324   :  { %v3825_v44 = vpop.f32.mrf.mxu1 }
 0x326   :  { %v3829_v23 = vpop.f32.mrf.mxu1 }
 0x327   :  { %4831 = vst [vmem:[#allocation46_spill] sm:$0xff] %v3829_v23  ;;  %v1335_v43 = vadd.f32 %v1334_v1, %v3829_v23  ;;  %v1370_v1 = vadd.f32 %v1369_v63, %v3817_v0  ;;  %v2737_v63 = vld [vmem:[%s4622_s3 + $0x78] sm:$0xff]  }
 0x328   :  { %v3833_v28 = vpop.f32.mrf.mxu1  ;;  %2531 = vmatprep.subr.bf16.mxu0 %v2737_v63 }
 0x329   :  { %v1371_v23 = vadd.f32 %v1370_v1, %v3825_v44 }
 0x32a   :  { %v3837_v52 = vpop.f32.mrf.mxu1 }
 0x32b   :  { %4832 = vst [vmem:[#allocation47_spill] sm:$0xff] %v3837_v52  ;;  %v1336_v59 = vadd.f32 %v1335_v43, %v3837_v52  ;;  %v1372_v43 = vadd.f32 %v1371_v23, %v3833_v28  ;;  %v2738_v23 = vld [vmem:[%s4622_s3 + $0x38] sm:$0xff]  }
 0x32c   :  { %v3841_v13 = vpop.f32.mrf.mxu1  ;;  %2532 = vmatpush3.bf16.msra.mxu0 %v2738_v23  ;;  %v2743_v23 = vld [vmem:[%s4622_s3 + $0x60] sm:$0xff]  }
 0x32d   :  { %v1373_v52 = vadd.f32 %v1372_v43, %v3841_v13  ;;  %v2742_v43 = vld [vmem:[%s4622_s3 + $0x28] sm:$0xff]  }
 0x32e   :  { %v3845_v55 = vpop.f32.mrf.mxu1 }
 0x32f   :  { %4833 = vst [vmem:[#allocation48_spill] sm:$0xff] %v3845_v55  ;;  %v1337_v62 = vadd.f32 %v1336_v59, %v3845_v55 }
 0x330   :  { %v3849_v48 = vpop.f32.mrf.mxu1 }
 0x331   :  { %v1374_v59 = vadd.f32 %v1373_v52, %v3849_v48  ;;  %v2739_v52 = vld [vmem:[%s4622_s3 + $0x70] sm:$0xff]  }
 0x332   :  { %v3853_v7 = vpop.f32.mrf.mxu1  ;;  %2533 = vmatprep.subr.bf16.mxu0 %v2739_v52  ;;  %v2744_v52 = vld [vmem:[%s4622_s3 + $0x20] sm:$0xff]  }
 0x333   :  { %v1338_v32 = vadd.f32 %v1337_v62, %v3853_v7 }
 0x334   :  { %v3861_v61 = vpop.f32.mrf.mxu1 }
 0x335   :  { %v1339_v9 = vrot.slane %v1338_v32, 4  ;;  %v1375_v16 = vadd.f32 %v1374_v59, %v3861_v61 }
 0x337   :  { %v1340_v24 = vadd.f32 %v1339_v9, %v1338_v32  ;;  %v1376_v14 = vrot.slane %v1375_v16, 4 }
 0x339   :  { %v1341_v40 = vrot.slane %v1340_v24, 2 }
 0x33b   :  { %v1342_v38 = vadd.f32 %v1341_v40, %v1340_v24  ;;  %v1377_v40 = vadd.f32 %v1376_v14, %v1375_v16  ;;  %v2741_v14 = vld [vmem:[%s4622_s3 + $0x68] sm:$0xff]  }
 0x33d   :  { %v1343_v55 = vrot.slane %v1342_v38, 1  ;;  %v1378_v24 = vrot.slane %v1377_v40, 2 }
 0x33f   :  { %v1344_v62 = vadd.f32 %v1343_v55, %v1342_v38  ;;  %v2740_v55 = vld [vmem:[%s4622_s3 + $0x30] sm:$0xff]  }
 0x340   :  { %2534 = vmatpush3.bf16.msra.mxu0 %v2740_v55 }
 0x341   :  { %v3871_v9 = vmul.f32 0.00390625, %v1344_v62  ;;  %v1379_v62 = vadd.f32 %v1378_v24, %v1377_v40  ;;  %2535 = vmatprep.subr.bf16.mxu0 %v2741_v14 }
 0x343   :  { %v1384_v32 = vsub.f32 %v3673_v41, %v3871_v9  ;;  %v1386_v1 = vsub.f32 %v3677_v3, %v3871_v9  ;;  %v1388_v38 = vsub.f32 %v3681_v26, %v3871_v9  ;;  %v1390_v63 = vsub.f32 %v3685_v2, %v3871_v9  ;;  %v2746_v2 = vld [vmem:[%s4622_s3 + $0x18] sm:$0xff]  }
 0x344   :  { %2536 = vmatpush3.bf16.msra.mxu0 %v2742_v43  ;;  %v1392_v55 = vsub.f32 %v3689_v51, %v3871_v9  ;;  %v1394_v40 = vsub.f32 %v3693_v45, %v3871_v9  ;;  %v2745_v43 = vld [vmem:[%s4622_s3 + $0x58] sm:$0xff]   ;;  %v2748_v45 = vld [vmem:[%s4622_s3 + $0x10] sm:$0xff]  }
 0x345   :  { %v1448_v59 = vmul.f32 %v1384_v32, %v1384_v32  ;;  %v1450_v16 = vmul.f32 %v1386_v1, %v1386_v1  ;;  %v1452_v26 = vmul.f32 %v1388_v38, %v1388_v38  ;;  %v1380_v1 = vrot.slane %v1379_v62, 1  ;;  %2537 = vmatprep.subr.bf16.mxu0 %v2743_v23 }
 0x346   :  { %v1454_v24 = vmul.f32 %v1390_v63, %v1390_v63  ;;  %v1396_v38 = vsub.f32 %v3697_v31, %v3871_v9  ;;  %v1398_v63 = vsub.f32 %v3701_v60, %v3871_v9 }
 0x347   :  { %v1512_v32 = vadd.f32 %v1450_v16, %v1448_v59  ;;  %v1456_v59 = vmul.f32 %v1392_v55, %v1392_v55  ;;  %v1381_v23 = vadd.f32 %v1380_v1, %v1379_v62  ;;  %v1400_v55 = vsub.f32 %v3705_v50, %v3871_v9 }
 0x348   :  { %2538 = vmatpush3.bf16.msra.mxu0 %v2744_v52 }
 0x349   :  { %v1513_v14 = vadd.f32 %v1512_v32, %v1452_v26  ;;  %2539 = vmatprep.subr.bf16.mxu0 %v2745_v43  ;;  %v1458_v26 = vmul.f32 %v1394_v40, %v1394_v40  ;;  %v2747_v32 = vld [vmem:[%s4622_s3 + $0x50] sm:$0xff]   ;;  %v3921_v1 = vmul.f32 0.00390625, %v1381_v23  ;;  %v1462_v40 = vmul.f32 %v1398_v63, %v1398_v63  ;;  %v2749_v43 = vld [vmem:[%s4622_s3 + $0x48] sm:$0xff]  }
 0x34b   :  { %v1514_v16 = vadd.f32 %v1513_v14, %v1454_v24  ;;  %v1460_v24 = vmul.f32 %v1396_v38, %v1396_v38  ;;  %v2750_v38 = vld [vmem:[%s4622_s3 + $0x8] sm:$0xff]   ;;  %v1387_v63 = vsub.f32 %v3679_v10, %v3921_v1 }
 0x34c   :  { %2540 = vmatpush3.bf16.msra.mxu0 %v2746_v2  ;;  %v1402_v2 = vsub.f32 %v3709_v35, %v3871_v9  ;;  %v1410_v35 = vsub.f32 %v3725_v4, %v3871_v9 }
 0x34d   :  { %v1515_v52 = vadd.f32 %v1514_v16, %v1456_v59  ;;  %2541 = vmatprep.subr.bf16.mxu0 %v2747_v32  ;;  %v1404_v59 = vsub.f32 %v3713_v17, %v3871_v9  ;;  %v1464_v16 = vmul.f32 %v1400_v55, %v1400_v55  ;;  %v1406_v32 = vsub.f32 %v3717_v8, %v3871_v9 }
 0x34e   :  { %v1466_v55 = vmul.f32 %v1402_v2, %v1402_v2  ;;  %v1451_v17 = vmul.f32 %v1387_v63, %v1387_v63  ;;  %v1391_v2 = vsub.f32 %v3687_v21, %v3921_v1  ;;  %v1414_v63 = vsub.f32 %v3733_v20, %v3871_v9 }
 0x34f   :  { %v1516_v62 = vadd.f32 %v1515_v52, %v1458_v26  ;;  %v2751_v26 = vld [vmem:[%s4622_s3 + $0x40] sm:$0xff]   ;;  %v1470_v50 = vmul.f32 %v1406_v32, %v1406_v32  ;;  %v1395_v32 = vsub.f32 %v3695_v37, %v3921_v1 }
 0x350   :  { %2542 = vmatpush3.bf16.msra.mxu0 %v2748_v45  ;;  %v1385_v45 = vsub.f32 %v3675_v36, %v3921_v1  ;;  %v2752_v52 = vld [vmem:[%s4622_s3] sm:$0xff]   ;;  %s2869_s3 = smov [#allocation7]  }
 0x351   :  { %v1517_v14 = vadd.f32 %v1516_v62, %v1460_v24  ;;  %2543 = vmatprep.subr.bf16.mxu0 %v2749_v43  ;;  %v1408_v62 = vsub.f32 %v3721_v19, %v3871_v9  ;;  %v1389_v43 = vsub.f32 %v3683_v30, %v3921_v1  ;;  %s2454_s27 = sshll.u32 %s2869_s3, 4  ;;  %s2455_s27 = int_to_ptr.vmem [resolvable:$true] %s2454_s27 }
 0x352   :  { %s2838_s28 = scalar_lea.vmem %s2455_s27, 4096  ;;  %p2843_p11 = scmp.lt.s32.totalorder %s2455_s27, %s2455_s27 }
 0x353   :  { %v1518_v23 = vadd.f32 %v1517_v14, %v1462_v40  ;;  %v1468_v40 = vmul.f32 %v1404_v59, %v1404_v59  ;;  %v1472_v59 = vmul.f32 %v1408_v62, %v1408_v62  ;;  %p2839_p10 = scmp.ne.s32.totalorder %s2455_s27, %s2838_s28  ;;  %p2844_p12 = scmp.lt.s32.totalorder %s2838_s28, %s2838_s28 }
 0x354   :  { %2544 = vmatpush3.bf16.msra.mxu0 %v2750_v38  ;;  %v1449_v38 = vmul.f32 %v1385_v45, %v1385_v45 }
 0x355   :  { %v1519_v24 = vadd.f32 %v1518_v23, %v1464_v16  ;;  %2545 = vmatprep.subr.bf16.mxu0 %v2751_v26  ;;  %v1412_v16 = vsub.f32 %v3729_v12, %v3871_v9  ;;  %v1393_v26 = vsub.f32 %v3691_v5, %v3921_v1  ;;  %v1416_v12 = vsub.f32 %v3737_v54, %v3871_v9  ;;  %p2845_p13 = por %p2844_p12, %p2843_p11 }
 0x356   :  { %v1549_v45 = vadd.f32 %v1451_v17, %v1449_v38  ;;  %v1418_v38 = vsub.f32 %v3744_v34, %v3871_v9 }
 0x357   :  { %v1520_v14 = vadd.f32 %v1519_v24, %v1466_v55  ;;  %v1453_v55 = vmul.f32 %v1389_v43, %v1389_v43  ;;  %v1474_v24 = vmul.f32 %v1410_v35, %v1410_v35  ;;  %v1476_v62 = vmul.f32 %v1412_v16, %v1412_v16  ;;  %p2846_p0 = pnand %p2845_p13, %p2839_p10 }
 0x358   :  { %2546 = vmatpush3.bf16.msra.mxu0 %v2752_v52  ;;  %v1457_v43 = vmul.f32 %v1393_v26, %v1393_v26  ;;  %v1478_v35 = vmul.f32 %v1414_v63, %v1414_v63  ;;  %v1480_v16 = vmul.f32 %v1416_v12, %v1416_v12  ;;  %v1482_v63 = vmul.f32 %v1418_v38, %v1418_v38 }
 0x359   :  { %v1521_v60 = vadd.f32 %v1520_v14, %v1468_v40  ;;  %v1455_v40 = vmul.f32 %v1391_v2, %v1391_v2  ;;  %v1550_v14 = vadd.f32 %v1549_v45, %v1453_v55  ;;  %v1459_v2 = vmul.f32 %v1395_v32, %v1395_v32 }
 0x35a   :  { %v1420_v45 = vsub.f32 %v3750_v49, %v3871_v9 }
 0x35b   :  { %v1522_v23 = vadd.f32 %v1521_v60, %v1470_v50  ;;  %v1397_v50 = vsub.f32 %v3699_v33, %v3921_v1  ;;  %v1551_v17 = vadd.f32 %v1550_v14, %v1455_v40  ;;  %v1422_v14 = vsub.f32 %v3756_v53, %v3871_v9 }
 0x35c   :  { %v1484_v12 = vmul.f32 %v1420_v45, %v1420_v45 }
 0x35d   :  { %v1523_v52 = vadd.f32 %v1522_v23, %v1472_v59  ;;  %v1399_v23 = vsub.f32 %v3703_v46, %v3921_v1  ;;  %v1552_v55 = vadd.f32 %v1551_v17, %v1457_v43  ;;  %v1461_v26 = vmul.f32 %v1397_v50, %v1397_v50 }
 0x35e   :  { %v1424_v17 = vsub.f32 %v3765_v29, %v3871_v9  ;;  %v1486_v38 = vmul.f32 %v1422_v14, %v1422_v14 }
 0x35f   :  { %v1524_v60 = vadd.f32 %v1523_v52, %v1474_v24  ;;  %v1401_v52 = vsub.f32 %v3707_v47, %v3921_v1  ;;  %v1553_v40 = vadd.f32 %v1552_v55, %v1459_v2  ;;  %v1463_v32 = vmul.f32 %v1399_v23, %v1399_v23 }
 0x360   :  { %v1426_v55 = vsub.f32 %v3773_v57, %v3871_v9  ;;  %v1488_v45 = vmul.f32 %v1424_v17, %v1424_v17 }
 0x361   :  { %v1525_v59 = vadd.f32 %v1524_v60, %v1476_v62  ;;  %v1403_v60 = vsub.f32 %v3711_v18, %v3921_v1  ;;  %v1554_v43 = vadd.f32 %v1553_v40, %v1461_v26  ;;  %v1465_v50 = vmul.f32 %v1401_v52, %v1401_v52 }
 0x362   :  { %v1428_v40 = vsub.f32 %v3781_v6, %v3871_v9  ;;  %v1490_v14 = vmul.f32 %v1426_v55, %v1426_v55 }
 0x363   :  { %v1526_v24 = vadd.f32 %v1525_v59, %v1478_v35  ;;  %v1405_v59 = vsub.f32 %v3715_v39, %v3921_v1  ;;  %v1555_v2 = vadd.f32 %v1554_v43, %v1463_v32  ;;  %v1467_v23 = vmul.f32 %v1403_v60, %v1403_v60 }
 0x364   :  { %v1430_v43 = vsub.f32 %v3789_v27, %v3871_v9  ;;  %v1492_v17 = vmul.f32 %v1428_v40, %v1428_v40 }
 0x365   :  { %v1527_v62 = vadd.f32 %v1526_v24, %v1480_v16  ;;  %v1407_v24 = vsub.f32 %v3719_v11, %v3921_v1  ;;  %v1556_v26 = vadd.f32 %v1555_v2, %v1465_v50  ;;  %v1469_v52 = vmul.f32 %v1405_v59, %v1405_v59 }
 0x366   :  { %v1432_v2 = vsub.f32 %v3797_v56, %v3871_v9  ;;  %v1494_v55 = vmul.f32 %v1430_v43, %v1430_v43 }
 0x367   :  { %v1528_v35 = vadd.f32 %v1527_v62, %v1482_v63  ;;  %v1409_v62 = vsub.f32 %v3723_v22, %v3921_v1  ;;  %v1557_v32 = vadd.f32 %v1556_v26, %v1467_v23  ;;  %v1471_v60 = vmul.f32 %v1407_v24, %v1407_v24 }
 0x368   :  { %v1434_v26 = vsub.f32 %v3805_v58, %v3871_v9  ;;  %v1496_v40 = vmul.f32 %v1432_v2, %v1432_v2 }
 0x369   :  { %v1529_v16 = vadd.f32 %v1528_v35, %v1484_v12  ;;  %v1411_v35 = vsub.f32 %v3727_v15, %v3921_v1  ;;  %v1558_v50 = vadd.f32 %v1557_v32, %v1469_v52  ;;  %v1473_v59 = vmul.f32 %v1409_v62, %v1409_v62 }
 0x36a   :  { %v1436_v32 = vsub.f32 %v3813_v42, %v3871_v9  ;;  %v1498_v43 = vmul.f32 %v1434_v26, %v1434_v26 }
 0x36b   :  { %v1530_v63 = vadd.f32 %v1529_v16, %v1486_v38  ;;  %v4834_v16 = vld [vmem:[#allocation29_spill] sm:$0xff]  ;;  %v1559_v23 = vadd.f32 %v1558_v50, %v1471_v60  ;;  %v1475_v24 = vmul.f32 %v1411_v35, %v1411_v35  ;;  %v1438_v50 = vsub.f32 %v3821_v25, %v3871_v9 }
 0x36c   :  { %v1413_v20 = vsub.f32 %v4834_v16, %v3921_v1  ;;  %v1500_v2 = vmul.f32 %v1436_v32, %v1436_v32 }
 0x36d   :  { %v1531_v12 = vadd.f32 %v1530_v63, %v1488_v45  ;;  %v4835_v63 = vld [vmem:[#allocation35_spill] sm:$0xff]  ;;  %v1560_v52 = vadd.f32 %v1559_v23, %v1473_v59  ;;  %v4838_v23 = vld [vmem:[#allocation46_spill] sm:$0xff]  ;;  %v1502_v26 = vmul.f32 %v1438_v50, %v1438_v50 }
 0x36e   :  { %v1415_v4 = vsub.f32 %v4835_v63, %v3921_v1  ;;  %v1477_v62 = vmul.f32 %v1413_v20, %v1413_v20  ;;  %v1440_v19 = vsub.f32 %v4838_v23, %v3871_v9 }
 0x36f   :  { %v1532_v38 = vadd.f32 %v1531_v12, %v1490_v14  ;;  %v4836_v12 = vld [vmem:[#allocation31_spill] sm:$0xff]  ;;  %v1561_v60 = vadd.f32 %v1560_v52, %v1475_v24 }
 0x370   :  { %v1417_v16 = vsub.f32 %v4836_v12, %v3921_v1  ;;  %v1479_v35 = vmul.f32 %v1415_v4, %v1415_v4  ;;  %v4840_v52 = vld [vmem:[#allocation47_spill] sm:$0xff]  ;;  %v1504_v32 = vmul.f32 %v1440_v19, %v1440_v19  ;;  %v4845_v19 = vld [vmem:[#allocation12_spill] sm:$0xff] }
 0x371   :  { %v1533_v45 = vadd.f32 %v1532_v38, %v1492_v17  ;;  %v4837_v38 = vld [vmem:[#allocation34_spill] sm:$0xff]  ;;  %v1562_v59 = vadd.f32 %v1561_v60, %v1477_v62  ;;  %v1442_v15 = vsub.f32 %v4840_v52, %v3871_v9  ;;  %v4842_v60 = vld [vmem:[#allocation48_spill] sm:$0xff] }
 0x372   :  { %v1419_v63 = vsub.f32 %v4837_v38, %v3921_v1  ;;  %v1481_v20 = vmul.f32 %v1417_v16, %v1417_v16  ;;  %v1444_v22 = vsub.f32 %v4842_v60, %v3871_v9 }
 0x373   :  { %v1534_v14 = vadd.f32 %v1533_v45, %v1494_v55  ;;  %v4839_v45 = vld [vmem:[#allocation38_spill] sm:$0xff]  ;;  %v1563_v24 = vadd.f32 %v1562_v59, %v1479_v35  ;;  %v1446_v59 = vsub.f32 %v3853_v7, %v3871_v9  ;;  %v1506_v50 = vmul.f32 %v1442_v15, %v1442_v15 }
 0x374   :  { %v1421_v12 = vsub.f32 %v4839_v45, %v3921_v1  ;;  %v1483_v4 = vmul.f32 %v1419_v63, %v1419_v63 }
 0x375   :  { %v1535_v17 = vadd.f32 %v1534_v14, %v1496_v40  ;;  %v4841_v14 = vld [vmem:[#allocation40_spill] sm:$0xff]  ;;  %v1564_v62 = vadd.f32 %v1563_v24, %v1481_v20  ;;  %v1508_v24 = vmul.f32 %v1444_v22, %v1444_v22  ;;  %v1510_v47 = vmul.f32 %v1446_v59, %v1446_v59 }
 0x376   :  { %v1423_v38 = vsub.f32 %v4841_v14, %v3921_v1  ;;  %v1485_v16 = vmul.f32 %v1421_v12, %v1421_v12 }
 0x377   :  { %v1536_v55 = vadd.f32 %v1535_v17, %v1498_v43  ;;  %v4843_v17 = vld [vmem:[#allocation36_spill] sm:$0xff]  ;;  %v1565_v35 = vadd.f32 %v1564_v62, %v1483_v4  ;;  %v4846_v4 = vld [vmem:[#allocation14_spill] sm:$0xff] }
 0x378   :  { %v1425_v8 = vsub.f32 %v4843_v17, %v3921_v1  ;;  %v1487_v63 = vmul.f32 %v1423_v38, %v1423_v38  ;;  %v1431_v62 = vsub.f32 %v4846_v4, %v3921_v1 }
 0x379   :  { %v1537_v40 = vadd.f32 %v1536_v55, %v1500_v2  ;;  %v4844_v55 = vld [vmem:[#allocation39_spill] sm:$0xff]  ;;  %v1566_v20 = vadd.f32 %v1565_v35, %v1485_v16  ;;  %v4848_v35 = vld [vmem:[#allocation45_spill] sm:$0xff] }
 0x37a   :  { %v1427_v11 = vsub.f32 %v4844_v55, %v3921_v1 }
 0x37b   :  { %v1538_v43 = vadd.f32 %v1537_v40, %v1502_v26  ;;  %v1429_v26 = vsub.f32 %v4845_v19, %v3921_v1  ;;  %v1489_v40 = vmul.f32 %v1425_v8, %v1425_v8  ;;  %v1567_v18 = vadd.f32 %v1566_v20, %v1487_v63 }
 0x37c   :  { %v1491_v31 = vmul.f32 %v1427_v11, %v1427_v11 }
 0x37d   :  { %v1539_v2 = vadd.f32 %v1538_v43, %v1504_v32  ;;  %v1568_v15 = vadd.f32 %v1567_v18, %v1489_v40  ;;  %v4847_v43 = vld [vmem:[#allocation44_spill] sm:$0xff]  ;;  %v1493_v38 = vmul.f32 %v1429_v26, %v1429_v26 }
 0x37e   :  { %v1433_v46 = vsub.f32 %v4847_v43, %v3921_v1 }
 0x37f   :  { %v1540_v39 = vadd.f32 %v1539_v2, %v1506_v50  ;;  %v1569_v16 = vadd.f32 %v1568_v15, %v1491_v31  ;;  %v1435_v50 = vsub.f32 %v4848_v35, %v3921_v1  ;;  %v1495_v2 = vmul.f32 %v1431_v62, %v1431_v62 }
 0x380   :  { %v1497_v59 = vmul.f32 %v1433_v46, %v1433_v46  ;;  %v1441_v31 = vsub.f32 %v3833_v28, %v3921_v1  ;;  %v1443_v15 = vsub.f32 %v3841_v13, %v3921_v1 }
 0x381   :  { %v1541_v12 = vadd.f32 %v1540_v39, %v1508_v24  ;;  %v1570_v8 = vadd.f32 %v1569_v16, %v1493_v38  ;;  %v1437_v39 = vsub.f32 %v3817_v0, %v3921_v1  ;;  %v1499_v18 = vmul.f32 %v1435_v50, %v1435_v50 }
 0x382   :  { %v1445_v16 = vsub.f32 %v3849_v48, %v3921_v1 }
 0x383   :  { %v1542_v32 = vadd.f32 %v1541_v12, %v1510_v47  ;;  %v1571_v20 = vadd.f32 %v1570_v8, %v1495_v2  ;;  %v1439_v47 = vsub.f32 %v3825_v44, %v3921_v1  ;;  %v1501_v40 = vmul.f32 %v1437_v39, %v1437_v39 }
 0x384   :  { %v1447_v8 = vsub.f32 %v3861_v61, %v3921_v1 }
 0x385   :  { %v1543_v22 = vrot.slane %v1542_v32, 4  ;;  %v1572_v24 = vadd.f32 %v1571_v20, %v1497_v59  ;;  %v1509_v20 = vmul.f32 %v1445_v16, %v1445_v16 }
 0x387   :  { %v1544_v63 = vadd.f32 %v1543_v22, %v1542_v32  ;;  %v1573_v12 = vadd.f32 %v1572_v24, %v1499_v18  ;;  %v1503_v32 = vmul.f32 %v1439_v47, %v1439_v47  ;;  %v1505_v22 = vmul.f32 %v1441_v31, %v1441_v31  ;;  %v2763_v31 = vld [vmem:[#allocation5] sm:$0xff] }
 0x388   :  { %v1511_v18 = vmul.f32 %v1447_v8, %v1447_v8 }
 0x389   :  { %v1545_v11 = vrot.slane %v1544_v63, 2  ;;  %v1574_v38 = vadd.f32 %v1573_v12, %v1501_v40 }
 0x38b   :  { %v1546_v26 = vadd.f32 %v1545_v11, %v1544_v63  ;;  %v1575_v2 = vadd.f32 %v1574_v38, %v1503_v32  ;;  %v1507_v63 = vmul.f32 %v1443_v15, %v1443_v15  ;;  %v4849_v38 = vld [vmem:[#allocation17_spill] sm:$0xff] }
 0x38d   :  { %v1547_v62 = vrot.slane %v1546_v26, 1  ;;  %v1576_v59 = vadd.f32 %v1575_v2, %v1505_v22  ;;  %v1678_v2 = vsub.s32 3, %v4849_v38 }
 0x38f   :  { %v1548_v46 = vadd.f32 %v1547_v62, %v1546_v26  ;;  %v1577_v11 = vadd.f32 %v1576_v59, %v1507_v63 }
 0x391   :  { %v1586_v50 = vmul.f32 0.00390625, %v1548_v46  ;;  %v1578_v24 = vadd.f32 %v1577_v11, %v1509_v20  ;;  %v1606_v46 = vsub.s32 2, %v4849_v38 }
 0x393   :  { %v1588_v39 = vadd.f32 1e-05, %v1586_v50  ;;  %v1579_v47 = vadd.f32 %v1578_v24, %v1511_v18 }
 0x395   :  { %2757 = vrsqrt.f32 %v1588_v39  ;;  %v1580_v40 = vrot.slane %v1579_v47, 4 }
 0x397   :  { %v1581_v26 = vadd.f32 %v1580_v40, %v1579_v47 }
 0x399   :  { %v1582_v12 = vrot.slane %v1581_v26, 2 }
 0x39b   :  { %v1583_v62 = vadd.f32 %v1582_v12, %v1581_v26 }
 0x39d   :  { %v1584_v37 = vrot.slane %v1583_v62, 1 }
 0x39f   :  { %v1585_v50 = vadd.f32 %v1584_v37, %v1583_v62 }
 0x3a1   :  { %v1587_v59 = vmul.f32 0.00390625, %v1585_v50 }
 0x3a2   :  { %v2758_v33 = vpop.eup %2757 }
 0x3a3   :  { %v1592_v32 = vmul.f32 %v2763_v31, %v2758_v33  ;;  %v1589_v11 = vadd.f32 1e-05, %v1587_v59 }
 0x3a5   :  { %v1594_v15 = vmul.f32 %v1592_v32, %v3871_v9  ;;  %v4049_v16 = vrot.slane %v1592_v32, %v1606_v46  ;;  %2759 = vrsqrt.f32 %v1589_v11 }
 0x3a7   :  { %v1598_v22 = vrot.slane %v1594_v15, 7  ;;  %v1674_v63 = vmul.f32 %v4049_v16, %v3853_v7  ;;  %v1644_v9 = vmul.f32 %v4049_v16, %v3737_v54  ;;  %v1646_v20 = vmul.f32 %v4049_v16, %v3744_v34 }
 0x3a8   :  { %v1648_v37 = vmul.f32 %v4049_v16, %v3750_v49  ;;  %v1650_v7 = vmul.f32 %v4049_v16, %v3756_v53  ;;  %v1652_v18 = vmul.f32 %v4049_v16, %v3765_v29  ;;  %v1654_v24 = vmul.f32 %v4049_v16, %v3773_v57 }
 0x3a9   :  { %v1602_v8 = vsub.f32 %v2763_v31, %v1598_v22  ;;  %v1656_v47 = vmul.f32 %v4049_v16, %v3781_v6  ;;  %v1658_v54 = vmul.f32 %v4049_v16, %v3789_v27  ;;  %v1660_v34 = vmul.f32 %v4049_v16, %v3797_v56 }
 0x3aa   :  { %v1662_v49 = vmul.f32 %v4049_v16, %v3805_v58  ;;  %v1664_v53 = vmul.f32 %v4049_v16, %v3813_v42  ;;  %v1666_v29 = vmul.f32 %v4049_v16, %v3821_v25  ;;  %v1668_v57 = vmul.f32 %v4049_v16, %v4838_v23 }
 0x3ab   :  { %v4056_v33 = vrot.slane %v1602_v8, %v1678_v2  ;;  %v1670_v6 = vmul.f32 %v4049_v16, %v4840_v52  ;;  %v1672_v27 = vmul.f32 %v4049_v16, %v4842_v60 }
 0x3ad   :  { %v4059_v39 = vadd.f32 %v4056_v33, %v1674_v63  ;;  %v1716_v56 = vadd.f32 %v4056_v33, %v1644_v9  ;;  %v1718_v40 = vadd.f32 %v4056_v33, %v1646_v20  ;;  %v1720_v58 = vadd.f32 %v4056_v33, %v1648_v37 }
 0x3ae   :  { %v1722_v42 = vadd.f32 %v4056_v33, %v1650_v7  ;;  %v1724_v26 = vadd.f32 %v4056_v33, %v1652_v18  ;;  %v1726_v25 = vadd.f32 %v4056_v33, %v1654_v24  ;;  %v1728_v23 = vadd.f32 %v4056_v33, %v1656_v47  ;;  %v2764_v7 = vld [vmem:[#allocation5 + $0x8] sm:$0xff] }
 0x3af   :  { %v1730_v12 = vadd.f32 %v4056_v33, %v1658_v54  ;;  %v1732_v52 = vadd.f32 %v4056_v33, %v1660_v34  ;;  %v1734_v60 = vadd.f32 %v4056_v33, %v1662_v49  ;;  %v4102_v62 = vadd.f32 %v4056_v33, %v1664_v53 }
 0x3b0   :  { %v4105_v31 = vadd.f32 %v4056_v33, %v1666_v29  ;;  %v4108_v32 = vadd.f32 %v4056_v33, %v1668_v57  ;;  %v4111_v15 = vadd.f32 %v4056_v33, %v1670_v6  ;;  %v4114_v22 = vadd.f32 %v4056_v33, %v1672_v27 }
 0x3b1   :  { %v1780_v50 = vmax.f32 %v1716_v56, 0.0  ;;  %v1782_v8 = vmax.f32 %v1718_v40, 0.0  ;;  %v1784_v63 = vmax.f32 %v1720_v58, 0.0  ;;  %v1786_v59 = vmax.f32 %v1722_v42, 0.0  ;;  %v4850_v42 = vld [vmem:[#allocation22_spill] sm:$0xff] }
 0x3b2   :  { %v2760_v9 = vpop.eup %2759  ;;  %v1788_v20 = vmax.f32 %v1724_v26, 0.0  ;;  %v1790_v11 = vmax.f32 %v1726_v25, 0.0  ;;  %v1792_v37 = vmax.f32 %v1728_v23, 0.0  ;;  %v1794_v54 = vmax.f32 %v1730_v12, 0.0  ;;  %v4851_v25 = vld [vmem:[#allocation27_spill] sm:$0xff] }
 0x3b3   :  { %v1593_v18 = vmul.f32 %v2764_v7, %v2760_v9  ;;  %v4116_v24 = vpack.c.bf16 %v1782_v8, %v1780_v50  ;;  %v4118_v47 = vpack.c.bf16 %v1786_v59, %v1784_v63  ;;  %v1796_v49 = vmax.f32 %v1732_v52, 0.0  ;;  %v4852_v63 = vld [vmem:[#allocation32_spill] sm:$0xff] }
 0x3b4   :  { %v4120_v34 = vpack.c.bf16 %v1790_v11, %v1788_v20  ;;  %v1798_v53 = vmax.f32 %v1734_v60, 0.0  ;;  %v4123_v57 = vpack.c.bf16 %v1794_v54, %v1792_v37  ;;  %v1612_v40 = vmul.f32 %v4049_v16, %v3673_v41 }
 0x3b5   :  { %v1595_v29 = vmul.f32 %v1593_v18, %v3921_v1  ;;  %v4129_v56 = vrot.slane %v1593_v18, %v1606_v46  ;;  %v1614_v58 = vmul.f32 %v4049_v16, %v3677_v3  ;;  %v1616_v26 = vmul.f32 %v4049_v16, %v4850_v42 }
 0x3b6   :  { %v4125_v6 = vpack.c.bf16 %v1798_v53, %v1796_v49  ;;  %v1618_v1 = vmul.f32 %v4049_v16, %v4851_v25  ;;  %v1684_v12 = vadd.f32 %v4056_v33, %v1612_v40  ;;  %v1620_v8 = vmul.f32 %v4049_v16, %v3689_v51 }
 0x3b7   :  { %v1599_v27 = vrot.slane %v1595_v29, 7  ;;  %v1686_v52 = vadd.f32 %v4056_v33, %v1614_v58  ;;  %v1675_v46 = vmul.f32 %v4129_v56, %v3861_v61  ;;  %v1688_v3 = vadd.f32 %v4056_v33, %v1616_v26 }
 0x3b8   :  { %v1690_v60 = vadd.f32 %v4056_v33, %v1618_v1  ;;  %v1622_v59 = vmul.f32 %v4049_v16, %v4852_v63  ;;  %v1748_v9 = vmax.f32 %v1684_v12, 0.0  ;;  %v1613_v61 = vmul.f32 %v4129_v56, %v3675_v36  ;;  %v4853_v63 = vld [vmem:[#allocation37_spill] sm:$0xff] }
 0x3b9   :  { %v1603_v23 = vsub.f32 %v2764_v7, %v1599_v27  ;;  %v1750_v20 = vmax.f32 %v1686_v52, 0.0  ;;  %v1752_v11 = vmax.f32 %v1688_v3, 0.0  ;;  %v1617_v7 = vmul.f32 %v4129_v56, %v3683_v30 }
 0x3ba   :  { %v1754_v37 = vmax.f32 %v1690_v60, 0.0  ;;  %v1619_v18 = vmul.f32 %v4129_v56, %v3687_v21  ;;  %v1649_v51 = vmul.f32 %v4129_v56, %v4839_v45  ;;  %v1651_v54 = vmul.f32 %v4129_v56, %v4841_v14 }
 0x3bb   :  { %v4145_v41 = vrot.slane %v1603_v23, %v1678_v2  ;;  %v1615_v2 = vmul.f32 %v4129_v56, %v3679_v10  ;;  %v1653_v36 = vmul.f32 %v4129_v56, %v4843_v17  ;;  %v1655_v10 = vmul.f32 %v4129_v56, %v4844_v55 }
 0x3bc   :  { %v1657_v49 = vmul.f32 %v4129_v56, %v4845_v19  ;;  %v1659_v30 = vmul.f32 %v4129_v56, %v4846_v4  ;;  %v1661_v21 = vmul.f32 %v4129_v56, %v4847_v43  ;;  %v1663_v45 = vmul.f32 %v4129_v56, %v4848_v35 }
 0x3bd   :  { %v4150_v50 = vadd.f32 %v4145_v41, %v1675_v46  ;;  %v1665_v14 = vmul.f32 %v4129_v56, %v3817_v0  ;;  %v1667_v17 = vmul.f32 %v4129_v56, %v3825_v44  ;;  %v1669_v55 = vmul.f32 %v4129_v56, %v3833_v28 }
 0x3be   :  { %v1671_v19 = vmul.f32 %v4129_v56, %v3841_v13  ;;  %v1673_v4 = vmul.f32 %v4129_v56, %v3849_v48  ;;  %v1685_v43 = vadd.f32 %v4145_v41, %v1613_v61  ;;  %v1687_v53 = vadd.f32 %v4145_v41, %v1615_v2 }
 0x3bf   :  { %v1689_v35 = vadd.f32 %v4145_v41, %v1617_v7  ;;  %v1691_v0 = vadd.f32 %v4145_v41, %v1619_v18  ;;  %v1721_v29 = vadd.f32 %v4145_v41, %v1649_v51  ;;  %v1723_v44 = vadd.f32 %v4145_v41, %v1651_v54 }
 0x3c0   :  { %v1725_v28 = vadd.f32 %v4145_v41, %v1653_v36  ;;  %v1727_v27 = vadd.f32 %v4145_v41, %v1655_v10  ;;  %v1729_v13 = vadd.f32 %v4145_v41, %v1657_v49  ;;  %v1731_v48 = vadd.f32 %v4145_v41, %v1659_v30 }
 0x3c1   :  { %v1733_v40 = vadd.f32 %v4145_v41, %v1661_v21  ;;  %v1735_v58 = vadd.f32 %v4145_v41, %v1663_v45  ;;  %v1737_v42 = vadd.f32 %v4145_v41, %v1665_v14  ;;  %v1739_v26 = vadd.f32 %v4145_v41, %v1667_v17  ;;  %v4854_v45 = vld [vmem:[#allocation42_spill] sm:$0xff]  ;;  %v4855_v14 = vld [vmem:[#allocation11_spill] sm:$0xff] }
 0x3c2   :  { %v1741_v25 = vadd.f32 %v4145_v41, %v1669_v55  ;;  %v1743_v1 = vadd.f32 %v4145_v41, %v1671_v19  ;;  %v1745_v23 = vadd.f32 %v4145_v41, %v1673_v4  ;;  %v1749_v12 = vmax.f32 %v1685_v43, 0.0 }
 0x3c3   :  { %v1751_v52 = vmax.f32 %v1687_v53, 0.0  ;;  %v1753_v46 = vmax.f32 %v1689_v35, 0.0  ;;  %v1755_v3 = vmax.f32 %v1691_v0, 0.0  ;;  %v1621_v60 = vmul.f32 %v4129_v56, %v3691_v5 }
 0x3c4   :  { %v1623_v61 = vmul.f32 %v4129_v56, %v4853_v63  ;;  %v1692_v2 = vadd.f32 %v4056_v33, %v1620_v8  ;;  %v1694_v7 = vadd.f32 %v4056_v33, %v1622_v59  ;;  %v1812_v36 = vpack.c.bf16 %v1750_v20, %v1748_v9 }
 0x3c5   :  { %v1813_v18 = vpack.c.bf16 %v1751_v52, %v1749_v12  ;;  %v1693_v51 = vadd.f32 %v4145_v41, %v1621_v60  ;;  %v1814_v10 = vpack.c.bf16 %v1754_v37, %v1752_v11  ;;  %v1815_v49 = vpack.c.bf16 %v1755_v3, %v1753_v46 }
 0x3c6   :  { %v1695_v54 = vadd.f32 %v4145_v41, %v1623_v61  ;;  %v1800_v30 = vmax.f32 %v4102_v62, 0.0  ;;  %v1802_v5 = vmax.f32 %v4105_v31, 0.0  ;;  %v1804_v21 = vmax.f32 %v4108_v32, 0.0  ;;  %v4857_v61 = vld [vmem:[#allocation43_spill] sm:$0xff] }
 0x3c7   :  { %2004 = vmatprep.mubr.bf16.mxu0 %v1813_v18  ;;  %v1625_v8 = vmul.f32 %v4129_v56, %v4854_v45  ;;  %v1627_v59 = vmul.f32 %v4129_v56, %v4855_v14  ;;  %v1806_v17 = vmax.f32 %v4111_v15, 0.0  ;;  %v1808_v9 = vmax.f32 %v4114_v22, 0.0 }
 0x3c8   :  { %2005 = vmatmul.mubr.bf16.vlgmr.msra.gmra.mxu0 %v1812_v36  ;;  %v1811_v20 = vmax.f32 %v4150_v50, 0.0  ;;  %v1785_v11 = vmax.f32 %v1721_v29, 0.0  ;;  %v1787_v62 = vmax.f32 %v1723_v44, 0.0  ;;  %v1789_v37 = vmax.f32 %v1725_v28, 0.0  ;;  %v4859_v36 = vld [vmem:[#allocation18_spill] sm:$0xff] }
 0x3c9   :  { %2012 = vmatprep.mubr.bf16.mxu0 %v1815_v49  ;;  %v1757_v31 = vmax.f32 %v1693_v51, 0.0  ;;  %v1759_v55 = vmax.f32 %v1695_v54, 0.0  ;;  %v1791_v32 = vmax.f32 %v1727_v27, 0.0  ;;  %v1793_v19 = vmax.f32 %v1729_v13, 0.0  ;;  %v4858_v51 = vld [vmem:[#allocation15_spill] sm:$0xff] }
 0x3ca   :  { %v4225_v4 = vpack.c.bf16 %v1787_v62, %v1785_v11  ;;  %v1795_v43 = vmax.f32 %v1731_v48, 0.0  ;;  %v1797_v53 = vmax.f32 %v1733_v40, 0.0  ;;  %v1799_v35 = vmax.f32 %v1735_v58, 0.0  ;;  %v4862_v62 = vld [vmem:[#allocation20_spill] sm:$0xff] }
 0x3cb   :  { %v4227_v0 = vpack.c.bf16 %v1791_v32, %v1789_v37  ;;  %v1801_v15 = vmax.f32 %v1737_v42, 0.0  ;;  %v1803_v12 = vmax.f32 %v1739_v26, 0.0  ;;  %v4229_v22 = vpack.c.bf16 %v1802_v5, %v1800_v30 }
 0x3cc   :  { %v4231_v50 = vpack.c.bf16 %v1795_v43, %v1793_v19  ;;  %v4233_v29 = vpack.c.bf16 %v1799_v35, %v1797_v53  ;;  %v1805_v44 = vmax.f32 %v1741_v25, 0.0  ;;  %v1807_v28 = vmax.f32 %v1743_v1, 0.0 }
 0x3cd   :  { %v4235_v52 = vpack.c.bf16 %v1803_v12, %v1801_v15  ;;  %v4237_v27 = vpack.c.bf16 %v1806_v17, %v1804_v21  ;;  %v1809_v13 = vmax.f32 %v1745_v23, 0.0  ;;  %v1810_v48 = vmax.f32 %v4059_v39, 0.0  ;;  %v4856_v23 = vld [vmem:[#allocation41_spill] sm:$0xff] }
 0x3ce   :  { %v1697_v40 = vadd.f32 %v4145_v41, %v1625_v8  ;;  %v1699_v58 = vadd.f32 %v4145_v41, %v1627_v59  ;;  %v1817_v42 = vpack.c.bf16 %v1759_v55, %v1757_v31  ;;  %v4242_v26 = vpack.c.bf16 %v1807_v28, %v1805_v44  ;;  %v4860_v17 = vld [vmem:[#allocation13_spill] sm:$0xff] }
 0x3cf   :  { %v4244_v46 = vpack.c.bf16 %v1811_v20, %v1809_v13  ;;  %v4246_v3 = vpack.c.bf16 %v1810_v48, %v1808_v9  ;;  %v1756_v25 = vmax.f32 %v1692_v2, 0.0  ;;  %v1758_v1 = vmax.f32 %v1694_v7, 0.0  ;;  %v4861_v20 = vld [vmem:[#allocation16_spill] sm:$0xff]  ;;  %v4863_v31 = vld [vmem:[#allocation25_spill] sm:$0xff]  ;;  %v4864_v48 = vld [vmem:[#allocation19_spill] sm:$0xff] }
 0x3d0   :  { %2013 = vmatmul.mubr.bf16.gmra.mxu0 %v1814_v10  ;;  %v1761_v60 = vmax.f32 %v1697_v40, 0.0  ;;  %v1763_v63 = vmax.f32 %v1699_v58, 0.0  ;;  %v1624_v39 = vmul.f32 %v4049_v16, %v4856_v23  ;;  %v1626_v18 = vmul.f32 %v4049_v16, %v4857_v61  ;;  %v4865_v58 = vld [vmem:[#allocation23_spill] sm:$0xff] }
 0x3d1   :  { %2020 = vmatprep.mubr.bf16.mxu0 %v1817_v42  ;;  %v1629_v54 = vmul.f32 %v4129_v56, %v4858_v51  ;;  %v1631_v10 = vmul.f32 %v4129_v56, %v4859_v36  ;;  %v1816_v2 = vpack.c.bf16 %v1758_v1, %v1756_v25  ;;  %v1628_v9 = vmul.f32 %v4049_v16, %v4860_v17  ;;  %v4866_v25 = vld [vmem:[#allocation24_spill] sm:$0xff] }
 0x3d2   :  { %v1696_v49 = vadd.f32 %v4056_v33, %v1624_v39  ;;  %v1698_v30 = vadd.f32 %v4056_v33, %v1626_v18  ;;  %v1819_v21 = vpack.c.bf16 %v1763_v63, %v1761_v60  ;;  %v1630_v11 = vmul.f32 %v4049_v16, %v4861_v20  ;;  %v4867_v60 = vld [vmem:[#allocation30_spill] sm:$0xff] }
 0x3d3   :  { %v1701_v7 = vadd.f32 %v4145_v41, %v1629_v54  ;;  %v1703_v5 = vadd.f32 %v4145_v41, %v1631_v10  ;;  %v1633_v37 = vmul.f32 %v4129_v56, %v4862_v62  ;;  %v1635_v55 = vmul.f32 %v4129_v56, %v4863_v31 }
 0x3d4   :  { %v1760_v45 = vmax.f32 %v1696_v49, 0.0  ;;  %v1762_v8 = vmax.f32 %v1698_v30, 0.0  ;;  %v1700_v32 = vadd.f32 %v4056_v33, %v1628_v9  ;;  %v1702_v19 = vadd.f32 %v4056_v33, %v1630_v11 }
 0x3d5   :  { %v1765_v14 = vmax.f32 %v1701_v7, 0.0  ;;  %v1767_v59 = vmax.f32 %v1703_v5, 0.0  ;;  %v1705_v53 = vadd.f32 %v4145_v41, %v1633_v37  ;;  %v1707_v35 = vadd.f32 %v4145_v41, %v1635_v55  ;;  %v4869_v5 = vld [vmem:[#allocation28_spill] sm:$0xff] }
 0x3d6   :  { %v1818_v43 = vpack.c.bf16 %v1762_v8, %v1760_v45  ;;  %v1764_v12 = vmax.f32 %v1700_v32, 0.0  ;;  %v1766_v44 = vmax.f32 %v1702_v19, 0.0  ;;  %v1632_v40 = vmul.f32 %v4049_v16, %v4864_v48  ;;  %v4870_v45 = vld [vmem:[#allocation29_spill] sm:$0xff] }
 0x3d7   :  { %v1821_v15 = vpack.c.bf16 %v1767_v59, %v1765_v14  ;;  %v1769_v28 = vmax.f32 %v1705_v53, 0.0  ;;  %v1771_v13 = vmax.f32 %v1707_v35, 0.0  ;;  %v1634_v42 = vmul.f32 %v4049_v16, %v4865_v58  ;;  %v4871_v14 = vld [vmem:[#allocation35_spill] sm:$0xff]  ;;  %v4873_v35 = vld [vmem:[#allocation33_spill] sm:$0xff] }
 0x3d8   :  { %2021 = vmatmul.mubr.bf16.gmra.mxu0 %v1816_v2  ;;  %v1637_v1 = vmul.f32 %v4129_v56, %v4866_v25  ;;  %v1639_v63 = vmul.f32 %v4129_v56, %v4867_v60  ;;  %v1704_v23 = vadd.f32 %v4056_v33, %v1632_v40  ;;  %v1820_v61 = vpack.c.bf16 %v1766_v44, %v1764_v12  ;;  %v4868_v2 = vld [vmem:[#allocation21_spill] sm:$0xff]  ;;  %v4874_v12 = vld [vmem:[#allocation31_spill] sm:$0xff] }
 0x3d9   :  { %2028 = vmatprep.mubr.bf16.mxu0 %v1819_v21  ;;  %v1706_v39 = vadd.f32 %v4056_v33, %v1634_v42  ;;  %v1823_v54 = vpack.c.bf16 %v1771_v13, %v1769_v28  ;;  %v1636_v7 = vmul.f32 %v4049_v16, %v4868_v2  ;;  %v1638_v21 = vmul.f32 %v4049_v16, %v4869_v5  ;;  %v4875_v28 = vld [vmem:[#allocation34_spill] sm:$0xff] }
 0x3da   :  { %v1709_v18 = vadd.f32 %v4145_v41, %v1637_v1  ;;  %v1711_v51 = vadd.f32 %v4145_v41, %v1639_v63  ;;  %v1768_v36 = vmax.f32 %v1704_v23, 0.0  ;;  %v1641_v8 = vmul.f32 %v4129_v56, %v4870_v45 }
 0x3db   :  { %v1770_v10 = vmax.f32 %v1706_v39, 0.0  ;;  %v1643_v59 = vmul.f32 %v4129_v56, %v4871_v14  ;;  %v1708_v17 = vadd.f32 %v4056_v33, %v1636_v7  ;;  %v1710_v9 = vadd.f32 %v4056_v33, %v1638_v21 }
 0x3dc   :  { %v1773_v49 = vmax.f32 %v1709_v18, 0.0  ;;  %v1775_v30 = vmax.f32 %v1711_v51, 0.0  ;;  %v1713_v11 = vadd.f32 %v4145_v41, %v1641_v8  ;;  %v1645_v44 = vmul.f32 %v4129_v56, %v4874_v12 }
 0x3dd   :  { %v1822_v20 = vpack.c.bf16 %v1770_v10, %v1768_v36  ;;  %v1715_v62 = vadd.f32 %v4145_v41, %v1643_v59  ;;  %v1772_v31 = vmax.f32 %v1708_v17, 0.0  ;;  %v1774_v55 = vmax.f32 %v1710_v9, 0.0 }
 0x3de   :  { %v1825_v37 = vpack.c.bf16 %v1775_v30, %v1773_v49  ;;  %v1777_v32 = vmax.f32 %v1713_v11, 0.0  ;;  %v1647_v13 = vmul.f32 %v4129_v56, %v4875_v28  ;;  %v1717_v42 = vadd.f32 %v4145_v41, %v1645_v44 }
 0x3df   :  { %v1779_v19 = vmax.f32 %v1715_v62, 0.0  ;;  %v1824_v58 = vpack.c.bf16 %v1774_v55, %v1772_v31 }
 0x3e0   :  { %2029 = vmatmul.mubr.bf16.gmra.mxu0 %v1818_v43  ;;  %v4872_v43 = vld [vmem:[#allocation26_spill] sm:$0xff]  ;;  %v1719_v25 = vadd.f32 %v4145_v41, %v1647_v13  ;;  %v1781_v63 = vmax.f32 %v1717_v42, 0.0 }
 0x3e1   :  { %2036 = vmatprep.mubr.bf16.mxu0 %v1821_v15  ;;  %v1640_v53 = vmul.f32 %v4049_v16, %v4872_v43  ;;  %v1642_v15 = vmul.f32 %v4049_v16, %v4873_v35  ;;  %v1827_v1 = vpack.c.bf16 %v1779_v19, %v1777_v32 }
 0x3e2   :  { %v1783_v23 = vmax.f32 %v1719_v25, 0.0 }
 0x3e3   :  { %v1712_v48 = vadd.f32 %v4056_v33, %v1640_v53  ;;  %v1714_v40 = vadd.f32 %v4056_v33, %v1642_v15 }
 0x3e5   :  { %v1776_v60 = vmax.f32 %v1712_v48, 0.0  ;;  %v1778_v16 = vmax.f32 %v1714_v40, 0.0 }
 0x3e7   :  { %v1826_v39 = vpack.c.bf16 %v1778_v16, %v1776_v60 }
 0x3e8   :  { %2037 = vmatmul.mubr.bf16.gmra.mxu0 %v1820_v61  ;;  %v1829_v61 = vpack.c.bf16 %v1783_v23, %v1781_v63 }
 0x3e9   :  { %2044 = vmatprep.mubr.bf16.mxu0 %v1823_v54 }
 0x3f0   :  { %2045 = vmatmul.mubr.bf16.gmra.mxu0 %v1822_v20 }
 0x3f1   :  { %2052 = vmatprep.mubr.bf16.mxu0 %v1825_v37 }
 0x3f8   :  { %2053 = vmatmul.mubr.bf16.gmra.mxu0 %v1824_v58 }
 0x3f9   :  { %2060 = vmatprep.mubr.bf16.mxu0 %v1827_v1 }
 0x400   :  { %2061 = vmatmul.mubr.bf16.gmra.mxu0 %v1826_v39 }
 0x401   :  { %2068 = vmatprep.mubr.bf16.mxu0 %v1829_v61 }
 0x408   :  { %2069 = vmatmul.mubr.bf16.gmra.mxu0 %v4116_v24 }
 0x409   :  { %2076 = vmatprep.mubr.bf16.mxu0 %v4225_v4 }
 0x410   :  { %2077 = vmatmul.mubr.bf16.gmra.mxu0 %v4118_v47 }
 0x411   :  { %2084 = vmatprep.mubr.bf16.mxu0 %v4227_v0 }
 0x418   :  { %2085 = vmatmul.mubr.bf16.gmra.mxu0 %v4120_v34 }
 0x419   :  { %2092 = vmatprep.mubr.bf16.mxu0 %v4231_v50 }
 0x420   :  { %2093 = vmatmul.mubr.bf16.gmra.mxu0 %v4123_v57 }
 0x421   :  { %2100 = vmatprep.mubr.bf16.mxu0 %v4233_v29 }
 0x428   :  { %2101 = vmatmul.mubr.bf16.gmra.mxu0 %v4125_v6 }
 0x429   :  { %2108 = vmatprep.mubr.bf16.mxu0 %v4235_v52 }
 0x430   :  { %2109 = vmatmul.mubr.bf16.gmra.mxu0 %v4229_v22 }
 0x431   :  { %2116 = vmatprep.mubr.bf16.mxu0 %v4242_v26 }
 0x438   :  { %2117 = vmatmul.mubr.bf16.gmra.mxu0 %v4237_v27 }
 0x439   :  { %2124 = vmatprep.mubr.bf16.mxu0 %v4244_v46 }
 0x440   :  { %2125 = vmatmul.mubr.bf16.gmra.mxu0 %v4246_v3 }
 0x488   :  { %v2547_v33 = vpop.f32.mrf.mxu0 }
 0x48a   :  { %v2548_v24 = vpop.f32.mrf.mxu0 }
 0x48b   :  { %v4323_v47 = vadd.f32 %v2548_v24, %v2547_v33 }
 0x48c   :  { %v2550_v34 = vpop.f32.mrf.mxu0 }
 0x48e   :  { %v2551_v57 = vpop.f32.mrf.mxu0 }
 0x48f   :  { %v4325_v9 = vadd.f32 %v2551_v57, %v2550_v34 }
 0x490   :  { %v2553_v56 = vpop.f32.mrf.mxu0 }
 0x491   :  { %v2133_v37 = vadd.f32 %v4325_v9, %v4323_v47 }
 0x492   :  { %v2554_v6 = vpop.f32.mrf.mxu0 }
 0x493   :  { %v4327_v11 = vadd.f32 %v2554_v6, %v2553_v56 }
 0x494   :  { %v2556_v41 = vpop.f32.mrf.mxu0 }
 0x495   :  { %v2134_v32 = vadd.f32 %v4327_v11, %v2133_v37 }
 0x496   :  { %v2557_v4 = vpop.f32.mrf.mxu0 }
 0x497   :  { %v4331_v31 = vadd.f32 %v2557_v4, %v2556_v41 }
 0x498   :  { %v2559_v0 = vpop.f32.mrf.mxu0 }
 0x499   :  { %v2135_v53 = vadd.f32 %v4331_v31, %v2134_v32 }
 0x49a   :  { %v2560_v22 = vpop.f32.mrf.mxu0 }
 0x49b   :  { %v4334_v19 = vadd.f32 %v2560_v22, %v2559_v0 }
 0x49c   :  { %v2562_v50 = vpop.f32.mrf.mxu0 }
 0x49d   :  { %v2136_v12 = vadd.f32 %v4334_v19, %v2135_v53 }
 0x49e   :  { %v2563_v29 = vpop.f32.mrf.mxu0 }
 0x49f   :  { %v4337_v35 = vadd.f32 %v2563_v29, %v2562_v50 }
 0x4a0   :  { %v2565_v52 = vpop.f32.mrf.mxu0 }
 0x4a1   :  { %v2137_v13 = vadd.f32 %v4337_v35, %v2136_v12 }
 0x4a2   :  { %v2566_v27 = vpop.f32.mrf.mxu0 }
 0x4a3   :  { %v4340_v44 = vadd.f32 %v2566_v27, %v2565_v52 }
 0x4a4   :  { %v2568_v26 = vpop.f32.mrf.mxu0 }
 0x4a5   :  { %v2138_v58 = vadd.f32 %v4340_v44, %v2137_v13 }
 0x4a6   :  { %v2569_v46 = vpop.f32.mrf.mxu0 }
 0x4a7   :  { %v4343_v48 = vadd.f32 %v2569_v46, %v2568_v26 }
 0x4a8   :  { %v2571_v18 = vpop.f32.mrf.mxu0 }
 0x4a9   :  { %v2139_v1 = vadd.f32 %v4343_v48, %v2138_v58 }
 0x4aa   :  { %v2572_v3 = vpop.f32.mrf.mxu0 }
 0x4ab   :  { %v4346_v42 = vadd.f32 %v2572_v3, %v2571_v18 }
 0x4ac   :  { %v2574_v51 = vpop.f32.mrf.mxu0 }
 0x4ad   :  { %v2140_v63 = vadd.f32 %v4346_v42, %v2139_v1 }
 0x4ae   :  { %v2575_v54 = vpop.f32.mrf.mxu0 }
 0x4af   :  { %v4349_v60 = vadd.f32 %v2575_v54, %v2574_v51 }
 0x4b0   :  { %v2577_v36 = vpop.f32.mrf.mxu0 }
 0x4b1   :  { %v2141_v61 = vadd.f32 %v4349_v60, %v2140_v63 }
 0x4b2   :  { %v2578_v10 = vpop.f32.mrf.mxu0 }
 0x4b3   :  { %v4352_v23 = vadd.f32 %v2578_v10, %v2577_v36 }
 0x4b4   :  { %v2580_v49 = vpop.f32.mrf.mxu0 }
 0x4b5   :  { %v2142_v34 = vadd.f32 %v4352_v23, %v2141_v61 }
 0x4b6   :  { %v2581_v30 = vpop.f32.mrf.mxu0 }
 0x4b7   :  { %v4355_v33 = vadd.f32 %v2581_v30, %v2580_v49 }
 0x4b8   :  { %v2583_v2 = vpop.f32.mrf.mxu0 }
 0x4b9   :  { %v2143_v6 = vadd.f32 %v4355_v33, %v2142_v34 }
 0x4ba   :  { %v2584_v7 = vpop.f32.mrf.mxu0 }
 0x4bb   :  { %v4358_v57 = vadd.f32 %v2584_v7, %v2583_v2 }
 0x4bc   :  { %v2586_v5 = vpop.f32.mrf.mxu0 }
 0x4bd   :  { %v2144_v0 = vadd.f32 %v4358_v57, %v2143_v6 }
 0x4be   :  { %v2587_v21 = vpop.f32.mrf.mxu0 }
 0x4bf   :  { %v4361_v41 = vadd.f32 %v2587_v21, %v2586_v5 }
 0x4c0   :  { %v2589_v45 = vpop.f32.mrf.mxu0 }
 0x4c1   :  { %v2145_v29 = vadd.f32 %v4361_v41, %v2144_v0 }
 0x4c2   :  { %v2590_v8 = vpop.f32.mrf.mxu0 }
 0x4c3   :  { %v4364_v22 = vadd.f32 %v2590_v8, %v2589_v45 }
 0x4c4   :  { %v2592_v14 = vpop.f32.mrf.mxu0 }
 0x4c5   :  { %v2146_v26 = vadd.f32 %v4364_v22, %v2145_v29 }
 0x4c6   :  { %v2593_v59 = vpop.f32.mrf.mxu0 }
 0x4c7   :  { %v4367_v52 = vadd.f32 %v2593_v59, %v2592_v14 }
 0x4c8   :  { %v2595_v17 = vpop.f32.mrf.mxu0 }
 0x4c9   :  { %v2147_v3 = vadd.f32 %v4367_v52, %v2146_v26 }
 0x4ca   :  { %v2596_v20 = vpop.f32.mrf.mxu0 }
 0x4cb   :  { %v4370_v46 = vadd.f32 %v2596_v20, %v2595_v17 }
 0x4cc   :  { %v2598_v62 = vpop.f32.mrf.mxu0 }
 0x4cd   :  { %v2148_v36 = vadd.f32 %v4370_v46, %v2147_v3 }
 0x4ce   :  { %v2599_v55 = vpop.f32.mrf.mxu0 }
 0x4cf   :  { %v4373_v51 = vadd.f32 %v2599_v55, %v2598_v62 }
 0x4d0   :  { %v2601_v43 = vpop.f32.mrf.mxu0 }
 0x4d1   :  { %v2149_v30 = vadd.f32 %v4373_v51, %v2148_v36 }
 0x4d2   :  { %v2602_v15 = vpop.f32.mrf.mxu0 }
 0x4d3   :  { %v4376_v10 = vadd.f32 %v2602_v15, %v2601_v43 }
 0x4d4   :  { %v2604_v28 = vpop.f32.mrf.mxu0 }
 0x4d5   :  { %v2150_v5 = vadd.f32 %v4376_v10, %v2149_v30 }
 0x4d6   :  { %v2605_v40 = vpop.f32.mrf.mxu0 }
 0x4d7   :  { %v4379_v2 = vadd.f32 %v2605_v40, %v2604_v28 }
 0x4d8   :  { %v2607_v25 = vpop.f32.mrf.mxu0 }
 0x4d9   :  { %v2151_v8 = vadd.f32 %v4379_v2, %v2150_v5 }
 0x4da   :  { %v2608_v16 = vpop.f32.mrf.mxu0 }
 0x4db   :  { %v4382_v21 = vadd.f32 %v2608_v16, %v2607_v25 }
 0x4dc   :  { %v2610_v39 = vpop.f32.mrf.mxu0 }
 0x4dd   :  { %v2152_v17 = vadd.f32 %v4382_v21, %v2151_v8 }
 0x4de   :  { %v2611_v24 = vpop.f32.mrf.mxu0 }
 0x4df   :  { %v4385_v14 = vadd.f32 %v2611_v24, %v2610_v39 }
 0x4e0   :  { %v2613_v56 = vpop.f32.mrf.mxu0 }
 0x4e1   :  { %v2153_v37 = vadd.f32 %v4385_v14, %v2152_v17 }
 0x4e2   :  { %v2614_v4 = vpop.f32.mrf.mxu0 }
 0x4e3   :  { %v4388_v20 = vadd.f32 %v2614_v4, %v2613_v56 }
 0x4e4   :  { %v2616_v50 = vpop.f32.mrf.mxu0 }
 0x4e5   :  { %v2154_v43 = vadd.f32 %v4388_v20, %v2153_v37 }
 0x4e6   :  { %v2617_v27 = vpop.f32.mrf.mxu0 }
 0x4e7   :  { %v4391_v55 = vadd.f32 %v2617_v27, %v2616_v50 }
 0x4e8   :  { %v2619_v18 = vpop.f32.mrf.mxu0 }
 0x4e9   :  { %v2155_v12 = vadd.f32 %v4391_v55, %v2154_v43 }
 0x4ea   :  { %v2620_v54 = vpop.f32.mrf.mxu0 }
 0x4eb   :  { %v4394_v53 = vadd.f32 %v2620_v54, %v2619_v18 }
 0x4ec   :  { %v2622_v49 = vpop.f32.mrf.mxu0 }
 0x4ed   :  { %v2156_v40 = vadd.f32 %v4394_v53, %v2155_v12 }
 0x4ee   :  { %v2623_v7 = vpop.f32.mrf.mxu0 }
 0x4ef   :  { %v4397_v28 = vadd.f32 %v2623_v7, %v2622_v49 }
 0x4f0   :  { %v2625_v45 = vpop.f32.mrf.mxu0 }
 0x4f1   :  { %v2157_v1 = vadd.f32 %v4397_v28, %v2156_v40 }
 0x4f2   :  { %v2626_v59 = vpop.f32.mrf.mxu0 }
 0x4f3   :  { %v4400_v58 = vadd.f32 %v2626_v59, %v2625_v45 }
 0x4f4   :  { %v2628_v62 = vpop.f32.mrf.mxu0 }
 0x4f5   :  { %v2158_v39 = vadd.f32 %v4400_v58, %v2157_v1 }
 0x4f6   :  { %v2629_v32 = vpop.f32.mrf.mxu0 }
 0x4f7   :  { %v4403_v16 = vadd.f32 %v2629_v32, %v2628_v62 }
 0x4f8   :  { %v2631_v15 = vpop.f32.mrf.mxu0 }
 0x4f9   :  { %v2159_v34 = vadd.f32 %v4403_v16, %v2158_v39 }
 0x4fa   :  { %v2632_v13 = vpop.f32.mrf.mxu0 }
 0x4fb   :  { %v4406_v61 = vadd.f32 %v2632_v13, %v2631_v15 }
 0x4fc   :  { %v2634_v25 = vpop.f32.mrf.mxu0 }
 0x4fd   :  { %v2160_v4 = vadd.f32 %v4406_v61, %v2159_v34 }
 0x4fe   :  { %v2635_v63 = vpop.f32.mrf.mxu0 }
 0x4ff   :  { %v4409_v56 = vadd.f32 %v2635_v63, %v2634_v25 }
 0x500   :  { %v2637_v24 = vpop.f32.mrf.mxu0 }
 0x501   :  { %v2161_v29 = vadd.f32 %v4409_v56, %v2160_v4 }
 0x502   :  { %v2638_v6 = vpop.f32.mrf.mxu0 }
 0x503   :  { %v4412_v0 = vadd.f32 %v2638_v6, %v2637_v24 }
 0x504   :  { %v2640_v50 = vpop.f32.mrf.mxu0 }
 0x505   :  { %v2162_v26 = vadd.f32 %v4412_v0, %v2161_v29 }
 0x506   :  { %v2641_v27 = vpop.f32.mrf.mxu0 }
 0x507   :  { %v4416_v18 = vadd.f32 %v2641_v27, %v2640_v50 }
 0x509   :  { %v2163_v3 = vadd.f32 %v4416_v18, %v2162_v26 }
 0x50b   :  { %v2164_v54 = vrot.slane %v2163_v3, 4 }
 0x50d   :  { %v2165_v36 = vadd.f32 %v2164_v54, %v2163_v3 }
 0x50f   :  { %v2166_v49 = vrot.slane %v2165_v36, 2 }
 0x511   :  { %v2167_v30 = vadd.f32 %v2166_v49, %v2165_v36 }
 0x513   :  { %v2168_v7 = vrot.slane %v2167_v30, 1 }
 0x515   :  { %v2169_v5 = vadd.f32 %v2168_v7, %v2167_v30 }
 0x517   :  { %v4419_v45 = vmul.f32 0.00390625, %v2169_v5 }
 0x519   :  { %v2171_v8 = vsub.f32 %v4323_v47, %v4419_v45  ;;  %v2172_v59 = vsub.f32 %v4325_v9, %v4419_v45  ;;  %v2173_v17 = vsub.f32 %v4327_v11, %v4419_v45  ;;  %v2174_v32 = vsub.f32 %v4331_v31, %v4419_v45 }
 0x51a   :  { %v2175_v43 = vsub.f32 %v4334_v19, %v4419_v45  ;;  %v2176_v13 = vsub.f32 %v4337_v35, %v4419_v45  ;;  %v2177_v1 = vsub.f32 %v4340_v44, %v4419_v45  ;;  %v2178_v24 = vsub.f32 %v4343_v48, %v4419_v45 }
 0x51b   :  { %v2203_v62 = vmul.f32 %v2171_v8, %v2171_v8  ;;  %v2204_v37 = vmul.f32 %v2172_v59, %v2172_v59  ;;  %v2205_v15 = vmul.f32 %v2173_v17, %v2173_v17  ;;  %v2206_v40 = vmul.f32 %v2174_v32, %v2174_v32 }
 0x51c   :  { %v2207_v63 = vmul.f32 %v2175_v43, %v2175_v43  ;;  %v2208_v34 = vmul.f32 %v2176_v13, %v2176_v13  ;;  %v2179_v4 = vsub.f32 %v4346_v42, %v4419_v45  ;;  %v2209_v50 = vmul.f32 %v2177_v1, %v2177_v1 }
 0x51d   :  { %v2235_v12 = vadd.f32 %v2204_v37, %v2203_v62  ;;  %v2180_v27 = vsub.f32 %v4349_v60, %v4419_v45  ;;  %v2210_v26 = vmul.f32 %v2178_v24, %v2178_v24  ;;  %v2181_v54 = vsub.f32 %v4352_v23, %v4419_v45 }
 0x51e   :  { %v2211_v36 = vmul.f32 %v2179_v4, %v2179_v4  ;;  %v2182_v30 = vsub.f32 %v4355_v33, %v4419_v45  ;;  %v2183_v8 = vsub.f32 %v4358_v57, %v4419_v45  ;;  %v2184_v62 = vsub.f32 %v4361_v41, %v4419_v45 }
 0x51f   :  { %v2236_v25 = vadd.f32 %v2235_v12, %v2205_v15  ;;  %v2212_v7 = vmul.f32 %v2180_v27, %v2180_v27  ;;  %v2213_v59 = vmul.f32 %v2181_v54, %v2181_v54  ;;  %v2185_v43 = vsub.f32 %v4364_v22, %v4419_v45 }
 0x520   :  { %v2214_v37 = vmul.f32 %v2182_v30, %v2182_v30  ;;  %v2215_v15 = vmul.f32 %v2183_v8, %v2183_v8  ;;  %v2186_v13 = vsub.f32 %v4367_v52, %v4419_v45  ;;  %v2187_v1 = vsub.f32 %v4370_v46, %v4419_v45 }
 0x521   :  { %v2237_v39 = vadd.f32 %v2236_v25, %v2206_v40  ;;  %v2216_v40 = vmul.f32 %v2184_v62, %v2184_v62  ;;  %v2188_v24 = vsub.f32 %v4373_v51, %v4419_v45  ;;  %v2189_v4 = vsub.f32 %v4376_v10, %v4419_v45 }
 0x522   :  { %v2190_v27 = vsub.f32 %v4379_v2, %v4419_v45  ;;  %v2191_v54 = vsub.f32 %v4382_v21, %v4419_v45  ;;  %v2192_v30 = vsub.f32 %v4385_v14, %v4419_v45  ;;  %v2193_v8 = vsub.f32 %v4388_v20, %v4419_v45 }
 0x523   :  { %v2238_v6 = vadd.f32 %v2237_v39, %v2207_v63  ;;  %v2217_v63 = vmul.f32 %v2185_v43, %v2185_v43  ;;  %v2194_v62 = vsub.f32 %v4391_v55, %v4419_v45  ;;  %v2195_v43 = vsub.f32 %v4394_v53, %v4419_v45 }
 0x525   :  { %v2239_v29 = vadd.f32 %v2238_v6, %v2208_v34  ;;  %v2218_v34 = vmul.f32 %v2186_v13, %v2186_v13  ;;  %v2196_v13 = vsub.f32 %v4397_v28, %v4419_v45 }
 0x527   :  { %v2240_v3 = vadd.f32 %v2239_v29, %v2209_v50  ;;  %v2219_v50 = vmul.f32 %v2187_v1, %v2187_v1  ;;  %v2197_v1 = vsub.f32 %v4400_v58, %v4419_v45 }
 0x529   :  { %v2241_v49 = vadd.f32 %v2240_v3, %v2210_v26  ;;  %v2220_v26 = vmul.f32 %v2188_v24, %v2188_v24  ;;  %v2198_v24 = vsub.f32 %v4403_v16, %v4419_v45 }
 0x52b   :  { %v2242_v5 = vadd.f32 %v2241_v49, %v2211_v36  ;;  %v2221_v36 = vmul.f32 %v2189_v4, %v2189_v4  ;;  %v2199_v4 = vsub.f32 %v4406_v61, %v4419_v45 }
 0x52d   :  { %v2243_v17 = vadd.f32 %v2242_v5, %v2212_v7  ;;  %v2222_v7 = vmul.f32 %v2190_v27, %v2190_v27  ;;  %v2200_v27 = vsub.f32 %v4409_v56, %v4419_v45 }
 0x52f   :  { %v2244_v32 = vadd.f32 %v2243_v17, %v2213_v59  ;;  %v2223_v59 = vmul.f32 %v2191_v54, %v2191_v54  ;;  %v2201_v54 = vsub.f32 %v4412_v0, %v4419_v45 }
 0x531   :  { %v2245_v12 = vadd.f32 %v2244_v32, %v2214_v37  ;;  %v2224_v37 = vmul.f32 %v2192_v30, %v2192_v30  ;;  %v2202_v30 = vsub.f32 %v4416_v18, %v4419_v45 }
 0x533   :  { %v2246_v25 = vadd.f32 %v2245_v12, %v2215_v15  ;;  %v2225_v15 = vmul.f32 %v2193_v8, %v2193_v8  ;;  %v2233_v8 = vmul.f32 %v2201_v54, %v2201_v54 }
 0x535   :  { %v2247_v39 = vadd.f32 %v2246_v25, %v2216_v40  ;;  %v2226_v40 = vmul.f32 %v2194_v62, %v2194_v62 }
 0x537   :  { %v2248_v6 = vadd.f32 %v2247_v39, %v2217_v63  ;;  %v2227_v63 = vmul.f32 %v2195_v43, %v2195_v43 }
 0x539   :  { %v2249_v29 = vadd.f32 %v2248_v6, %v2218_v34  ;;  %v2228_v34 = vmul.f32 %v2196_v13, %v2196_v13 }
 0x53b   :  { %v2250_v3 = vadd.f32 %v2249_v29, %v2219_v50  ;;  %v2229_v50 = vmul.f32 %v2197_v1, %v2197_v1 }
 0x53d   :  { %v2251_v49 = vadd.f32 %v2250_v3, %v2220_v26  ;;  %v2230_v26 = vmul.f32 %v2198_v24, %v2198_v24  ;;  %v2765_v24 = vld [vmem:[#allocation5] sm:$0xff] }
 0x53f   :  { %v2252_v5 = vadd.f32 %v2251_v49, %v2221_v36  ;;  %v2231_v36 = vmul.f32 %v2199_v4, %v2199_v4 }
 0x541   :  { %v2253_v17 = vadd.f32 %v2252_v5, %v2222_v7  ;;  %v2232_v7 = vmul.f32 %v2200_v27, %v2200_v27 }
 0x543   :  { %v2254_v32 = vadd.f32 %v2253_v17, %v2223_v59  ;;  %v2234_v17 = vmul.f32 %v2202_v30, %v2202_v30 }
 0x545   :  { %v2255_v12 = vadd.f32 %v2254_v32, %v2224_v37 }
 0x547   :  { %v2256_v25 = vadd.f32 %v2255_v12, %v2225_v15 }
 0x549   :  { %v2257_v39 = vadd.f32 %v2256_v25, %v2226_v40 }
 0x54b   :  { %v2258_v6 = vadd.f32 %v2257_v39, %v2227_v63  ;;  %v2283_v63 = vsub.s32 4, %v4849_v38 }
 0x54d   :  { %v2259_v29 = vadd.f32 %v2258_v6, %v2228_v34 }
 0x54f   :  { %v2260_v3 = vadd.f32 %v2259_v29, %v2229_v50  ;;  %v2319_v50 = vsub.s32 5, %v4849_v38 }
 0x551   :  { %v2261_v49 = vadd.f32 %v2260_v3, %v2230_v26 }
 0x553   :  { %v2262_v5 = vadd.f32 %v2261_v49, %v2231_v36 }
 0x555   :  { %v2263_v59 = vadd.f32 %v2262_v5, %v2232_v7 }
 0x557   :  { %v2264_v62 = vadd.f32 %v2263_v59, %v2233_v8 }
 0x559   :  { %v2265_v37 = vadd.f32 %v2264_v62, %v2234_v17 }
 0x55b   :  { %v2266_v32 = vrot.slane %v2265_v37, 4 }
 0x55d   :  { %v2267_v43 = vadd.f32 %v2266_v32, %v2265_v37 }
 0x55f   :  { %v2268_v15 = vrot.slane %v2267_v43, 2 }
 0x561   :  { %v2269_v12 = vadd.f32 %v2268_v15, %v2267_v43 }
 0x563   :  { %v2270_v13 = vrot.slane %v2269_v12, 1 }
 0x565   :  { %v2271_v40 = vadd.f32 %v2270_v13, %v2269_v12 }
 0x567   :  { %v2272_v25 = vmul.f32 0.00390625, %v2271_v40 }
 0x569   :  { %v2273_v1 = vadd.f32 1e-05, %v2272_v25 }
 0x56b   :  { %2761 = vrsqrt.f32 %v2273_v1 }
 0x578   :  { %v2762_v39 = vpop.eup %2761 }
 0x579   :  { %v2275_v34 = vmul.f32 %v2765_v24, %v2762_v39 }
 0x57b   :  { %v2276_v6 = vmul.f32 %v2275_v34, %v4419_v45  ;;  %v2284_v4 = vrot.slane %v2275_v34, %v2283_v63 }
 0x57d   :  { %v2278_v29 = vrot.slane %v2276_v6, 7  ;;  %v2316_v27 = vmul.f32 %v4416_v18, %v2284_v4  ;;  %v2285_v26 = vmul.f32 %v4323_v47, %v2284_v4  ;;  %v2286_v3 = vmul.f32 %v4325_v9, %v2284_v4 }
 0x57e   :  { %v2287_v54 = vmul.f32 %v4327_v11, %v2284_v4  ;;  %v2288_v36 = vmul.f32 %v4331_v31, %v2284_v4  ;;  %v2289_v49 = vmul.f32 %v4334_v19, %v2284_v4  ;;  %v2290_v30 = vmul.f32 %v4337_v35, %v2284_v4 }
 0x57f   :  { %v2280_v7 = vsub.f32 %v2765_v24, %v2278_v29  ;;  %v2291_v45 = vmul.f32 %v4340_v44, %v2284_v4  ;;  %v2292_v38 = vmul.f32 %v4343_v48, %v2284_v4  ;;  %v2293_v5 = vmul.f32 %v4346_v42, %v2284_v4 }
 0x580   :  { %v2294_v18 = vmul.f32 %v4349_v60, %v2284_v4  ;;  %v2295_v47 = vmul.f32 %v4352_v23, %v2284_v4  ;;  %v2296_v9 = vmul.f32 %v4355_v33, %v2284_v4  ;;  %v2297_v11 = vmul.f32 %v4358_v57, %v2284_v4 }
 0x581   :  { %v2320_v31 = vrot.slane %v2280_v7, %v2319_v50  ;;  %v2298_v19 = vmul.f32 %v4361_v41, %v2284_v4  ;;  %v2299_v35 = vmul.f32 %v4364_v22, %v2284_v4  ;;  %v2300_v8 = vmul.f32 %v4367_v52, %v2284_v4  ;;  %v2768_v7 = vld [vmem:[#allocation2 + $0x8] sm:$0xff] }
 0x582   :  { %v2301_v44 = vmul.f32 %v4370_v46, %v2284_v4  ;;  %v2302_v48 = vmul.f32 %v4373_v51, %v2284_v4  ;;  %v2303_v42 = vmul.f32 %v4376_v10, %v2284_v4  ;;  %v2304_v60 = vmul.f32 %v4379_v2, %v2284_v4  ;;  %v2766_v51 = vld [vmem:[#allocation2 + $0xf8] sm:$0xff] }
 0x583   :  { %v2352_v23 = vadd.f32 %v2320_v31, %v2316_v27  ;;  %v2305_v33 = vmul.f32 %v4382_v21, %v2284_v4  ;;  %v2306_v57 = vmul.f32 %v4385_v14, %v2284_v4  ;;  %v2307_v59 = vmul.f32 %v4388_v20, %v2284_v4 }
 0x584   :  { %v2308_v41 = vmul.f32 %v4391_v55, %v2284_v4  ;;  %v2309_v22 = vmul.f32 %v4394_v53, %v2284_v4  ;;  %v2310_v52 = vmul.f32 %v4397_v28, %v2284_v4  ;;  %v2311_v46 = vmul.f32 %v4400_v58, %v2284_v4 }
 0x585   :  { %v2384_v17 = vadd.f32 %v2766_v51, %v2352_v23  ;;  %v2312_v10 = vmul.f32 %v4403_v16, %v2284_v4  ;;  %v2313_v2 = vmul.f32 %v4406_v61, %v2284_v4  ;;  %v2314_v21 = vmul.f32 %v4409_v56, %v2284_v4  ;;  %v2776_v23 = vld [vmem:[#allocation2 + $0x48] sm:$0xff] }
 0x586   :  { %v2315_v14 = vmul.f32 %v4412_v0, %v2284_v4  ;;  %v2321_v62 = vadd.f32 %v2320_v31, %v2285_v26  ;;  %v2322_v20 = vadd.f32 %v2320_v31, %v2286_v3  ;;  %v2323_v37 = vadd.f32 %v2320_v31, %v2287_v54  ;;  %v2780_v51 = vld [vmem:[#allocation2 + $0x68] sm:$0xff] }
 0x587   :  { %v2416_v55 = vmax.f32 %v2384_v17, 0.0  ;;  %v2324_v32 = vadd.f32 %v2320_v31, %v2288_v36  ;;  %v2325_v53 = vadd.f32 %v2320_v31, %v2289_v49  ;;  %v2326_v43 = vadd.f32 %v2320_v31, %v2290_v30  ;;  %v2767_v49 = vld [vmem:[#allocation2] sm:$0xff] }
 0x588   :  { %v2327_v28 = vadd.f32 %v2320_v31, %v2291_v45  ;;  %v2328_v15 = vadd.f32 %v2320_v31, %v2292_v38  ;;  %v2329_v58 = vadd.f32 %v2320_v31, %v2293_v5  ;;  %v2330_v12 = vadd.f32 %v2320_v31, %v2294_v18  ;;  %v2769_v38 = vld [vmem:[#allocation2 + $0x10] sm:$0xff]  ;;  %v2770_v18 = vld [vmem:[#allocation2 + $0x18] sm:$0xff] }
 0x589   :  { %2448 = vst [vmem:[#allocation7 + $0xf8] sm:$0xff] %v2416_v55  ;;  %v2331_v13 = vadd.f32 %v2320_v31, %v2295_v47  ;;  %v2332_v16 = vadd.f32 %v2320_v31, %v2296_v9  ;;  %v2333_v40 = vadd.f32 %v2320_v31, %v2297_v11  ;;  %v2334_v61 = vadd.f32 %v2320_v31, %v2298_v19  ;;  %v2771_v9 = vld [vmem:[#allocation2 + $0x20] sm:$0xff]  ;;  %v2772_v19 = vld [vmem:[#allocation2 + $0x28] sm:$0xff] }
 0x58a   :  { %v2335_v25 = vadd.f32 %v2320_v31, %v2299_v35  ;;  %v2336_v56 = vadd.f32 %v2320_v31, %v2300_v8  ;;  %v2337_v1 = vadd.f32 %v2320_v31, %v2301_v44  ;;  %v2338_v0 = vadd.f32 %v2320_v31, %v2302_v48  ;;  %v2773_v8 = vld [vmem:[#allocation2 + $0x30] sm:$0xff]  ;;  %v2774_v44 = vld [vmem:[#allocation2 + $0x38] sm:$0xff] }
 0x58b   :  { %v2339_v63 = vadd.f32 %v2320_v31, %v2303_v42  ;;  %v2340_v39 = vadd.f32 %v2320_v31, %v2304_v60  ;;  %v2341_v24 = vadd.f32 %v2320_v31, %v2305_v33  ;;  %v2342_v34 = vadd.f32 %v2320_v31, %v2306_v57  ;;  %v2775_v42 = vld [vmem:[#allocation2 + $0x40] sm:$0xff]  ;;  %v2777_v57 = vld [vmem:[#allocation2 + $0x50] sm:$0xff] }
 0x58c   :  { %v2343_v6 = vadd.f32 %v2320_v31, %v2307_v59  ;;  %v2344_v4 = vadd.f32 %v2320_v31, %v2308_v41  ;;  %v2345_v50 = vadd.f32 %v2320_v31, %v2309_v22  ;;  %v2346_v29 = vadd.f32 %v2320_v31, %v2310_v52  ;;  %v2778_v41 = vld [vmem:[#allocation2 + $0x58] sm:$0xff]  ;;  %v2779_v52 = vld [vmem:[#allocation2 + $0x60] sm:$0xff] }
 0x58d   :  { %v2347_v27 = vadd.f32 %v2320_v31, %v2311_v46  ;;  %v2348_v26 = vadd.f32 %v2320_v31, %v2312_v10  ;;  %v2349_v3 = vadd.f32 %v2320_v31, %v2313_v2  ;;  %v2350_v54 = vadd.f32 %v2320_v31, %v2314_v21  ;;  %v2781_v10 = vld [vmem:[#allocation2 + $0x70] sm:$0xff]  ;;  %v2782_v21 = vld [vmem:[#allocation2 + $0x78] sm:$0xff] }
 0x58e   :  { %v2351_v36 = vadd.f32 %v2320_v31, %v2315_v14  ;;  %v4520_v30 = vadd.f32 %v2767_v49, %v2321_v62  ;;  %v4522_v45 = vadd.f32 %v2768_v7, %v2322_v20  ;;  %v4524_v5 = vadd.f32 %v2769_v38, %v2323_v37  ;;  %v2783_v62 = vld [vmem:[#allocation2 + $0x80] sm:$0xff]  ;;  %v2784_v37 = vld [vmem:[#allocation2 + $0x88] sm:$0xff] }
 0x58f   :  { %v4526_v47 = vadd.f32 %v2770_v18, %v2324_v32  ;;  %v4528_v11 = vadd.f32 %v2771_v9, %v2325_v53  ;;  %v4530_v35 = vadd.f32 %v2772_v19, %v2326_v43  ;;  %v4532_v31 = vadd.f32 %v2773_v8, %v2327_v28  ;;  %v2785_v32 = vld [vmem:[#allocation2 + $0x90] sm:$0xff]  ;;  %v2786_v43 = vld [vmem:[#allocation2 + $0x98] sm:$0xff] }
 0x590   :  { %v4534_v48 = vadd.f32 %v2774_v44, %v2328_v15  ;;  %v4536_v60 = vadd.f32 %v2775_v42, %v2329_v58  ;;  %v4538_v33 = vadd.f32 %v2776_v23, %v2330_v12  ;;  %v4540_v59 = vadd.f32 %v2777_v57, %v2331_v13  ;;  %v2787_v15 = vld [vmem:[#allocation2 + $0xa0] sm:$0xff]  ;;  %v2788_v12 = vld [vmem:[#allocation2 + $0xa8] sm:$0xff] }
 0x591   :  { %v4542_v22 = vadd.f32 %v2778_v41, %v2332_v16  ;;  %v4544_v46 = vadd.f32 %v2779_v52, %v2333_v40  ;;  %v4546_v17 = vadd.f32 %v2780_v51, %v2334_v61  ;;  %v4548_v2 = vadd.f32 %v2781_v10, %v2335_v25  ;;  %v2789_v16 = vld [vmem:[#allocation2 + $0xb0] sm:$0xff]  ;;  %v2790_v61 = vld [vmem:[#allocation2 + $0xb8] sm:$0xff] }
 0x592   :  { %v4550_v14 = vadd.f32 %v2782_v21, %v2336_v56  ;;  %v4552_v20 = vadd.f32 %v2783_v62, %v2337_v1  ;;  %v4554_v55 = vadd.f32 %v2784_v37, %v2338_v0  ;;  %v4556_v53 = vadd.f32 %v2785_v32, %v2339_v63  ;;  %v2791_v56 = vld [vmem:[#allocation2 + $0xc0] sm:$0xff]  ;;  %v2792_v0 = vld [vmem:[#allocation2 + $0xc8] sm:$0xff] }
 0x593   :  { %v4558_v28 = vadd.f32 %v2786_v43, %v2340_v39  ;;  %v4560_v58 = vadd.f32 %v2787_v15, %v2341_v24  ;;  %v4562_v13 = vadd.f32 %v2788_v12, %v2342_v34  ;;  %v4564_v40 = vadd.f32 %v2789_v16, %v2343_v6  ;;  %v2793_v39 = vld [vmem:[#allocation2 + $0xd0] sm:$0xff]  ;;  %v2794_v24 = vld [vmem:[#allocation2 + $0xd8] sm:$0xff]  ;;  %v2795_v34 = vld [vmem:[#allocation2 + $0xe0] sm:$0xff] }
 0x594   :  { %v4566_v25 = vadd.f32 %v2790_v61, %v2344_v4  ;;  %v4568_v1 = vadd.f32 %v2791_v56, %v2345_v50  ;;  %v4570_v63 = vadd.f32 %v2792_v0, %v2346_v29  ;;  %v4572_v49 = vadd.f32 %v2793_v39, %v2347_v27  ;;  %v2796_v6 = vld [vmem:[#allocation2 + $0xe8] sm:$0xff]  ;;  %v2797_v4 = vld [vmem:[#allocation2 + $0xf0] sm:$0xff] }
 0x595   :  { %v4574_v7 = vadd.f32 %v2794_v24, %v2348_v26  ;;  %v4576_v38 = vadd.f32 %v2795_v34, %v2349_v3  ;;  %v4578_v18 = vadd.f32 %v2796_v6, %v2350_v54  ;;  %v4580_v9 = vadd.f32 %v2797_v4, %v2351_v36 }
 0x596   :  { %v2385_v50 = vmax.f32 %v4520_v30, 0.0  ;;  %v2386_v29 = vmax.f32 %v4522_v45, 0.0  ;;  %v2387_v19 = vmax.f32 %v4524_v5, 0.0  ;;  %v2388_v27 = vmax.f32 %v4526_v47, 0.0 }
 0x597   :  { %v2389_v26 = vmax.f32 %v4528_v11, 0.0  ;;  %v2390_v8 = vmax.f32 %v4530_v35, 0.0  ;;  %v2391_v3 = vmax.f32 %v4532_v31, 0.0  ;;  %v2392_v54 = vmax.f32 %v4534_v48, 0.0 }
 0x598   :  { %v2393_v44 = vmax.f32 %v4536_v60, 0.0  ;;  %v2394_v36 = vmax.f32 %v4538_v33, 0.0  ;;  %v2395_v30 = vmax.f32 %v4540_v59, 0.0  ;;  %v2396_v45 = vmax.f32 %v4542_v22, 0.0  ;;  %2417 = vst [vmem:[#allocation7] sm:$0xff] %v2385_v50  ;;  %2418 = vst [vmem:[#allocation7 + $0x8] sm:$0xff] %v2386_v29 }
 0x599   :  { %2419 = vst [vmem:[#allocation7 + $0x10] sm:$0xff] %v2387_v19  ;;  %2420 = vst [vmem:[#allocation7 + $0x18] sm:$0xff] %v2388_v27  ;;  %v2397_v5 = vmax.f32 %v4544_v46, 0.0  ;;  %v2398_v47 = vmax.f32 %v4546_v17, 0.0  ;;  %v2399_v11 = vmax.f32 %v4548_v2, 0.0  ;;  %v2400_v35 = vmax.f32 %v4550_v14, 0.0 }
 0x59a   :  { %2421 = vst [vmem:[#allocation7 + $0x20] sm:$0xff] %v2389_v26  ;;  %2422 = vst [vmem:[#allocation7 + $0x28] sm:$0xff] %v2390_v8  ;;  %v2401_v31 = vmax.f32 %v4552_v20, 0.0  ;;  %v2402_v48 = vmax.f32 %v4554_v55, 0.0  ;;  %v2403_v42 = vmax.f32 %v4556_v53, 0.0  ;;  %v2404_v60 = vmax.f32 %v4558_v28, 0.0 }
 0x59b   :  { %2423 = vst [vmem:[#allocation7 + $0x30] sm:$0xff] %v2391_v3  ;;  %2424 = vst [vmem:[#allocation7 + $0x38] sm:$0xff] %v2392_v54  ;;  %v2405_v23 = vmax.f32 %v4560_v58, 0.0  ;;  %v2406_v33 = vmax.f32 %v4562_v13, 0.0  ;;  %v2407_v57 = vmax.f32 %v4564_v40, 0.0  ;;  %v2408_v59 = vmax.f32 %v4566_v25, 0.0 }
 0x59c   :  { %2425 = vst [vmem:[#allocation7 + $0x40] sm:$0xff] %v2393_v44  ;;  %2426 = vst [vmem:[#allocation7 + $0x48] sm:$0xff] %v2394_v36  ;;  %v2409_v41 = vmax.f32 %v4568_v1, 0.0  ;;  %v2410_v22 = vmax.f32 %v4570_v63, 0.0  ;;  %v2411_v52 = vmax.f32 %v4572_v49, 0.0  ;;  %v2412_v46 = vmax.f32 %v4574_v7, 0.0 }
 0x59d   :  { %2427 = vst [vmem:[#allocation7 + $0x50] sm:$0xff] %v2395_v30  ;;  %2428 = vst [vmem:[#allocation7 + $0x58] sm:$0xff] %v2396_v45  ;;  %v2413_v51 = vmax.f32 %v4576_v38, 0.0  ;;  %v2414_v17 = vmax.f32 %v4578_v18, 0.0  ;;  %v2415_v10 = vmax.f32 %v4580_v9, 0.0 }
 0x59e   :  { %2429 = vst [vmem:[#allocation7 + $0x60] sm:$0xff] %v2397_v5  ;;  %2430 = vst [vmem:[#allocation7 + $0x68] sm:$0xff] %v2398_v47 }
 0x59f   :  { %2431 = vst [vmem:[#allocation7 + $0x70] sm:$0xff] %v2399_v11  ;;  %2432 = vst [vmem:[#allocation7 + $0x78] sm:$0xff] %v2400_v35 }
 0x5a0   :  { %2433 = vst [vmem:[#allocation7 + $0x80] sm:$0xff] %v2401_v31  ;;  %2434 = vst [vmem:[#allocation7 + $0x88] sm:$0xff] %v2402_v48 }
 0x5a1   :  { %2435 = vst [vmem:[#allocation7 + $0x90] sm:$0xff] %v2403_v42  ;;  %2436 = vst [vmem:[#allocation7 + $0x98] sm:$0xff] %v2404_v60 }
 0x5a2   :  { %2437 = vst [vmem:[#allocation7 + $0xa0] sm:$0xff] %v2405_v23  ;;  %2438 = vst [vmem:[#allocation7 + $0xa8] sm:$0xff] %v2406_v33 }
 0x5a3   :  { %2439 = vst [vmem:[#allocation7 + $0xb0] sm:$0xff] %v2407_v57  ;;  %2440 = vst [vmem:[#allocation7 + $0xb8] sm:$0xff] %v2408_v59 }
 0x5a4   :  { %2441 = vst [vmem:[#allocation7 + $0xc0] sm:$0xff] %v2409_v41  ;;  %2442 = vst [vmem:[#allocation7 + $0xc8] sm:$0xff] %v2410_v22 }
 0x5a5   :  { %2443 = vst [vmem:[#allocation7 + $0xd0] sm:$0xff] %v2411_v52  ;;  %2444 = vst [vmem:[#allocation7 + $0xd8] sm:$0xff] %v2412_v46 }
 0x5a6   :  { %2445 = vst [vmem:[#allocation7 + $0xe0] sm:$0xff] %v2413_v51  ;;  %2446 = vst [vmem:[#allocation7 + $0xe8] sm:$0xff] %v2414_v17 }
 0x5a7   :  { %2447 = vst [vmem:[#allocation7 + $0xf0] sm:$0xff] %v2415_v10 }
 0x5a8   :  { %2849 = shalt.err (!%p2846_p0)
}
 0x5a9   :  { %2460 = dma.vmem_to_hbm [thread:$0]  %s2455_s27, 4096, %s4624_s5, [#allocation4], %s2865_s21, %s2865_s21, %s2866_s22  }
 0x5aa   :  { %2862 = dma.done.wait [#allocation4], 4096  }
 0x5ab   :  { %2863 = vsyncadd [#allocation4], 4294963200 }
 0x5ac   :  { %2464 = vsyncpa [#allocation3], 1 }
 0x5ad   :  { %2465 = vsyncpa [#allocation6], 1 }
 0x5ae   :  { %2466 = vsyncpa [#allocation4], 1 }

</bundles_post_ra>
